<compile_context>
chip_gen: v5e
topology: v5e:2x2
jax: 0.10.0
libtpu: 0.0.40
codegen_flags: <defaults>
</compile_context>

<pallas_src>
import functools

import jax
import jax.numpy as jnp
from jax.experimental import pallas as pl
from jax.experimental.pallas import tpu as pltpu


# ---------------------------------------------------------------------------
# Pallas kernels
# ---------------------------------------------------------------------------
def _conv3_kernel(x_ref, w_ref, b_ref, o_ref, acc_ref, *, stride, wpp, m):
    """Fused RepVGG block: 3x3x3 conv (one output depth plane) + bias + ReLU.

    Grid: (N, Cout_tiles, Do, 3).  The last axis (kd) is the depth-tap
    reduction axis; the f32 accumulator lives in VMEM scratch.

    x_ref : (1, s*s, L, Cin)  bf16  flattened, phase-split padded plane
    w_ref : (27, Cin, tn)     bf16  fused 3x3x3 weights, tap-major
    b_ref : (1, tn)           f32   fused bias
    o_ref : (1, M, tn)        bf16  flat output plane (M = Ho * Wpp)
    acc   : (M, tn)           f32
    """
    kd = pl.program_id(3)

    @pl.when(kd == 0)
    def _init():
        acc_ref[...] = jnp.zeros_like(acc_ref)

    acc = acc_ref[...]
    for kh in range(3):
        ph, a = kh % stride, kh // stride
        for kw in range(3):
            pw, b = kw % stride, kw // stride
            off = a * wpp + b                                   # static offset
            patch = x_ref[0, ph * stride + pw, pl.ds(off, m), :]   # (M, Cin)
            w_tap = w_ref[kd * 9 + kh * 3 + kw]                    # (Cin, tn)
            acc = acc + jnp.dot(patch, w_tap,
                                preferred_element_type=jnp.float32)
    acc_ref[...] = acc

    @pl.when(kd == pl.num_programs(3) - 1)
    def _finalize():
        res = acc_ref[...] + b_ref[...]                         # f32 epilogue
        o_ref[0] = jnp.maximum(res, 0.0).astype(o_ref.dtype)


def _gap_linear_kernel(x_ref, w_ref, b_ref, o_ref):
    # x: (N, S, C) bf16 -> mean over S (f32), then (N, C) @ (C, 128) + bias.
    pooled = jnp.mean(x_ref[...].astype(jnp.float32), axis=1)   # (N, C)
    out = jnp.dot(pooled, w_ref[...], preferred_element_type=jnp.float32)
    o_ref[...] = (out + b_ref[...]).astype(o_ref.dtype)


# ---------------------------------------------------------------------------
# Block application (conv + bias + ReLU), stride handled via phase split
# ---------------------------------------------------------------------------
def repvgg_block_apply(x, w_flat, bias, stride, cout):
    """x: (N, D, H, W, Cin) bf16; w_flat: (27, Cin, CoutP) bf16;
    bias: (1, CoutP) f32.  Returns (N, Do, Ho, Wo, cout) bf16."""
    N, D, H, W, Cin = x.shape
    s = stride
    Do = (D - 1) // s + 1
    Ho = (H - 1) // s + 1
    Wo = (W - 1) // s + 1
    a_max = 2 // s                      # max in-phase tap offset
    Hpp, Wpp = Ho + a_max, Wo + a_max   # phase-plane extents actually read
    Hs = Hpp + 1                        # +1 zero row: slack for flat over-read
    Dp = D + 2

    # Zero-pad (conv pad=1 plus phase/slack padding), split H/W into `s`
    # phases, flatten each phase plane.  For s == 1 this is a free reshape of
    # the padded tensor; for s == 2 it is a single copy (no duplication).
    xp = jnp.pad(x, ((0, 0), (1, 1), (1, s * Hs - H - 1),
                     (1, s * Wpp - W - 1), (0, 0)))
    xp = xp.reshape(N, Dp, Hs, s, Wpp, s, Cin)
    xp = jnp.transpose(xp, (0, 1, 3, 5, 2, 4, 6))   # (N, Dp, s, s, Hs, Wpp, C)
    L = Hs * Wpp
    xf = xp.reshape(N * Dp, s * s, L, Cin)

    M = Ho * Wpp                                    # flat output rows / plane
    CoutP = w_flat.shape[-1]
    tn = 256 if CoutP % 256 == 0 else 128           # lane-dense N tile
    grid = (N, CoutP // tn, Do, 3)

    out = pl.pallas_call(
        functools.partial(_conv3_kernel, stride=s, wpp=Wpp, m=M),
        out_shape=jax.ShapeDtypeStruct((N * Do, M, CoutP), jnp.bfloat16),
        grid=grid,
        in_specs=[
            pl.BlockSpec((1, s * s, L, Cin),
                         lambda n, ct, do, kd: (n * Dp + s * do + kd, 0, 0, 0)),
            pl.BlockSpec((27, Cin, tn), lambda n, ct, do, kd: (0, 0, ct)),
            pl.BlockSpec((1, tn), lambda n, ct, do, kd: (0, ct)),
        ],
        out_specs=pl.BlockSpec((1, M, tn),
                               lambda n, ct, do, kd: (n * Do + do, 0, ct)),
        scratch_shapes=[pltpu.VMEM((M, tn), jnp.float32)],
        compiler_params=pltpu.CompilerParams(
            dimension_semantics=("parallel", "parallel", "parallel",
                                 "arbitrary"),
            vmem_limit_bytes=48 * 1024 * 1024),
    )(xf, w_flat, bias)

    out = out.reshape(N, Do, Ho, Wpp, CoutP)
    return out[:, :, :, :Wo, :cout]                 # drop over-compute + pad


def _gap_linear(x3, w, b):
    Nb, S, C = x3.shape
    CP = w.shape[-1]
    return pl.pallas_call(
        _gap_linear_kernel,
        out_shape=jax.ShapeDtypeStruct((Nb, CP), jnp.float32),
        grid=(1,),
        in_specs=[
            pl.BlockSpec((Nb, S, C), lambda i: (0, 0, 0)),
            pl.BlockSpec((C, CP), lambda i: (0, 0)),
            pl.BlockSpec((1, CP), lambda i: (0, 0)),
        ],
        out_specs=pl.BlockSpec((Nb, CP), lambda i: (0, 0)),
    )(x3, w, b)


# ---------------------------------------------------------------------------
# Parameter construction (deterministic) + BN fusion (RepVGG reparam)
# ---------------------------------------------------------------------------
def _fuse_bn(kernel, gamma, beta, mean, var, eps=1e-5):
    # kernel: (Cout, Cin, kd, kh, kw)
    std = jnp.sqrt(var + eps)
    t = (gamma / std).reshape(-1, 1, 1, 1, 1)
    return kernel * t, beta - mean * gamma / std


def _bn_params(key, c):
    k1, k2, k3, k4 = jax.random.split(key, 4)
    gamma = 1.0 + 0.1 * jax.random.normal(k1, (c,), jnp.float32)
    beta = 0.05 * jax.random.normal(k2, (c,), jnp.float32)
    mean = 0.1 * jax.random.normal(k3, (c,), jnp.float32)
    var = 0.5 + jnp.abs(jax.random.normal(k4, (c,), jnp.float32)) * 0.5
    return gamma, beta, mean, var


def _make_block_params(key, cin, cout, stride):
    """Fused (27, Cin, CoutP) bf16 weights + (1, CoutP) f32 bias (eval BN)."""
    k3, kb3, k1, kb1, kbid = jax.random.split(key, 5)
    w3 = 0.1 * jax.random.normal(k3, (cout, cin, 3, 3, 3), jnp.float32)
    w1 = 0.1 * jax.random.normal(k1, (cout, cin, 1, 1, 1), jnp.float32)

    kf3, bf3 = _fuse_bn(w3, *_bn_params(kb3, cout))
    kf1, bf1 = _fuse_bn(w1, *_bn_params(kb1, cout))
    kf1 = jnp.pad(kf1, ((0, 0), (0, 0), (1, 1), (1, 1), (1, 1)))

    kernel = kf3 + kf1
    bias = bf3 + bf1

    if cin == cout and stride == 1:          # identity (BatchNorm3d) branch
        idk = jnp.zeros((cin, cin, 3, 3, 3), jnp.float32)
        idk = idk.at[jnp.arange(cin), jnp.arange(cin), 1, 1, 1].set(1.0)
        kfid, bfid = _fuse_bn(idk, *_bn_params(kbid, cout))
        kernel = kernel + kfid
        bias = bias + bfid

    coutp = max(128, -(-cout // 128) * 128)  # lane-dense Cout padding
    # (Cout,Cin,kd,kh,kw) -> (kd,kh,kw,Cin,Cout) -> (27, Cin, Cout) -> pad.
    w_flat = jnp.transpose(kernel, (2, 3, 4, 1, 0)).reshape(27, cin, cout)
    w_flat = jnp.pad(w_flat, ((0, 0), (0, 0), (0, coutp - cout)))
    b_pad = jnp.pad(bias, (0, coutp - cout)).reshape(1, coutp)
    return {"w": w_flat.astype(jnp.bfloat16),
            "b": b_pad.astype(jnp.float32),
            "stride": stride, "cout": cout}


def make_repvgg_params(key, num_blocks, in_channels, width_multiplier):
    assert len(width_multiplier) == 4
    in_planes = min(64, int(64 * width_multiplier[0]))
    stage_planes = [int(64 * width_multiplier[0]),
                    int(128 * width_multiplier[1]),
                    int(256 * width_multiplier[2]),
                    int(512 * width_multiplier[3])]

    blocks, stage_sizes = [], []
    key, k0 = jax.random.split(key)
    blocks.append(_make_block_params(k0, in_channels, in_planes, stride=2))
    stage_sizes.append(1)
    cur_in = in_planes
    for planes, nb in zip(stage_planes, num_blocks):
        strides = [2] + [1] * (nb - 1)
        for s in strides:
            key, kb = jax.random.split(key)
            blocks.append(_make_block_params(kb, cur_in, planes, stride=s))
            cur_in = planes
        stage_sizes.append(nb)

    key, kw, kb = jax.random.split(key, 3)
    lin_w = 0.1 * jax.random.normal(kw, (cur_in, 1), jnp.float32)
    lin_b = 0.05 * jax.random.normal(kb, (1, 1), jnp.float32)
    # Pad the single output unit to 128 lanes (dense store); col 0 is real.
    lin_w = jnp.pad(lin_w, ((0, 0), (0, 127)))
    lin_b = jnp.pad(lin_b, ((0, 0), (0, 127)))
    return {"blocks": blocks, "stage_sizes": stage_sizes,
            "lin_w": lin_w, "lin_b": lin_b}


# ---------------------------------------------------------------------------
# Full forward
# ---------------------------------------------------------------------------
@functools.partial(jax.jit,
                   static_argnames=("stage_sizes", "strides", "couts"))
def _repvgg_forward_impl(x_ncdhw, block_ws, block_bs, lin_w, lin_b,
                         stage_sizes, strides, couts):
    x = jnp.transpose(x_ncdhw, (0, 2, 3, 4, 1)).astype(jnp.bfloat16)  # NDHWC
    ret = []
    idx = 0
    for n_in_stage in stage_sizes:
        for _ in range(n_in_stage):
            x = repvgg_block_apply(x, block_ws[idx], block_bs[idx],
                                   strides[idx], couts[idx])
            idx += 1
        # Inter-block activations stay channels-last bf16; only the returned
        # feature maps are transposed back to NCDHW / f32.
        ret.append(jnp.transpose(x, (0, 4, 1, 2, 3)).astype(jnp.float32))
    Nb, C = x.shape[0], x.shape[-1]
    x3 = x.reshape(Nb, -1, C)
    out_pad = _gap_linear(x3, lin_w, lin_b)          # (Nb, 128) lane-dense
    return out_pad[:, :1], ret


def repvgg_forward(x_ncdhw, params):
    block_ws = tuple(b["w"] for b in params["blocks"])
    block_bs = tuple(b["b"] for b in params["blocks"])
    strides = tuple(b["stride"] for b in params["blocks"])
    couts = tuple(b["cout"] for b in params["blocks"])
    return _repvgg_forward_impl(x_ncdhw, block_ws, block_bs,
                                params["lin_w"], params["lin_b"],
                                tuple(params["stage_sizes"]), strides, couts)


# ---------------------------------------------------------------------------
if __name__ == "__main__":
    key = jax.random.PRNGKey(0)
    kx, kp = jax.random.split(key)

    # Small config: num_blocks=[2,1,1,1], width_multiplier=[0.25]*4,
    # in_channels=4, input spatial 16^3, batch 2.
    x = jax.random.normal(kx, (2, 4, 16, 16, 16), jnp.float32)
    params = make_repvgg_params(kp, num_blocks=(2, 1, 1, 1),
                                in_channels=4,
                                width_multiplier=(0.25, 0.25, 0.25, 0.25))

    out, ret = repvgg_forward(x, params)
    out = jax.block_until_ready(out)
    ret = jax.block_until_ready(ret)

    assert out.shape == (2, 1), out.shape
    assert len(ret) == 5
    assert ret[0].shape == (2, 16, 8, 8, 8), ret[0].shape
    assert ret[-1].shape == (2, 128, 1, 1, 1), ret[-1].shape
    assert bool(jnp.all(jnp.isfinite(out)))

    print("KERNEL_OK")
</pallas_src>

<mosaic_0001>
module attributes {stable_mosaic.version = 11 : i64} {
  func.func @_conv3_kernel(%arg0: i32, %arg1: i32, %arg2: i32, %arg3: i32, %arg4: memref<1x4x90x4xbf16, #tpu.memory_space<vmem>>, %arg5: memref<27x4x128xbf16, #tpu.memory_space<vmem>>, %arg6: memref<1x128xf32, #tpu.memory_space<vmem>>, %arg7: memref<1x72x128xbf16, #tpu.memory_space<vmem>>, %arg8: memref<72x128xf32, #tpu.memory_space<vmem>>) attributes {dimension_semantics = [#tpu.dimension_semantics<parallel>, #tpu.dimension_semantics<parallel>, #tpu.dimension_semantics<parallel>, #tpu.dimension_semantics<arbitrary>], iteration_bounds = array<i64: 2, 1, 8, 3>, scalar_prefetch = 0 : i64, scratch_operands = 1 : i64, tpu.core_type = #tpu.core_type<tc>, window_params = [{transform_indices = @transform_0, window_bounds = array<i64: 1, 4, 90, 4>}, {transform_indices = @transform_1, window_bounds = array<i64: 27, 4, 128>}, {transform_indices = @transform_2, window_bounds = array<i64: 1, 128>}, {transform_indices = @transform_3, window_bounds = array<i64: 1, 72, 128>}]} {
    %c0_i32 = arith.constant 0 : i32
    %0 = arith.cmpi eq, %arg3, %c0_i32 : i32
    %1 = arith.extui %0 : i1 to i32
    %c0_i32_0 = arith.constant 0 : i32
    %2 = arith.cmpi ne, %1, %c0_i32_0 : i32
    scf.if %2 {
      %cst_85 = arith.constant 0.000000e+00 : f32
      %98 = vector.broadcast %cst_85 : f32 to vector<72x128xf32>
      %c0_86 = arith.constant 0 : index
      %c0_87 = arith.constant 0 : index
      %99 = vector.load %arg8[%c0_86, %c0_87] : memref<72x128xf32, #tpu.memory_space<vmem>>, vector<72x128xf32>
      tpu.vector_store %arg8[%c0_86, %c0_87], %98 {strides = array<i32>} : memref<72x128xf32, #tpu.memory_space<vmem>>, vector<72x128xf32>,
    } else {
    }
    %c0 = arith.constant 0 : index
    %c0_1 = arith.constant 0 : index
    %3 = vector.load %arg8[%c0, %c0_1] : memref<72x128xf32, #tpu.memory_space<vmem>>, vector<72x128xf32>
    %c0_2 = arith.constant 0 : index
    %c0_3 = arith.constant 0 : index
    %c0_4 = arith.constant 0 : index
    %c0_5 = arith.constant 0 : index
    %4 = vector.load %arg4[%c0_2, %c0_3, %c0_4, %c0_5] : memref<1x4x90x4xbf16, #tpu.memory_space<vmem>>, vector<1x1x72x4xbf16>
    %5 = vector.shape_cast %4 : vector<1x1x72x4xbf16> to vector<72x4xbf16>
    %c9_i32 = arith.constant 9 : i32
    %6 = arith.muli %arg3, %c9_i32 : i32
    %c0_i32_6 = arith.constant 0 : i32
    %7 = arith.addi %6, %c0_i32_6 : i32
    %c0_i32_7 = arith.constant 0 : i32
    %8 = arith.addi %7, %c0_i32_7 : i32
    %9 = arith.index_cast %8 : i32 to index
    %c0_8 = arith.constant 0 : index
    %c0_9 = arith.constant 0 : index
    %10 = vector.load %arg5[%9, %c0_8, %c0_9] : memref<27x4x128xbf16, #tpu.memory_space<vmem>>, vector<1x4x128xbf16>
    %11 = vector.shape_cast %10 : vector<1x4x128xbf16> to vector<4x128xbf16>
    %cst = arith.constant dense<0.000000e+00> : vector<72x128xf32>
    %12 = tpu.matmul %5, %11, %cst {dimension_numbers = #tpu.dot_dimension_numbers<[1], [0], [0], [1], [0, 0, 1, 1], [], []>} : vector<72x4xbf16>, vector<4x128xbf16>, vector<72x128xf32> -> vector<72x128xf32>
    %13 = arith.addf %3, %12 : vector<72x128xf32>
    %c0_10 = arith.constant 0 : index
    %c1 = arith.constant 1 : index
    %c0_11 = arith.constant 0 : index
    %c0_12 = arith.constant 0 : index
    %14 = vector.load %arg4[%c0_10, %c1, %c0_11, %c0_12] : memref<1x4x90x4xbf16, #tpu.memory_space<vmem>>, vector<1x1x72x4xbf16>
    %15 = vector.shape_cast %14 : vector<1x1x72x4xbf16> to vector<72x4xbf16>
    %c9_i32_13 = arith.constant 9 : i32
    %16 = arith.muli %arg3, %c9_i32_13 : i32
    %c0_i32_14 = arith.constant 0 : i32
    %17 = arith.addi %16, %c0_i32_14 : i32
    %c1_i32 = arith.constant 1 : i32
    %18 = arith.addi %17, %c1_i32 : i32
    %19 = arith.index_cast %18 : i32 to index
    %c0_15 = arith.constant 0 : index
    %c0_16 = arith.constant 0 : index
    %20 = vector.load %arg5[%19, %c0_15, %c0_16] : memref<27x4x128xbf16, #tpu.memory_space<vmem>>, vector<1x4x128xbf16>
    %21 = vector.shape_cast %20 : vector<1x4x128xbf16> to vector<4x128xbf16>
    %cst_17 = arith.constant dense<0.000000e+00> : vector<72x128xf32>
    %22 = tpu.matmul %15, %21, %cst_17 {dimension_numbers = #tpu.dot_dimension_numbers<[1], [0], [0], [1], [0, 0, 1, 1], [], []>} : vector<72x4xbf16>, vector<4x128xbf16>, vector<72x128xf32> -> vector<72x128xf32>
    %23 = arith.addf %13, %22 : vector<72x128xf32>
    %c0_18 = arith.constant 0 : index
    %c0_19 = arith.constant 0 : index
    %c1_20 = arith.constant 1 : index
    %c0_21 = arith.constant 0 : index
    %24 = vector.load %arg4[%c0_18, %c0_19, %c1_20, %c0_21] : memref<1x4x90x4xbf16, #tpu.memory_space<vmem>>, vector<1x1x72x4xbf16>
    %25 = vector.shape_cast %24 : vector<1x1x72x4xbf16> to vector<72x4xbf16>
    %c9_i32_22 = arith.constant 9 : i32
    %26 = arith.muli %arg3, %c9_i32_22 : i32
    %c0_i32_23 = arith.constant 0 : i32
    %27 = arith.addi %26, %c0_i32_23 : i32
    %c2_i32 = arith.constant 2 : i32
    %28 = arith.addi %27, %c2_i32 : i32
    %29 = arith.index_cast %28 : i32 to index
    %c0_24 = arith.constant 0 : index
    %c0_25 = arith.constant 0 : index
    %30 = vector.load %arg5[%29, %c0_24, %c0_25] : memref<27x4x128xbf16, #tpu.memory_space<vmem>>, vector<1x4x128xbf16>
    %31 = vector.shape_cast %30 : vector<1x4x128xbf16> to vector<4x128xbf16>
    %cst_26 = arith.constant dense<0.000000e+00> : vector<72x128xf32>
    %32 = tpu.matmul %25, %31, %cst_26 {dimension_numbers = #tpu.dot_dimension_numbers<[1], [0], [0], [1], [0, 0, 1, 1], [], []>} : vector<72x4xbf16>, vector<4x128xbf16>, vector<72x128xf32> -> vector<72x128xf32>
    %33 = arith.addf %23, %32 : vector<72x128xf32>
    %c0_27 = arith.constant 0 : index
    %c2 = arith.constant 2 : index
    %c0_28 = arith.constant 0 : index
    %c0_29 = arith.constant 0 : index
    %34 = vector.load %arg4[%c0_27, %c2, %c0_28, %c0_29] : memref<1x4x90x4xbf16, #tpu.memory_space<vmem>>, vector<1x1x72x4xbf16>
    %35 = vector.shape_cast %34 : vector<1x1x72x4xbf16> to vector<72x4xbf16>
    %c9_i32_30 = arith.constant 9 : i32
    %36 = arith.muli %arg3, %c9_i32_30 : i32
    %c3_i32 = arith.constant 3 : i32
    %37 = arith.addi %36, %c3_i32 : i32
    %c0_i32_31 = arith.constant 0 : i32
    %38 = arith.addi %37, %c0_i32_31 : i32
    %39 = arith.index_cast %38 : i32 to index
    %c0_32 = arith.constant 0 : index
    %c0_33 = arith.constant 0 : index
    %40 = vector.load %arg5[%39, %c0_32, %c0_33] : memref<27x4x128xbf16, #tpu.memory_space<vmem>>, vector<1x4x128xbf16>
    %41 = vector.shape_cast %40 : vector<1x4x128xbf16> to vector<4x128xbf16>
    %cst_34 = arith.constant dense<0.000000e+00> : vector<72x128xf32>
    %42 = tpu.matmul %35, %41, %cst_34 {dimension_numbers = #tpu.dot_dimension_numbers<[1], [0], [0], [1], [0, 0, 1, 1], [], []>} : vector<72x4xbf16>, vector<4x128xbf16>, vector<72x128xf32> -> vector<72x128xf32>
    %43 = arith.addf %33, %42 : vector<72x128xf32>
    %c0_35 = arith.constant 0 : index
    %c3 = arith.constant 3 : index
    %c0_36 = arith.constant 0 : index
    %c0_37 = arith.constant 0 : index
    %44 = vector.load %arg4[%c0_35, %c3, %c0_36, %c0_37] : memref<1x4x90x4xbf16, #tpu.memory_space<vmem>>, vector<1x1x72x4xbf16>
    %45 = vector.shape_cast %44 : vector<1x1x72x4xbf16> to vector<72x4xbf16>
    %c9_i32_38 = arith.constant 9 : i32
    %46 = arith.muli %arg3, %c9_i32_38 : i32
    %c3_i32_39 = arith.constant 3 : i32
    %47 = arith.addi %46, %c3_i32_39 : i32
    %c1_i32_40 = arith.constant 1 : i32
    %48 = arith.addi %47, %c1_i32_40 : i32
    %49 = arith.index_cast %48 : i32 to index
    %c0_41 = arith.constant 0 : index
    %c0_42 = arith.constant 0 : index
    %50 = vector.load %arg5[%49, %c0_41, %c0_42] : memref<27x4x128xbf16, #tpu.memory_space<vmem>>, vector<1x4x128xbf16>
    %51 = vector.shape_cast %50 : vector<1x4x128xbf16> to vector<4x128xbf16>
    %cst_43 = arith.constant dense<0.000000e+00> : vector<72x128xf32>
    %52 = tpu.matmul %45, %51, %cst_43 {dimension_numbers = #tpu.dot_dimension_numbers<[1], [0], [0], [1], [0, 0, 1, 1], [], []>} : vector<72x4xbf16>, vector<4x128xbf16>, vector<72x128xf32> -> vector<72x128xf32>
    %53 = arith.addf %43, %52 : vector<72x128xf32>
    %c0_44 = arith.constant 0 : index
    %c2_45 = arith.constant 2 : index
    %c1_46 = arith.constant 1 : index
    %c0_47 = arith.constant 0 : index
    %54 = vector.load %arg4[%c0_44, %c2_45, %c1_46, %c0_47] : memref<1x4x90x4xbf16, #tpu.memory_space<vmem>>, vector<1x1x72x4xbf16>
    %55 = vector.shape_cast %54 : vector<1x1x72x4xbf16> to vector<72x4xbf16>
    %c9_i32_48 = arith.constant 9 : i32
    %56 = arith.muli %arg3, %c9_i32_48 : i32
    %c3_i32_49 = arith.constant 3 : i32
    %57 = arith.addi %56, %c3_i32_49 : i32
    %c2_i32_50 = arith.constant 2 : i32
    %58 = arith.addi %57, %c2_i32_50 : i32
    %59 = arith.index_cast %58 : i32 to index
    %c0_51 = arith.constant 0 : index
    %c0_52 = arith.constant 0 : index
    %60 = vector.load %arg5[%59, %c0_51, %c0_52] : memref<27x4x128xbf16, #tpu.memory_space<vmem>>, vector<1x4x128xbf16>
    %61 = vector.shape_cast %60 : vector<1x4x128xbf16> to vector<4x128xbf16>
    %cst_53 = arith.constant dense<0.000000e+00> : vector<72x128xf32>
    %62 = tpu.matmul %55, %61, %cst_53 {dimension_numbers = #tpu.dot_dimension_numbers<[1], [0], [0], [1], [0, 0, 1, 1], [], []>} : vector<72x4xbf16>, vector<4x128xbf16>, vector<72x128xf32> -> vector<72x128xf32>
    %63 = arith.addf %53, %62 : vector<72x128xf32>
    %c0_54 = arith.constant 0 : index
    %c0_55 = arith.constant 0 : index
    %c9 = arith.constant 9 : index
    %c0_56 = arith.constant 0 : index
    %64 = vector.load %arg4[%c0_54, %c0_55, %c9, %c0_56] : memref<1x4x90x4xbf16, #tpu.memory_space<vmem>>, vector<1x1x72x4xbf16>
    %65 = vector.shape_cast %64 : vector<1x1x72x4xbf16> to vector<72x4xbf16>
    %c9_i32_57 = arith.constant 9 : i32
    %66 = arith.muli %arg3, %c9_i32_57 : i32
    %c6_i32 = arith.constant 6 : i32
    %67 = arith.addi %66, %c6_i32 : i32
    %c0_i32_58 = arith.constant 0 : i32
    %68 = arith.addi %67, %c0_i32_58 : i32
    %69 = arith.index_cast %68 : i32 to index
    %c0_59 = arith.constant 0 : index
    %c0_60 = arith.constant 0 : index
    %70 = vector.load %arg5[%69, %c0_59, %c0_60] : memref<27x4x128xbf16, #tpu.memory_space<vmem>>, vector<1x4x128xbf16>
    %71 = vector.shape_cast %70 : vector<1x4x128xbf16> to vector<4x128xbf16>
    %cst_61 = arith.constant dense<0.000000e+00> : vector<72x128xf32>
    %72 = tpu.matmul %65, %71, %cst_61 {dimension_numbers = #tpu.dot_dimension_numbers<[1], [0], [0], [1], [0, 0, 1, 1], [], []>} : vector<72x4xbf16>, vector<4x128xbf16>, vector<72x128xf32> -> vector<72x128xf32>
    %73 = arith.addf %63, %72 : vector<72x128xf32>
    %c0_62 = arith.constant 0 : index
    %c1_63 = arith.constant 1 : index
    %c9_64 = arith.constant 9 : index
    %c0_65 = arith.constant 0 : index
    %74 = vector.load %arg4[%c0_62, %c1_63, %c9_64, %c0_65] : memref<1x4x90x4xbf16, #tpu.memory_space<vmem>>, vector<1x1x72x4xbf16>
    %75 = vector.shape_cast %74 : vector<1x1x72x4xbf16> to vector<72x4xbf16>
    %c9_i32_66 = arith.constant 9 : i32
    %76 = arith.muli %arg3, %c9_i32_66 : i32
    %c6_i32_67 = arith.constant 6 : i32
    %77 = arith.addi %76, %c6_i32_67 : i32
    %c1_i32_68 = arith.constant 1 : i32
    %78 = arith.addi %77, %c1_i32_68 : i32
    %79 = arith.index_cast %78 : i32 to index
    %c0_69 = arith.constant 0 : index
    %c0_70 = arith.constant 0 : index
    %80 = vector.load %arg5[%79, %c0_69, %c0_70] : memref<27x4x128xbf16, #tpu.memory_space<vmem>>, vector<1x4x128xbf16>
    %81 = vector.shape_cast %80 : vector<1x4x128xbf16> to vector<4x128xbf16>
    %cst_71 = arith.constant dense<0.000000e+00> : vector<72x128xf32>
    %82 = tpu.matmul %75, %81, %cst_71 {dimension_numbers = #tpu.dot_dimension_numbers<[1], [0], [0], [1], [0, 0, 1, 1], [], []>} : vector<72x4xbf16>, vector<4x128xbf16>, vector<72x128xf32> -> vector<72x128xf32>
    %83 = arith.addf %73, %82 : vector<72x128xf32>
    %c0_72 = arith.constant 0 : index
    %c0_73 = arith.constant 0 : index
    %c10 = arith.constant 10 : index
    %c0_74 = arith.constant 0 : index
    %84 = vector.load %arg4[%c0_72, %c0_73, %c10, %c0_74] : memref<1x4x90x4xbf16, #tpu.memory_space<vmem>>, vector<1x1x72x4xbf16>
    %85 = vector.shape_cast %84 : vector<1x1x72x4xbf16> to vector<72x4xbf16>
    %c9_i32_75 = arith.constant 9 : i32
    %86 = arith.muli %arg3, %c9_i32_75 : i32
    %c6_i32_76 = arith.constant 6 : i32
    %87 = arith.addi %86, %c6_i32_76 : i32
    %c2_i32_77 = arith.constant 2 : i32
    %88 = arith.addi %87, %c2_i32_77 : i32
    %89 = arith.index_cast %88 : i32 to index
    %c0_78 = arith.constant 0 : index
    %c0_79 = arith.constant 0 : index
    %90 = vector.load %arg5[%89, %c0_78, %c0_79] : memref<27x4x128xbf16, #tpu.memory_space<vmem>>, vector<1x4x128xbf16>
    %91 = vector.shape_cast %90 : vector<1x4x128xbf16> to vector<4x128xbf16>
    %cst_80 = arith.constant dense<0.000000e+00> : vector<72x128xf32>
    %92 = tpu.matmul %85, %91, %cst_80 {dimension_numbers = #tpu.dot_dimension_numbers<[1], [0], [0], [1], [0, 0, 1, 1], [], []>} : vector<72x4xbf16>, vector<4x128xbf16>, vector<72x128xf32> -> vector<72x128xf32>
    %93 = arith.addf %83, %92 : vector<72x128xf32>
    %c0_81 = arith.constant 0 : index
    %c0_82 = arith.constant 0 : index
    %94 = vector.load %arg8[%c0_81, %c0_82] : memref<72x128xf32, #tpu.memory_space<vmem>>, vector<72x128xf32>
    tpu.vector_store %arg8[%c0_81, %c0_82], %93 {strides = array<i32>} : memref<72x128xf32, #tpu.memory_space<vmem>>, vector<72x128xf32>,
    %c2_i32_83 = arith.constant 2 : i32
    %95 = arith.cmpi eq, %arg3, %c2_i32_83 : i32
    %96 = arith.extui %95 : i1 to i32
    %c0_i32_84 = arith.constant 0 : i32
    %97 = arith.cmpi ne, %96, %c0_i32_84 : i32
    scf.if %97 {
      %c0_85 = arith.constant 0 : index
      %c0_86 = arith.constant 0 : index
      %98 = vector.load %arg8[%c0_85, %c0_86] : memref<72x128xf32, #tpu.memory_space<vmem>>, vector<72x128xf32>
      %c0_87 = arith.constant 0 : index
      %c0_88 = arith.constant 0 : index
      %99 = vector.load %arg6[%c0_87, %c0_88] : memref<1x128xf32, #tpu.memory_space<vmem>>, vector<1x128xf32>
      %100 = vector.broadcast %99 : vector<1x128xf32> to vector<72x128xf32>
      %101 = arith.addf %98, %100 : vector<72x128xf32>
      %cst_89 = arith.constant 0.000000e+00 : f32
      %102 = vector.broadcast %cst_89 : f32 to vector<72x128xf32>
      %103 = arith.maximumf %101, %102 : vector<72x128xf32>
      %104 = arith.truncf %103 : vector<72x128xf32> to vector<72x128xbf16>
      %c0_90 = arith.constant 0 : index
      %c0_91 = arith.constant 0 : index
      %c0_92 = arith.constant 0 : index
      %105 = vector.load %arg7[%c0_90, %c0_91, %c0_92] : memref<1x72x128xbf16, #tpu.memory_space<vmem>>, vector<1x72x128xbf16>
      %106 = vector.shape_cast %105 : vector<1x72x128xbf16> to vector<72x128xbf16>
      %107 = vector.shape_cast %104 : vector<72x128xbf16> to vector<1x72x128xbf16>
      tpu.vector_store %arg7[%c0_90, %c0_91, %c0_92], %107 {strides = array<i32>} : memref<1x72x128xbf16, #tpu.memory_space<vmem>>, vector<1x72x128xbf16>,
    } else {
    }
    return
  }
  func.func @transform_0(%arg0: i32, %arg1: i32, %arg2: i32, %arg3: i32) -> (i32, i32, i32, i32) {
    %c18_i32 = arith.constant 18 : i32
    %0 = arith.muli %arg0, %c18_i32 : i32
    %c2_i32 = arith.constant 2 : i32
    %1 = arith.muli %c2_i32, %arg2 : i32
    %2 = arith.addi %0, %1 : i32
    %3 = arith.addi %2, %arg3 : i32
    %c0_i32 = arith.constant 0 : i32
    %c0_i32_0 = arith.constant 0 : i32
    %c0_i32_1 = arith.constant 0 : i32
    %c0_i32_2 = arith.constant 0 : i32
    return %3, %c0_i32, %c0_i32_0, %c0_i32_1 : i32, i32, i32, i32
  }
  func.func @transform_1(%arg0: i32, %arg1: i32, %arg2: i32, %arg3: i32) -> (i32, i32, i32) {
    %c0_i32 = arith.constant 0 : i32
    %c0_i32_0 = arith.constant 0 : i32
    %c0_i32_1 = arith.constant 0 : i32
    return %c0_i32, %c0_i32_0, %arg1 : i32, i32, i32
  }
  func.func @transform_2(%arg0: i32, %arg1: i32, %arg2: i32, %arg3: i32) -> (i32, i32) {
    %c0_i32 = arith.constant 0 : i32
    %c0_i32_0 = arith.constant 0 : i32
    return %c0_i32, %arg1 : i32, i32
  }
  func.func @transform_3(%arg0: i32, %arg1: i32, %arg2: i32, %arg3: i32) -> (i32, i32, i32) {
    %c8_i32 = arith.constant 8 : i32
    %0 = arith.muli %arg0, %c8_i32 : i32
    %1 = arith.addi %0, %arg2 : i32
    %c0_i32 = arith.constant 0 : i32
    %c0_i32_0 = arith.constant 0 : i32
    return %1, %c0_i32, %arg1 : i32, i32, i32
  }
}

module attributes {stable_mosaic.version = 11 : i64} {
  func.func @_conv3_kernel(%arg0: i32, %arg1: i32, %arg2: i32, %arg3: i32, %arg4: memref<1x4x30x16xbf16, #tpu.memory_space<vmem>>, %arg5: memref<27x16x128xbf16, #tpu.memory_space<vmem>>, %arg6: memref<1x128xf32, #tpu.memory_space<vmem>>, %arg7: memref<1x20x128xbf16, #tpu.memory_space<vmem>>, %arg8: memref<20x128xf32, #tpu.memory_space<vmem>>) attributes {dimension_semantics = [#tpu.dimension_semantics<parallel>, #tpu.dimension_semantics<parallel>, #tpu.dimension_semantics<parallel>, #tpu.dimension_semantics<arbitrary>], iteration_bounds = array<i64: 2, 1, 4, 3>, scalar_prefetch = 0 : i64, scratch_operands = 1 : i64, tpu.core_type = #tpu.core_type<tc>, window_params = [{transform_indices = @transform_0, window_bounds = array<i64: 1, 4, 30, 16>}, {transform_indices = @transform_1, window_bounds = array<i64: 27, 16, 128>}, {transform_indices = @transform_2, window_bounds = array<i64: 1, 128>}, {transform_indices = @transform_3, window_bounds = array<i64: 1, 20, 128>}]} {
    %c0_i32 = arith.constant 0 : i32
    %0 = arith.cmpi eq, %arg3, %c0_i32 : i32
    %1 = arith.extui %0 : i1 to i32
    %c0_i32_0 = arith.constant 0 : i32
    %2 = arith.cmpi ne, %1, %c0_i32_0 : i32
    scf.if %2 {
      %cst_85 = arith.constant 0.000000e+00 : f32
      %98 = vector.broadcast %cst_85 : f32 to vector<20x128xf32>
      %c0_86 = arith.constant 0 : index
      %c0_87 = arith.constant 0 : index
      %99 = vector.load %arg8[%c0_86, %c0_87] : memref<20x128xf32, #tpu.memory_space<vmem>>, vector<20x128xf32>
      tpu.vector_store %arg8[%c0_86, %c0_87], %98 {strides = array<i32>} : memref<20x128xf32, #tpu.memory_space<vmem>>, vector<20x128xf32>,
    } else {
    }
    %c0 = arith.constant 0 : index
    %c0_1 = arith.constant 0 : index
    %3 = vector.load %arg8[%c0, %c0_1] : memref<20x128xf32, #tpu.memory_space<vmem>>, vector<20x128xf32>
    %c0_2 = arith.constant 0 : index
    %c0_3 = arith.constant 0 : index
    %c0_4 = arith.constant 0 : index
    %c0_5 = arith.constant 0 : index
    %4 = vector.load %arg4[%c0_2, %c0_3, %c0_4, %c0_5] : memref<1x4x30x16xbf16, #tpu.memory_space<vmem>>, vector<1x1x20x16xbf16>
    %5 = vector.shape_cast %4 : vector<1x1x20x16xbf16> to vector<20x16xbf16>
    %c9_i32 = arith.constant 9 : i32
    %6 = arith.muli %arg3, %c9_i32 : i32
    %c0_i32_6 = arith.constant 0 : i32
    %7 = arith.addi %6, %c0_i32_6 : i32
    %c0_i32_7 = arith.constant 0 : i32
    %8 = arith.addi %7, %c0_i32_7 : i32
    %9 = arith.index_cast %8 : i32 to index
    %c0_8 = arith.constant 0 : index
    %c0_9 = arith.constant 0 : index
    %10 = vector.load %arg5[%9, %c0_8, %c0_9] : memref<27x16x128xbf16, #tpu.memory_space<vmem>>, vector<1x16x128xbf16>
    %11 = vector.shape_cast %10 : vector<1x16x128xbf16> to vector<16x128xbf16>
    %cst = arith.constant dense<0.000000e+00> : vector<20x128xf32>
    %12 = tpu.matmul %5, %11, %cst {dimension_numbers = #tpu.dot_dimension_numbers<[1], [0], [0], [1], [0, 0, 1, 1], [], []>} : vector<20x16xbf16>, vector<16x128xbf16>, vector<20x128xf32> -> vector<20x128xf32>
    %13 = arith.addf %3, %12 : vector<20x128xf32>
    %c0_10 = arith.constant 0 : index
    %c1 = arith.constant 1 : index
    %c0_11 = arith.constant 0 : index
    %c0_12 = arith.constant 0 : index
    %14 = vector.load %arg4[%c0_10, %c1, %c0_11, %c0_12] : memref<1x4x30x16xbf16, #tpu.memory_space<vmem>>, vector<1x1x20x16xbf16>
    %15 = vector.shape_cast %14 : vector<1x1x20x16xbf16> to vector<20x16xbf16>
    %c9_i32_13 = arith.constant 9 : i32
    %16 = arith.muli %arg3, %c9_i32_13 : i32
    %c0_i32_14 = arith.constant 0 : i32
    %17 = arith.addi %16, %c0_i32_14 : i32
    %c1_i32 = arith.constant 1 : i32
    %18 = arith.addi %17, %c1_i32 : i32
    %19 = arith.index_cast %18 : i32 to index
    %c0_15 = arith.constant 0 : index
    %c0_16 = arith.constant 0 : index
    %20 = vector.load %arg5[%19, %c0_15, %c0_16] : memref<27x16x128xbf16, #tpu.memory_space<vmem>>, vector<1x16x128xbf16>
    %21 = vector.shape_cast %20 : vector<1x16x128xbf16> to vector<16x128xbf16>
    %cst_17 = arith.constant dense<0.000000e+00> : vector<20x128xf32>
    %22 = tpu.matmul %15, %21, %cst_17 {dimension_numbers = #tpu.dot_dimension_numbers<[1], [0], [0], [1], [0, 0, 1, 1], [], []>} : vector<20x16xbf16>, vector<16x128xbf16>, vector<20x128xf32> -> vector<20x128xf32>
    %23 = arith.addf %13, %22 : vector<20x128xf32>
    %c0_18 = arith.constant 0 : index
    %c0_19 = arith.constant 0 : index
    %c1_20 = arith.constant 1 : index
    %c0_21 = arith.constant 0 : index
    %24 = vector.load %arg4[%c0_18, %c0_19, %c1_20, %c0_21] : memref<1x4x30x16xbf16, #tpu.memory_space<vmem>>, vector<1x1x20x16xbf16>
    %25 = vector.shape_cast %24 : vector<1x1x20x16xbf16> to vector<20x16xbf16>
    %c9_i32_22 = arith.constant 9 : i32
    %26 = arith.muli %arg3, %c9_i32_22 : i32
    %c0_i32_23 = arith.constant 0 : i32
    %27 = arith.addi %26, %c0_i32_23 : i32
    %c2_i32 = arith.constant 2 : i32
    %28 = arith.addi %27, %c2_i32 : i32
    %29 = arith.index_cast %28 : i32 to index
    %c0_24 = arith.constant 0 : index
    %c0_25 = arith.constant 0 : index
    %30 = vector.load %arg5[%29, %c0_24, %c0_25] : memref<27x16x128xbf16, #tpu.memory_space<vmem>>, vector<1x16x128xbf16>
    %31 = vector.shape_cast %30 : vector<1x16x128xbf16> to vector<16x128xbf16>
    %cst_26 = arith.constant dense<0.000000e+00> : vector<20x128xf32>
    %32 = tpu.matmul %25, %31, %cst_26 {dimension_numbers = #tpu.dot_dimension_numbers<[1], [0], [0], [1], [0, 0, 1, 1], [], []>} : vector<20x16xbf16>, vector<16x128xbf16>, vector<20x128xf32> -> vector<20x128xf32>
    %33 = arith.addf %23, %32 : vector<20x128xf32>
    %c0_27 = arith.constant 0 : index
    %c2 = arith.constant 2 : index
    %c0_28 = arith.constant 0 : index
    %c0_29 = arith.constant 0 : index
    %34 = vector.load %arg4[%c0_27, %c2, %c0_28, %c0_29] : memref<1x4x30x16xbf16, #tpu.memory_space<vmem>>, vector<1x1x20x16xbf16>
    %35 = vector.shape_cast %34 : vector<1x1x20x16xbf16> to vector<20x16xbf16>
    %c9_i32_30 = arith.constant 9 : i32
    %36 = arith.muli %arg3, %c9_i32_30 : i32
    %c3_i32 = arith.constant 3 : i32
    %37 = arith.addi %36, %c3_i32 : i32
    %c0_i32_31 = arith.constant 0 : i32
    %38 = arith.addi %37, %c0_i32_31 : i32
    %39 = arith.index_cast %38 : i32 to index
    %c0_32 = arith.constant 0 : index
    %c0_33 = arith.constant 0 : index
    %40 = vector.load %arg5[%39, %c0_32, %c0_33] : memref<27x16x128xbf16, #tpu.memory_space<vmem>>, vector<1x16x128xbf16>
    %41 = vector.shape_cast %40 : vector<1x16x128xbf16> to vector<16x128xbf16>
    %cst_34 = arith.constant dense<0.000000e+00> : vector<20x128xf32>
    %42 = tpu.matmul %35, %41, %cst_34 {dimension_numbers = #tpu.dot_dimension_numbers<[1], [0], [0], [1], [0, 0, 1, 1], [], []>} : vector<20x16xbf16>, vector<16x128xbf16>, vector<20x128xf32> -> vector<20x128xf32>
    %43 = arith.addf %33, %42 : vector<20x128xf32>
    %c0_35 = arith.constant 0 : index
    %c3 = arith.constant 3 : index
    %c0_36 = arith.constant 0 : index
    %c0_37 = arith.constant 0 : index
    %44 = vector.load %arg4[%c0_35, %c3, %c0_36, %c0_37] : memref<1x4x30x16xbf16, #tpu.memory_space<vmem>>, vector<1x1x20x16xbf16>
    %45 = vector.shape_cast %44 : vector<1x1x20x16xbf16> to vector<20x16xbf16>
    %c9_i32_38 = arith.constant 9 : i32
    %46 = arith.muli %arg3, %c9_i32_38 : i32
    %c3_i32_39 = arith.constant 3 : i32
    %47 = arith.addi %46, %c3_i32_39 : i32
    %c1_i32_40 = arith.constant 1 : i32
    %48 = arith.addi %47, %c1_i32_40 : i32
    %49 = arith.index_cast %48 : i32 to index
    %c0_41 = arith.constant 0 : index
    %c0_42 = arith.constant 0 : index
    %50 = vector.load %arg5[%49, %c0_41, %c0_42] : memref<27x16x128xbf16, #tpu.memory_space<vmem>>, vector<1x16x128xbf16>
    %51 = vector.shape_cast %50 : vector<1x16x128xbf16> to vector<16x128xbf16>
    %cst_43 = arith.constant dense<0.000000e+00> : vector<20x128xf32>
    %52 = tpu.matmul %45, %51, %cst_43 {dimension_numbers = #tpu.dot_dimension_numbers<[1], [0], [0], [1], [0, 0, 1, 1], [], []>} : vector<20x16xbf16>, vector<16x128xbf16>, vector<20x128xf32> -> vector<20x128xf32>
    %53 = arith.addf %43, %52 : vector<20x128xf32>
    %c0_44 = arith.constant 0 : index
    %c2_45 = arith.constant 2 : index
    %c1_46 = arith.constant 1 : index
    %c0_47 = arith.constant 0 : index
    %54 = vector.load %arg4[%c0_44, %c2_45, %c1_46, %c0_47] : memref<1x4x30x16xbf16, #tpu.memory_space<vmem>>, vector<1x1x20x16xbf16>
    %55 = vector.shape_cast %54 : vector<1x1x20x16xbf16> to vector<20x16xbf16>
    %c9_i32_48 = arith.constant 9 : i32
    %56 = arith.muli %arg3, %c9_i32_48 : i32
    %c3_i32_49 = arith.constant 3 : i32
    %57 = arith.addi %56, %c3_i32_49 : i32
    %c2_i32_50 = arith.constant 2 : i32
    %58 = arith.addi %57, %c2_i32_50 : i32
    %59 = arith.index_cast %58 : i32 to index
    %c0_51 = arith.constant 0 : index
    %c0_52 = arith.constant 0 : index
    %60 = vector.load %arg5[%59, %c0_51, %c0_52] : memref<27x16x128xbf16, #tpu.memory_space<vmem>>, vector<1x16x128xbf16>
    %61 = vector.shape_cast %60 : vector<1x16x128xbf16> to vector<16x128xbf16>
    %cst_53 = arith.constant dense<0.000000e+00> : vector<20x128xf32>
    %62 = tpu.matmul %55, %61, %cst_53 {dimension_numbers = #tpu.dot_dimension_numbers<[1], [0], [0], [1], [0, 0, 1, 1], [], []>} : vector<20x16xbf16>, vector<16x128xbf16>, vector<20x128xf32> -> vector<20x128xf32>
    %63 = arith.addf %53, %62 : vector<20x128xf32>
    %c0_54 = arith.constant 0 : index
    %c0_55 = arith.constant 0 : index
    %c5 = arith.constant 5 : index
    %c0_56 = arith.constant 0 : index
    %64 = vector.load %arg4[%c0_54, %c0_55, %c5, %c0_56] : memref<1x4x30x16xbf16, #tpu.memory_space<vmem>>, vector<1x1x20x16xbf16>
    %65 = vector.shape_cast %64 : vector<1x1x20x16xbf16> to vector<20x16xbf16>
    %c9_i32_57 = arith.constant 9 : i32
    %66 = arith.muli %arg3, %c9_i32_57 : i32
    %c6_i32 = arith.constant 6 : i32
    %67 = arith.addi %66, %c6_i32 : i32
    %c0_i32_58 = arith.constant 0 : i32
    %68 = arith.addi %67, %c0_i32_58 : i32
    %69 = arith.index_cast %68 : i32 to index
    %c0_59 = arith.constant 0 : index
    %c0_60 = arith.constant 0 : index
    %70 = vector.load %arg5[%69, %c0_59, %c0_60] : memref<27x16x128xbf16, #tpu.memory_space<vmem>>, vector<1x16x128xbf16>
    %71 = vector.shape_cast %70 : vector<1x16x128xbf16> to vector<16x128xbf16>
    %cst_61 = arith.constant dense<0.000000e+00> : vector<20x128xf32>
    %72 = tpu.matmul %65, %71, %cst_61 {dimension_numbers = #tpu.dot_dimension_numbers<[1], [0], [0], [1], [0, 0, 1, 1], [], []>} : vector<20x16xbf16>, vector<16x128xbf16>, vector<20x128xf32> -> vector<20x128xf32>
    %73 = arith.addf %63, %72 : vector<20x128xf32>
    %c0_62 = arith.constant 0 : index
    %c1_63 = arith.constant 1 : index
    %c5_64 = arith.constant 5 : index
    %c0_65 = arith.constant 0 : index
    %74 = vector.load %arg4[%c0_62, %c1_63, %c5_64, %c0_65] : memref<1x4x30x16xbf16, #tpu.memory_space<vmem>>, vector<1x1x20x16xbf16>
    %75 = vector.shape_cast %74 : vector<1x1x20x16xbf16> to vector<20x16xbf16>
    %c9_i32_66 = arith.constant 9 : i32
    %76 = arith.muli %arg3, %c9_i32_66 : i32
    %c6_i32_67 = arith.constant 6 : i32
    %77 = arith.addi %76, %c6_i32_67 : i32
    %c1_i32_68 = arith.constant 1 : i32
    %78 = arith.addi %77, %c1_i32_68 : i32
    %79 = arith.index_cast %78 : i32 to index
    %c0_69 = arith.constant 0 : index
    %c0_70 = arith.constant 0 : index
    %80 = vector.load %arg5[%79, %c0_69, %c0_70] : memref<27x16x128xbf16, #tpu.memory_space<vmem>>, vector<1x16x128xbf16>
    %81 = vector.shape_cast %80 : vector<1x16x128xbf16> to vector<16x128xbf16>
    %cst_71 = arith.constant dense<0.000000e+00> : vector<20x128xf32>
    %82 = tpu.matmul %75, %81, %cst_71 {dimension_numbers = #tpu.dot_dimension_numbers<[1], [0], [0], [1], [0, 0, 1, 1], [], []>} : vector<20x16xbf16>, vector<16x128xbf16>, vector<20x128xf32> -> vector<20x128xf32>
    %83 = arith.addf %73, %82 : vector<20x128xf32>
    %c0_72 = arith.constant 0 : index
    %c0_73 = arith.constant 0 : index
    %c6 = arith.constant 6 : index
    %c0_74 = arith.constant 0 : index
    %84 = vector.load %arg4[%c0_72, %c0_73, %c6, %c0_74] : memref<1x4x30x16xbf16, #tpu.memory_space<vmem>>, vector<1x1x20x16xbf16>
    %85 = vector.shape_cast %84 : vector<1x1x20x16xbf16> to vector<20x16xbf16>
    %c9_i32_75 = arith.constant 9 : i32
    %86 = arith.muli %arg3, %c9_i32_75 : i32
    %c6_i32_76 = arith.constant 6 : i32
    %87 = arith.addi %86, %c6_i32_76 : i32
    %c2_i32_77 = arith.constant 2 : i32
    %88 = arith.addi %87, %c2_i32_77 : i32
    %89 = arith.index_cast %88 : i32 to index
    %c0_78 = arith.constant 0 : index
    %c0_79 = arith.constant 0 : index
    %90 = vector.load %arg5[%89, %c0_78, %c0_79] : memref<27x16x128xbf16, #tpu.memory_space<vmem>>, vector<1x16x128xbf16>
    %91 = vector.shape_cast %90 : vector<1x16x128xbf16> to vector<16x128xbf16>
    %cst_80 = arith.constant dense<0.000000e+00> : vector<20x128xf32>
    %92 = tpu.matmul %85, %91, %cst_80 {dimension_numbers = #tpu.dot_dimension_numbers<[1], [0], [0], [1], [0, 0, 1, 1], [], []>} : vector<20x16xbf16>, vector<16x128xbf16>, vector<20x128xf32> -> vector<20x128xf32>
    %93 = arith.addf %83, %92 : vector<20x128xf32>
    %c0_81 = arith.constant 0 : index
    %c0_82 = arith.constant 0 : index
    %94 = vector.load %arg8[%c0_81, %c0_82] : memref<20x128xf32, #tpu.memory_space<vmem>>, vector<20x128xf32>
    tpu.vector_store %arg8[%c0_81, %c0_82], %93 {strides = array<i32>} : memref<20x128xf32, #tpu.memory_space<vmem>>, vector<20x128xf32>,
    %c2_i32_83 = arith.constant 2 : i32
    %95 = arith.cmpi eq, %arg3, %c2_i32_83 : i32
    %96 = arith.extui %95 : i1 to i32
    %c0_i32_84 = arith.constant 0 : i32
    %97 = arith.cmpi ne, %96, %c0_i32_84 : i32
    scf.if %97 {
      %c0_85 = arith.constant 0 : index
      %c0_86 = arith.constant 0 : index
      %98 = vector.load %arg8[%c0_85, %c0_86] : memref<20x128xf32, #tpu.memory_space<vmem>>, vector<20x128xf32>
      %c0_87 = arith.constant 0 : index
      %c0_88 = arith.constant 0 : index
      %99 = vector.load %arg6[%c0_87, %c0_88] : memref<1x128xf32, #tpu.memory_space<vmem>>, vector<1x128xf32>
      %100 = vector.broadcast %99 : vector<1x128xf32> to vector<20x128xf32>
      %101 = arith.addf %98, %100 : vector<20x128xf32>
      %cst_89 = arith.constant 0.000000e+00 : f32
      %102 = vector.broadcast %cst_89 : f32 to vector<20x128xf32>
      %103 = arith.maximumf %101, %102 : vector<20x128xf32>
      %104 = arith.truncf %103 : vector<20x128xf32> to vector<20x128xbf16>
      %c0_90 = arith.constant 0 : index
      %c0_91 = arith.constant 0 : index
      %c0_92 = arith.constant 0 : index
      %105 = vector.load %arg7[%c0_90, %c0_91, %c0_92] : memref<1x20x128xbf16, #tpu.memory_space<vmem>>, vector<1x20x128xbf16>
      %106 = vector.shape_cast %105 : vector<1x20x128xbf16> to vector<20x128xbf16>
      %107 = vector.shape_cast %104 : vector<20x128xbf16> to vector<1x20x128xbf16>
      tpu.vector_store %arg7[%c0_90, %c0_91, %c0_92], %107 {strides = array<i32>} : memref<1x20x128xbf16, #tpu.memory_space<vmem>>, vector<1x20x128xbf16>,
    } else {
    }
    return
  }
  func.func @transform_0(%arg0: i32, %arg1: i32, %arg2: i32, %arg3: i32) -> (i32, i32, i32, i32) {
    %c10_i32 = arith.constant 10 : i32
    %0 = arith.muli %arg0, %c10_i32 : i32
    %c2_i32 = arith.constant 2 : i32
    %1 = arith.muli %c2_i32, %arg2 : i32
    %2 = arith.addi %0, %1 : i32
    %3 = arith.addi %2, %arg3 : i32
    %c0_i32 = arith.constant 0 : i32
    %c0_i32_0 = arith.constant 0 : i32
    %c0_i32_1 = arith.constant 0 : i32
    %c0_i32_2 = arith.constant 0 : i32
    return %3, %c0_i32, %c0_i32_0, %c0_i32_1 : i32, i32, i32, i32
  }
  func.func @transform_1(%arg0: i32, %arg1: i32, %arg2: i32, %arg3: i32) -> (i32, i32, i32) {
    %c0_i32 = arith.constant 0 : i32
    %c0_i32_0 = arith.constant 0 : i32
    %c0_i32_1 = arith.constant 0 : i32
    return %c0_i32, %c0_i32_0, %arg1 : i32, i32, i32
  }
  func.func @transform_2(%arg0: i32, %arg1: i32, %arg2: i32, %arg3: i32) -> (i32, i32) {
    %c0_i32 = arith.constant 0 : i32
    %c0_i32_0 = arith.constant 0 : i32
    return %c0_i32, %arg1 : i32, i32
  }
  func.func @transform_3(%arg0: i32, %arg1: i32, %arg2: i32, %arg3: i32) -> (i32, i32, i32) {
    %c4_i32 = arith.constant 4 : i32
    %0 = arith.muli %arg0, %c4_i32 : i32
    %1 = arith.addi %0, %arg2 : i32
    %c0_i32 = arith.constant 0 : i32
    %c0_i32_0 = arith.constant 0 : i32
    return %1, %c0_i32, %arg1 : i32, i32, i32
  }
}

module attributes {stable_mosaic.version = 11 : i64} {
  func.func @_conv3_kernel(%arg0: i32, %arg1: i32, %arg2: i32, %arg3: i32, %arg4: memref<1x1x42x16xbf16, #tpu.memory_space<vmem>>, %arg5: memref<27x16x128xbf16, #tpu.memory_space<vmem>>, %arg6: memref<1x128xf32, #tpu.memory_space<vmem>>, %arg7: memref<1x24x128xbf16, #tpu.memory_space<vmem>>, %arg8: memref<24x128xf32, #tpu.memory_space<vmem>>) attributes {dimension_semantics = [#tpu.dimension_semantics<parallel>, #tpu.dimension_semantics<parallel>, #tpu.dimension_semantics<parallel>, #tpu.dimension_semantics<arbitrary>], iteration_bounds = array<i64: 2, 1, 4, 3>, scalar_prefetch = 0 : i64, scratch_operands = 1 : i64, tpu.core_type = #tpu.core_type<tc>, window_params = [{transform_indices = @transform_0, window_bounds = array<i64: 1, 1, 42, 16>}, {transform_indices = @transform_1, window_bounds = array<i64: 27, 16, 128>}, {transform_indices = @transform_2, window_bounds = array<i64: 1, 128>}, {transform_indices = @transform_3, window_bounds = array<i64: 1, 24, 128>}]} {
    %c0_i32 = arith.constant 0 : i32
    %0 = arith.cmpi eq, %arg3, %c0_i32 : i32
    %1 = arith.extui %0 : i1 to i32
    %c0_i32_0 = arith.constant 0 : i32
    %2 = arith.cmpi ne, %1, %c0_i32_0 : i32
    scf.if %2 {
      %cst_82 = arith.constant 0.000000e+00 : f32
      %98 = vector.broadcast %cst_82 : f32 to vector<24x128xf32>
      %c0_83 = arith.constant 0 : index
      %c0_84 = arith.constant 0 : index
      %99 = vector.load %arg8[%c0_83, %c0_84] : memref<24x128xf32, #tpu.memory_space<vmem>>, vector<24x128xf32>
      tpu.vector_store %arg8[%c0_83, %c0_84], %98 {strides = array<i32>} : memref<24x128xf32, #tpu.memory_space<vmem>>, vector<24x128xf32>,
    } else {
    }
    %c0 = arith.constant 0 : index
    %c0_1 = arith.constant 0 : index
    %3 = vector.load %arg8[%c0, %c0_1] : memref<24x128xf32, #tpu.memory_space<vmem>>, vector<24x128xf32>
    %c0_2 = arith.constant 0 : index
    %c0_3 = arith.constant 0 : index
    %c0_4 = arith.constant 0 : index
    %c0_5 = arith.constant 0 : index
    %4 = vector.load %arg4[%c0_2, %c0_3, %c0_4, %c0_5] : memref<1x1x42x16xbf16, #tpu.memory_space<vmem>>, vector<1x1x24x16xbf16>
    %5 = vector.shape_cast %4 : vector<1x1x24x16xbf16> to vector<24x16xbf16>
    %c9_i32 = arith.constant 9 : i32
    %6 = arith.muli %arg3, %c9_i32 : i32
    %c0_i32_6 = arith.constant 0 : i32
    %7 = arith.addi %6, %c0_i32_6 : i32
    %c0_i32_7 = arith.constant 0 : i32
    %8 = arith.addi %7, %c0_i32_7 : i32
    %9 = arith.index_cast %8 : i32 to index
    %c0_8 = arith.constant 0 : index
    %c0_9 = arith.constant 0 : index
    %10 = vector.load %arg5[%9, %c0_8, %c0_9] : memref<27x16x128xbf16, #tpu.memory_space<vmem>>, vector<1x16x128xbf16>
    %11 = vector.shape_cast %10 : vector<1x16x128xbf16> to vector<16x128xbf16>
    %cst = arith.constant dense<0.000000e+00> : vector<24x128xf32>
    %12 = tpu.matmul %5, %11, %cst {dimension_numbers = #tpu.dot_dimension_numbers<[1], [0], [0], [1], [0, 0, 1, 1], [], []>} : vector<24x16xbf16>, vector<16x128xbf16>, vector<24x128xf32> -> vector<24x128xf32>
    %13 = arith.addf %3, %12 : vector<24x128xf32>
    %c0_10 = arith.constant 0 : index
    %c0_11 = arith.constant 0 : index
    %c1 = arith.constant 1 : index
    %c0_12 = arith.constant 0 : index
    %14 = vector.load %arg4[%c0_10, %c0_11, %c1, %c0_12] : memref<1x1x42x16xbf16, #tpu.memory_space<vmem>>, vector<1x1x24x16xbf16>
    %15 = vector.shape_cast %14 : vector<1x1x24x16xbf16> to vector<24x16xbf16>
    %c9_i32_13 = arith.constant 9 : i32
    %16 = arith.muli %arg3, %c9_i32_13 : i32
    %c0_i32_14 = arith.constant 0 : i32
    %17 = arith.addi %16, %c0_i32_14 : i32
    %c1_i32 = arith.constant 1 : i32
    %18 = arith.addi %17, %c1_i32 : i32
    %19 = arith.index_cast %18 : i32 to index
    %c0_15 = arith.constant 0 : index
    %c0_16 = arith.constant 0 : index
    %20 = vector.load %arg5[%19, %c0_15, %c0_16] : memref<27x16x128xbf16, #tpu.memory_space<vmem>>, vector<1x16x128xbf16>
    %21 = vector.shape_cast %20 : vector<1x16x128xbf16> to vector<16x128xbf16>
    %cst_17 = arith.constant dense<0.000000e+00> : vector<24x128xf32>
    %22 = tpu.matmul %15, %21, %cst_17 {dimension_numbers = #tpu.dot_dimension_numbers<[1], [0], [0], [1], [0, 0, 1, 1], [], []>} : vector<24x16xbf16>, vector<16x128xbf16>, vector<24x128xf32> -> vector<24x128xf32>
    %23 = arith.addf %13, %22 : vector<24x128xf32>
    %c0_18 = arith.constant 0 : index
    %c0_19 = arith.constant 0 : index
    %c2 = arith.constant 2 : index
    %c0_20 = arith.constant 0 : index
    %24 = vector.load %arg4[%c0_18, %c0_19, %c2, %c0_20] : memref<1x1x42x16xbf16, #tpu.memory_space<vmem>>, vector<1x1x24x16xbf16>
    %25 = vector.shape_cast %24 : vector<1x1x24x16xbf16> to vector<24x16xbf16>
    %c9_i32_21 = arith.constant 9 : i32
    %26 = arith.muli %arg3, %c9_i32_21 : i32
    %c0_i32_22 = arith.constant 0 : i32
    %27 = arith.addi %26, %c0_i32_22 : i32
    %c2_i32 = arith.constant 2 : i32
    %28 = arith.addi %27, %c2_i32 : i32
    %29 = arith.index_cast %28 : i32 to index
    %c0_23 = arith.constant 0 : index
    %c0_24 = arith.constant 0 : index
    %30 = vector.load %arg5[%29, %c0_23, %c0_24] : memref<27x16x128xbf16, #tpu.memory_space<vmem>>, vector<1x16x128xbf16>
    %31 = vector.shape_cast %30 : vector<1x16x128xbf16> to vector<16x128xbf16>
    %cst_25 = arith.constant dense<0.000000e+00> : vector<24x128xf32>
    %32 = tpu.matmul %25, %31, %cst_25 {dimension_numbers = #tpu.dot_dimension_numbers<[1], [0], [0], [1], [0, 0, 1, 1], [], []>} : vector<24x16xbf16>, vector<16x128xbf16>, vector<24x128xf32> -> vector<24x128xf32>
    %33 = arith.addf %23, %32 : vector<24x128xf32>
    %c0_26 = arith.constant 0 : index
    %c0_27 = arith.constant 0 : index
    %c6 = arith.constant 6 : index
    %c0_28 = arith.constant 0 : index
    %34 = vector.load %arg4[%c0_26, %c0_27, %c6, %c0_28] : memref<1x1x42x16xbf16, #tpu.memory_space<vmem>>, vector<1x1x24x16xbf16>
    %35 = vector.shape_cast %34 : vector<1x1x24x16xbf16> to vector<24x16xbf16>
    %c9_i32_29 = arith.constant 9 : i32
    %36 = arith.muli %arg3, %c9_i32_29 : i32
    %c3_i32 = arith.constant 3 : i32
    %37 = arith.addi %36, %c3_i32 : i32
    %c0_i32_30 = arith.constant 0 : i32
    %38 = arith.addi %37, %c0_i32_30 : i32
    %39 = arith.index_cast %38 : i32 to index
    %c0_31 = arith.constant 0 : index
    %c0_32 = arith.constant 0 : index
    %40 = vector.load %arg5[%39, %c0_31, %c0_32] : memref<27x16x128xbf16, #tpu.memory_space<vmem>>, vector<1x16x128xbf16>
    %41 = vector.shape_cast %40 : vector<1x16x128xbf16> to vector<16x128xbf16>
    %cst_33 = arith.constant dense<0.000000e+00> : vector<24x128xf32>
    %42 = tpu.matmul %35, %41, %cst_33 {dimension_numbers = #tpu.dot_dimension_numbers<[1], [0], [0], [1], [0, 0, 1, 1], [], []>} : vector<24x16xbf16>, vector<16x128xbf16>, vector<24x128xf32> -> vector<24x128xf32>
    %43 = arith.addf %33, %42 : vector<24x128xf32>
    %c0_34 = arith.constant 0 : index
    %c0_35 = arith.constant 0 : index
    %c7 = arith.constant 7 : index
    %c0_36 = arith.constant 0 : index
    %44 = vector.load %arg4[%c0_34, %c0_35, %c7, %c0_36] : memref<1x1x42x16xbf16, #tpu.memory_space<vmem>>, vector<1x1x24x16xbf16>
    %45 = vector.shape_cast %44 : vector<1x1x24x16xbf16> to vector<24x16xbf16>
    %c9_i32_37 = arith.constant 9 : i32
    %46 = arith.muli %arg3, %c9_i32_37 : i32
    %c3_i32_38 = arith.constant 3 : i32
    %47 = arith.addi %46, %c3_i32_38 : i32
    %c1_i32_39 = arith.constant 1 : i32
    %48 = arith.addi %47, %c1_i32_39 : i32
    %49 = arith.index_cast %48 : i32 to index
    %c0_40 = arith.constant 0 : index
    %c0_41 = arith.constant 0 : index
    %50 = vector.load %arg5[%49, %c0_40, %c0_41] : memref<27x16x128xbf16, #tpu.memory_space<vmem>>, vector<1x16x128xbf16>
    %51 = vector.shape_cast %50 : vector<1x16x128xbf16> to vector<16x128xbf16>
    %cst_42 = arith.constant dense<0.000000e+00> : vector<24x128xf32>
    %52 = tpu.matmul %45, %51, %cst_42 {dimension_numbers = #tpu.dot_dimension_numbers<[1], [0], [0], [1], [0, 0, 1, 1], [], []>} : vector<24x16xbf16>, vector<16x128xbf16>, vector<24x128xf32> -> vector<24x128xf32>
    %53 = arith.addf %43, %52 : vector<24x128xf32>
    %c0_43 = arith.constant 0 : index
    %c0_44 = arith.constant 0 : index
    %c8 = arith.constant 8 : index
    %c0_45 = arith.constant 0 : index
    %54 = vector.load %arg4[%c0_43, %c0_44, %c8, %c0_45] : memref<1x1x42x16xbf16, #tpu.memory_space<vmem>>, vector<1x1x24x16xbf16>
    %55 = vector.shape_cast %54 : vector<1x1x24x16xbf16> to vector<24x16xbf16>
    %c9_i32_46 = arith.constant 9 : i32
    %56 = arith.muli %arg3, %c9_i32_46 : i32
    %c3_i32_47 = arith.constant 3 : i32
    %57 = arith.addi %56, %c3_i32_47 : i32
    %c2_i32_48 = arith.constant 2 : i32
    %58 = arith.addi %57, %c2_i32_48 : i32
    %59 = arith.index_cast %58 : i32 to index
    %c0_49 = arith.constant 0 : index
    %c0_50 = arith.constant 0 : index
    %60 = vector.load %arg5[%59, %c0_49, %c0_50] : memref<27x16x128xbf16, #tpu.memory_space<vmem>>, vector<1x16x128xbf16>
    %61 = vector.shape_cast %60 : vector<1x16x128xbf16> to vector<16x128xbf16>
    %cst_51 = arith.constant dense<0.000000e+00> : vector<24x128xf32>
    %62 = tpu.matmul %55, %61, %cst_51 {dimension_numbers = #tpu.dot_dimension_numbers<[1], [0], [0], [1], [0, 0, 1, 1], [], []>} : vector<24x16xbf16>, vector<16x128xbf16>, vector<24x128xf32> -> vector<24x128xf32>
    %63 = arith.addf %53, %62 : vector<24x128xf32>
    %c0_52 = arith.constant 0 : index
    %c0_53 = arith.constant 0 : index
    %c12 = arith.constant 12 : index
    %c0_54 = arith.constant 0 : index
    %64 = vector.load %arg4[%c0_52, %c0_53, %c12, %c0_54] : memref<1x1x42x16xbf16, #tpu.memory_space<vmem>>, vector<1x1x24x16xbf16>
    %65 = vector.shape_cast %64 : vector<1x1x24x16xbf16> to vector<24x16xbf16>
    %c9_i32_55 = arith.constant 9 : i32
    %66 = arith.muli %arg3, %c9_i32_55 : i32
    %c6_i32 = arith.constant 6 : i32
    %67 = arith.addi %66, %c6_i32 : i32
    %c0_i32_56 = arith.constant 0 : i32
    %68 = arith.addi %67, %c0_i32_56 : i32
    %69 = arith.index_cast %68 : i32 to index
    %c0_57 = arith.constant 0 : index
    %c0_58 = arith.constant 0 : index
    %70 = vector.load %arg5[%69, %c0_57, %c0_58] : memref<27x16x128xbf16, #tpu.memory_space<vmem>>, vector<1x16x128xbf16>
    %71 = vector.shape_cast %70 : vector<1x16x128xbf16> to vector<16x128xbf16>
    %cst_59 = arith.constant dense<0.000000e+00> : vector<24x128xf32>
    %72 = tpu.matmul %65, %71, %cst_59 {dimension_numbers = #tpu.dot_dimension_numbers<[1], [0], [0], [1], [0, 0, 1, 1], [], []>} : vector<24x16xbf16>, vector<16x128xbf16>, vector<24x128xf32> -> vector<24x128xf32>
    %73 = arith.addf %63, %72 : vector<24x128xf32>
    %c0_60 = arith.constant 0 : index
    %c0_61 = arith.constant 0 : index
    %c13 = arith.constant 13 : index
    %c0_62 = arith.constant 0 : index
    %74 = vector.load %arg4[%c0_60, %c0_61, %c13, %c0_62] : memref<1x1x42x16xbf16, #tpu.memory_space<vmem>>, vector<1x1x24x16xbf16>
    %75 = vector.shape_cast %74 : vector<1x1x24x16xbf16> to vector<24x16xbf16>
    %c9_i32_63 = arith.constant 9 : i32
    %76 = arith.muli %arg3, %c9_i32_63 : i32
    %c6_i32_64 = arith.constant 6 : i32
    %77 = arith.addi %76, %c6_i32_64 : i32
    %c1_i32_65 = arith.constant 1 : i32
    %78 = arith.addi %77, %c1_i32_65 : i32
    %79 = arith.index_cast %78 : i32 to index
    %c0_66 = arith.constant 0 : index
    %c0_67 = arith.constant 0 : index
    %80 = vector.load %arg5[%79, %c0_66, %c0_67] : memref<27x16x128xbf16, #tpu.memory_space<vmem>>, vector<1x16x128xbf16>
    %81 = vector.shape_cast %80 : vector<1x16x128xbf16> to vector<16x128xbf16>
    %cst_68 = arith.constant dense<0.000000e+00> : vector<24x128xf32>
    %82 = tpu.matmul %75, %81, %cst_68 {dimension_numbers = #tpu.dot_dimension_numbers<[1], [0], [0], [1], [0, 0, 1, 1], [], []>} : vector<24x16xbf16>, vector<16x128xbf16>, vector<24x128xf32> -> vector<24x128xf32>
    %83 = arith.addf %73, %82 : vector<24x128xf32>
    %c0_69 = arith.constant 0 : index
    %c0_70 = arith.constant 0 : index
    %c14 = arith.constant 14 : index
    %c0_71 = arith.constant 0 : index
    %84 = vector.load %arg4[%c0_69, %c0_70, %c14, %c0_71] : memref<1x1x42x16xbf16, #tpu.memory_space<vmem>>, vector<1x1x24x16xbf16>
    %85 = vector.shape_cast %84 : vector<1x1x24x16xbf16> to vector<24x16xbf16>
    %c9_i32_72 = arith.constant 9 : i32
    %86 = arith.muli %arg3, %c9_i32_72 : i32
    %c6_i32_73 = arith.constant 6 : i32
    %87 = arith.addi %86, %c6_i32_73 : i32
    %c2_i32_74 = arith.constant 2 : i32
    %88 = arith.addi %87, %c2_i32_74 : i32
    %89 = arith.index_cast %88 : i32 to index
    %c0_75 = arith.constant 0 : index
    %c0_76 = arith.constant 0 : index
    %90 = vector.load %arg5[%89, %c0_75, %c0_76] : memref<27x16x128xbf16, #tpu.memory_space<vmem>>, vector<1x16x128xbf16>
    %91 = vector.shape_cast %90 : vector<1x16x128xbf16> to vector<16x128xbf16>
    %cst_77 = arith.constant dense<0.000000e+00> : vector<24x128xf32>
    %92 = tpu.matmul %85, %91, %cst_77 {dimension_numbers = #tpu.dot_dimension_numbers<[1], [0], [0], [1], [0, 0, 1, 1], [], []>} : vector<24x16xbf16>, vector<16x128xbf16>, vector<24x128xf32> -> vector<24x128xf32>
    %93 = arith.addf %83, %92 : vector<24x128xf32>
    %c0_78 = arith.constant 0 : index
    %c0_79 = arith.constant 0 : index
    %94 = vector.load %arg8[%c0_78, %c0_79] : memref<24x128xf32, #tpu.memory_space<vmem>>, vector<24x128xf32>
    tpu.vector_store %arg8[%c0_78, %c0_79], %93 {strides = array<i32>} : memref<24x128xf32, #tpu.memory_space<vmem>>, vector<24x128xf32>,
    %c2_i32_80 = arith.constant 2 : i32
    %95 = arith.cmpi eq, %arg3, %c2_i32_80 : i32
    %96 = arith.extui %95 : i1 to i32
    %c0_i32_81 = arith.constant 0 : i32
    %97 = arith.cmpi ne, %96, %c0_i32_81 : i32
    scf.if %97 {
      %c0_82 = arith.constant 0 : index
      %c0_83 = arith.constant 0 : index
      %98 = vector.load %arg8[%c0_82, %c0_83] : memref<24x128xf32, #tpu.memory_space<vmem>>, vector<24x128xf32>
      %c0_84 = arith.constant 0 : index
      %c0_85 = arith.constant 0 : index
      %99 = vector.load %arg6[%c0_84, %c0_85] : memref<1x128xf32, #tpu.memory_space<vmem>>, vector<1x128xf32>
      %100 = vector.broadcast %99 : vector<1x128xf32> to vector<24x128xf32>
      %101 = arith.addf %98, %100 : vector<24x128xf32>
      %cst_86 = arith.constant 0.000000e+00 : f32
      %102 = vector.broadcast %cst_86 : f32 to vector<24x128xf32>
      %103 = arith.maximumf %101, %102 : vector<24x128xf32>
      %104 = arith.truncf %103 : vector<24x128xf32> to vector<24x128xbf16>
      %c0_87 = arith.constant 0 : index
      %c0_88 = arith.constant 0 : index
      %c0_89 = arith.constant 0 : index
      %105 = vector.load %arg7[%c0_87, %c0_88, %c0_89] : memref<1x24x128xbf16, #tpu.memory_space<vmem>>, vector<1x24x128xbf16>
      %106 = vector.shape_cast %105 : vector<1x24x128xbf16> to vector<24x128xbf16>
      %107 = vector.shape_cast %104 : vector<24x128xbf16> to vector<1x24x128xbf16>
      tpu.vector_store %arg7[%c0_87, %c0_88, %c0_89], %107 {strides = array<i32>} : memref<1x24x128xbf16, #tpu.memory_space<vmem>>, vector<1x24x128xbf16>,
    } else {
    }
    return
  }
  func.func @transform_0(%arg0: i32, %arg1: i32, %arg2: i32, %arg3: i32) -> (i32, i32, i32, i32) {
    %c6_i32 = arith.constant 6 : i32
    %0 = arith.muli %arg0, %c6_i32 : i32
    %c1_i32 = arith.constant 1 : i32
    %1 = arith.muli %c1_i32, %arg2 : i32
    %2 = arith.addi %0, %1 : i32
    %3 = arith.addi %2, %arg3 : i32
    %c0_i32 = arith.constant 0 : i32
    %c0_i32_0 = arith.constant 0 : i32
    %c0_i32_1 = arith.constant 0 : i32
    %c0_i32_2 = arith.constant 0 : i32
    return %3, %c0_i32, %c0_i32_0, %c0_i32_1 : i32, i32, i32, i32
  }
  func.func @transform_1(%arg0: i32, %arg1: i32, %arg2: i32, %arg3: i32) -> (i32, i32, i32) {
    %c0_i32 = arith.constant 0 : i32
    %c0_i32_0 = arith.constant 0 : i32
    %c0_i32_1 = arith.constant 0 : i32
    return %c0_i32, %c0_i32_0, %arg1 : i32, i32, i32
  }
  func.func @transform_2(%arg0: i32, %arg1: i32, %arg2: i32, %arg3: i32) -> (i32, i32) {
    %c0_i32 = arith.constant 0 : i32
    %c0_i32_0 = arith.constant 0 : i32
    return %c0_i32, %arg1 : i32, i32
  }
  func.func @transform_3(%arg0: i32, %arg1: i32, %arg2: i32, %arg3: i32) -> (i32, i32, i32) {
    %c4_i32 = arith.constant 4 : i32
    %0 = arith.muli %arg0, %c4_i32 : i32
    %1 = arith.addi %0, %arg2 : i32
    %c0_i32 = arith.constant 0 : i32
    %c0_i32_0 = arith.constant 0 : i32
    return %1, %c0_i32, %arg1 : i32, i32, i32
  }
}

module attributes {stable_mosaic.version = 11 : i64} {
  func.func @_conv3_kernel(%arg0: i32, %arg1: i32, %arg2: i32, %arg3: i32, %arg4: memref<1x4x12x16xbf16, #tpu.memory_space<vmem>>, %arg5: memref<27x16x128xbf16, #tpu.memory_space<vmem>>, %arg6: memref<1x128xf32, #tpu.memory_space<vmem>>, %arg7: memref<1x6x128xbf16, #tpu.memory_space<vmem>>, %arg8: memref<6x128xf32, #tpu.memory_space<vmem>>) attributes {dimension_semantics = [#tpu.dimension_semantics<parallel>, #tpu.dimension_semantics<parallel>, #tpu.dimension_semantics<parallel>, #tpu.dimension_semantics<arbitrary>], iteration_bounds = array<i64: 2, 1, 2, 3>, scalar_prefetch = 0 : i64, scratch_operands = 1 : i64, tpu.core_type = #tpu.core_type<tc>, window_params = [{transform_indices = @transform_0, window_bounds = array<i64: 1, 4, 12, 16>}, {transform_indices = @transform_1, window_bounds = array<i64: 27, 16, 128>}, {transform_indices = @transform_2, window_bounds = array<i64: 1, 128>}, {transform_indices = @transform_3, window_bounds = array<i64: 1, 6, 128>}]} {
    %c0_i32 = arith.constant 0 : i32
    %0 = arith.cmpi eq, %arg3, %c0_i32 : i32
    %1 = arith.extui %0 : i1 to i32
    %c0_i32_0 = arith.constant 0 : i32
    %2 = arith.cmpi ne, %1, %c0_i32_0 : i32
    scf.if %2 {
      %cst_86 = arith.constant 0.000000e+00 : f32
      %98 = vector.broadcast %cst_86 : f32 to vector<6x128xf32>
      %c0_87 = arith.constant 0 : index
      %c0_88 = arith.constant 0 : index
      %99 = vector.load %arg8[%c0_87, %c0_88] : memref<6x128xf32, #tpu.memory_space<vmem>>, vector<6x128xf32>
      tpu.vector_store %arg8[%c0_87, %c0_88], %98 {strides = array<i32>} : memref<6x128xf32, #tpu.memory_space<vmem>>, vector<6x128xf32>,
    } else {
    }
    %c0 = arith.constant 0 : index
    %c0_1 = arith.constant 0 : index
    %3 = vector.load %arg8[%c0, %c0_1] : memref<6x128xf32, #tpu.memory_space<vmem>>, vector<6x128xf32>
    %c0_2 = arith.constant 0 : index
    %c0_3 = arith.constant 0 : index
    %c0_4 = arith.constant 0 : index
    %c0_5 = arith.constant 0 : index
    %4 = vector.load %arg4[%c0_2, %c0_3, %c0_4, %c0_5] : memref<1x4x12x16xbf16, #tpu.memory_space<vmem>>, vector<1x1x6x16xbf16>
    %5 = vector.shape_cast %4 : vector<1x1x6x16xbf16> to vector<6x16xbf16>
    %c9_i32 = arith.constant 9 : i32
    %6 = arith.muli %arg3, %c9_i32 : i32
    %c0_i32_6 = arith.constant 0 : i32
    %7 = arith.addi %6, %c0_i32_6 : i32
    %c0_i32_7 = arith.constant 0 : i32
    %8 = arith.addi %7, %c0_i32_7 : i32
    %9 = arith.index_cast %8 : i32 to index
    %c0_8 = arith.constant 0 : index
    %c0_9 = arith.constant 0 : index
    %10 = vector.load %arg5[%9, %c0_8, %c0_9] : memref<27x16x128xbf16, #tpu.memory_space<vmem>>, vector<1x16x128xbf16>
    %11 = vector.shape_cast %10 : vector<1x16x128xbf16> to vector<16x128xbf16>
    %cst = arith.constant dense<0.000000e+00> : vector<6x128xf32>
    %12 = tpu.matmul %5, %11, %cst {dimension_numbers = #tpu.dot_dimension_numbers<[1], [0], [0], [1], [0, 0, 1, 1], [], []>} : vector<6x16xbf16>, vector<16x128xbf16>, vector<6x128xf32> -> vector<6x128xf32>
    %13 = arith.addf %3, %12 : vector<6x128xf32>
    %c0_10 = arith.constant 0 : index
    %c1 = arith.constant 1 : index
    %c0_11 = arith.constant 0 : index
    %c0_12 = arith.constant 0 : index
    %14 = vector.load %arg4[%c0_10, %c1, %c0_11, %c0_12] : memref<1x4x12x16xbf16, #tpu.memory_space<vmem>>, vector<1x1x6x16xbf16>
    %15 = vector.shape_cast %14 : vector<1x1x6x16xbf16> to vector<6x16xbf16>
    %c9_i32_13 = arith.constant 9 : i32
    %16 = arith.muli %arg3, %c9_i32_13 : i32
    %c0_i32_14 = arith.constant 0 : i32
    %17 = arith.addi %16, %c0_i32_14 : i32
    %c1_i32 = arith.constant 1 : i32
    %18 = arith.addi %17, %c1_i32 : i32
    %19 = arith.index_cast %18 : i32 to index
    %c0_15 = arith.constant 0 : index
    %c0_16 = arith.constant 0 : index
    %20 = vector.load %arg5[%19, %c0_15, %c0_16] : memref<27x16x128xbf16, #tpu.memory_space<vmem>>, vector<1x16x128xbf16>
    %21 = vector.shape_cast %20 : vector<1x16x128xbf16> to vector<16x128xbf16>
    %cst_17 = arith.constant dense<0.000000e+00> : vector<6x128xf32>
    %22 = tpu.matmul %15, %21, %cst_17 {dimension_numbers = #tpu.dot_dimension_numbers<[1], [0], [0], [1], [0, 0, 1, 1], [], []>} : vector<6x16xbf16>, vector<16x128xbf16>, vector<6x128xf32> -> vector<6x128xf32>
    %23 = arith.addf %13, %22 : vector<6x128xf32>
    %c0_18 = arith.constant 0 : index
    %c0_19 = arith.constant 0 : index
    %c1_20 = arith.constant 1 : index
    %c0_21 = arith.constant 0 : index
    %24 = vector.load %arg4[%c0_18, %c0_19, %c1_20, %c0_21] : memref<1x4x12x16xbf16, #tpu.memory_space<vmem>>, vector<1x1x6x16xbf16>
    %25 = vector.shape_cast %24 : vector<1x1x6x16xbf16> to vector<6x16xbf16>
    %c9_i32_22 = arith.constant 9 : i32
    %26 = arith.muli %arg3, %c9_i32_22 : i32
    %c0_i32_23 = arith.constant 0 : i32
    %27 = arith.addi %26, %c0_i32_23 : i32
    %c2_i32 = arith.constant 2 : i32
    %28 = arith.addi %27, %c2_i32 : i32
    %29 = arith.index_cast %28 : i32 to index
    %c0_24 = arith.constant 0 : index
    %c0_25 = arith.constant 0 : index
    %30 = vector.load %arg5[%29, %c0_24, %c0_25] : memref<27x16x128xbf16, #tpu.memory_space<vmem>>, vector<1x16x128xbf16>
    %31 = vector.shape_cast %30 : vector<1x16x128xbf16> to vector<16x128xbf16>
    %cst_26 = arith.constant dense<0.000000e+00> : vector<6x128xf32>
    %32 = tpu.matmul %25, %31, %cst_26 {dimension_numbers = #tpu.dot_dimension_numbers<[1], [0], [0], [1], [0, 0, 1, 1], [], []>} : vector<6x16xbf16>, vector<16x128xbf16>, vector<6x128xf32> -> vector<6x128xf32>
    %33 = arith.addf %23, %32 : vector<6x128xf32>
    %c0_27 = arith.constant 0 : index
    %c2 = arith.constant 2 : index
    %c0_28 = arith.constant 0 : index
    %c0_29 = arith.constant 0 : index
    %34 = vector.load %arg4[%c0_27, %c2, %c0_28, %c0_29] : memref<1x4x12x16xbf16, #tpu.memory_space<vmem>>, vector<1x1x6x16xbf16>
    %35 = vector.shape_cast %34 : vector<1x1x6x16xbf16> to vector<6x16xbf16>
    %c9_i32_30 = arith.constant 9 : i32
    %36 = arith.muli %arg3, %c9_i32_30 : i32
    %c3_i32 = arith.constant 3 : i32
    %37 = arith.addi %36, %c3_i32 : i32
    %c0_i32_31 = arith.constant 0 : i32
    %38 = arith.addi %37, %c0_i32_31 : i32
    %39 = arith.index_cast %38 : i32 to index
    %c0_32 = arith.constant 0 : index
    %c0_33 = arith.constant 0 : index
    %40 = vector.load %arg5[%39, %c0_32, %c0_33] : memref<27x16x128xbf16, #tpu.memory_space<vmem>>, vector<1x16x128xbf16>
    %41 = vector.shape_cast %40 : vector<1x16x128xbf16> to vector<16x128xbf16>
    %cst_34 = arith.constant dense<0.000000e+00> : vector<6x128xf32>
    %42 = tpu.matmul %35, %41, %cst_34 {dimension_numbers = #tpu.dot_dimension_numbers<[1], [0], [0], [1], [0, 0, 1, 1], [], []>} : vector<6x16xbf16>, vector<16x128xbf16>, vector<6x128xf32> -> vector<6x128xf32>
    %43 = arith.addf %33, %42 : vector<6x128xf32>
    %c0_35 = arith.constant 0 : index
    %c3 = arith.constant 3 : index
    %c0_36 = arith.constant 0 : index
    %c0_37 = arith.constant 0 : index
    %44 = vector.load %arg4[%c0_35, %c3, %c0_36, %c0_37] : memref<1x4x12x16xbf16, #tpu.memory_space<vmem>>, vector<1x1x6x16xbf16>
    %45 = vector.shape_cast %44 : vector<1x1x6x16xbf16> to vector<6x16xbf16>
    %c9_i32_38 = arith.constant 9 : i32
    %46 = arith.muli %arg3, %c9_i32_38 : i32
    %c3_i32_39 = arith.constant 3 : i32
    %47 = arith.addi %46, %c3_i32_39 : i32
    %c1_i32_40 = arith.constant 1 : i32
    %48 = arith.addi %47, %c1_i32_40 : i32
    %49 = arith.index_cast %48 : i32 to index
    %c0_41 = arith.constant 0 : index
    %c0_42 = arith.constant 0 : index
    %50 = vector.load %arg5[%49, %c0_41, %c0_42] : memref<27x16x128xbf16, #tpu.memory_space<vmem>>, vector<1x16x128xbf16>
    %51 = vector.shape_cast %50 : vector<1x16x128xbf16> to vector<16x128xbf16>
    %cst_43 = arith.constant dense<0.000000e+00> : vector<6x128xf32>
    %52 = tpu.matmul %45, %51, %cst_43 {dimension_numbers = #tpu.dot_dimension_numbers<[1], [0], [0], [1], [0, 0, 1, 1], [], []>} : vector<6x16xbf16>, vector<16x128xbf16>, vector<6x128xf32> -> vector<6x128xf32>
    %53 = arith.addf %43, %52 : vector<6x128xf32>
    %c0_44 = arith.constant 0 : index
    %c2_45 = arith.constant 2 : index
    %c1_46 = arith.constant 1 : index
    %c0_47 = arith.constant 0 : index
    %54 = vector.load %arg4[%c0_44, %c2_45, %c1_46, %c0_47] : memref<1x4x12x16xbf16, #tpu.memory_space<vmem>>, vector<1x1x6x16xbf16>
    %55 = vector.shape_cast %54 : vector<1x1x6x16xbf16> to vector<6x16xbf16>
    %c9_i32_48 = arith.constant 9 : i32
    %56 = arith.muli %arg3, %c9_i32_48 : i32
    %c3_i32_49 = arith.constant 3 : i32
    %57 = arith.addi %56, %c3_i32_49 : i32
    %c2_i32_50 = arith.constant 2 : i32
    %58 = arith.addi %57, %c2_i32_50 : i32
    %59 = arith.index_cast %58 : i32 to index
    %c0_51 = arith.constant 0 : index
    %c0_52 = arith.constant 0 : index
    %60 = vector.load %arg5[%59, %c0_51, %c0_52] : memref<27x16x128xbf16, #tpu.memory_space<vmem>>, vector<1x16x128xbf16>
    %61 = vector.shape_cast %60 : vector<1x16x128xbf16> to vector<16x128xbf16>
    %cst_53 = arith.constant dense<0.000000e+00> : vector<6x128xf32>
    %62 = tpu.matmul %55, %61, %cst_53 {dimension_numbers = #tpu.dot_dimension_numbers<[1], [0], [0], [1], [0, 0, 1, 1], [], []>} : vector<6x16xbf16>, vector<16x128xbf16>, vector<6x128xf32> -> vector<6x128xf32>
    %63 = arith.addf %53, %62 : vector<6x128xf32>
    %c0_54 = arith.constant 0 : index
    %c0_55 = arith.constant 0 : index
    %c3_56 = arith.constant 3 : index
    %c0_57 = arith.constant 0 : index
    %64 = vector.load %arg4[%c0_54, %c0_55, %c3_56, %c0_57] : memref<1x4x12x16xbf16, #tpu.memory_space<vmem>>, vector<1x1x6x16xbf16>
    %65 = vector.shape_cast %64 : vector<1x1x6x16xbf16> to vector<6x16xbf16>
    %c9_i32_58 = arith.constant 9 : i32
    %66 = arith.muli %arg3, %c9_i32_58 : i32
    %c6_i32 = arith.constant 6 : i32
    %67 = arith.addi %66, %c6_i32 : i32
    %c0_i32_59 = arith.constant 0 : i32
    %68 = arith.addi %67, %c0_i32_59 : i32
    %69 = arith.index_cast %68 : i32 to index
    %c0_60 = arith.constant 0 : index
    %c0_61 = arith.constant 0 : index
    %70 = vector.load %arg5[%69, %c0_60, %c0_61] : memref<27x16x128xbf16, #tpu.memory_space<vmem>>, vector<1x16x128xbf16>
    %71 = vector.shape_cast %70 : vector<1x16x128xbf16> to vector<16x128xbf16>
    %cst_62 = arith.constant dense<0.000000e+00> : vector<6x128xf32>
    %72 = tpu.matmul %65, %71, %cst_62 {dimension_numbers = #tpu.dot_dimension_numbers<[1], [0], [0], [1], [0, 0, 1, 1], [], []>} : vector<6x16xbf16>, vector<16x128xbf16>, vector<6x128xf32> -> vector<6x128xf32>
    %73 = arith.addf %63, %72 : vector<6x128xf32>
    %c0_63 = arith.constant 0 : index
    %c1_64 = arith.constant 1 : index
    %c3_65 = arith.constant 3 : index
    %c0_66 = arith.constant 0 : index
    %74 = vector.load %arg4[%c0_63, %c1_64, %c3_65, %c0_66] : memref<1x4x12x16xbf16, #tpu.memory_space<vmem>>, vector<1x1x6x16xbf16>
    %75 = vector.shape_cast %74 : vector<1x1x6x16xbf16> to vector<6x16xbf16>
    %c9_i32_67 = arith.constant 9 : i32
    %76 = arith.muli %arg3, %c9_i32_67 : i32
    %c6_i32_68 = arith.constant 6 : i32
    %77 = arith.addi %76, %c6_i32_68 : i32
    %c1_i32_69 = arith.constant 1 : i32
    %78 = arith.addi %77, %c1_i32_69 : i32
    %79 = arith.index_cast %78 : i32 to index
    %c0_70 = arith.constant 0 : index
    %c0_71 = arith.constant 0 : index
    %80 = vector.load %arg5[%79, %c0_70, %c0_71] : memref<27x16x128xbf16, #tpu.memory_space<vmem>>, vector<1x16x128xbf16>
    %81 = vector.shape_cast %80 : vector<1x16x128xbf16> to vector<16x128xbf16>
    %cst_72 = arith.constant dense<0.000000e+00> : vector<6x128xf32>
    %82 = tpu.matmul %75, %81, %cst_72 {dimension_numbers = #tpu.dot_dimension_numbers<[1], [0], [0], [1], [0, 0, 1, 1], [], []>} : vector<6x16xbf16>, vector<16x128xbf16>, vector<6x128xf32> -> vector<6x128xf32>
    %83 = arith.addf %73, %82 : vector<6x128xf32>
    %c0_73 = arith.constant 0 : index
    %c0_74 = arith.constant 0 : index
    %c4 = arith.constant 4 : index
    %c0_75 = arith.constant 0 : index
    %84 = vector.load %arg4[%c0_73, %c0_74, %c4, %c0_75] : memref<1x4x12x16xbf16, #tpu.memory_space<vmem>>, vector<1x1x6x16xbf16>
    %85 = vector.shape_cast %84 : vector<1x1x6x16xbf16> to vector<6x16xbf16>
    %c9_i32_76 = arith.constant 9 : i32
    %86 = arith.muli %arg3, %c9_i32_76 : i32
    %c6_i32_77 = arith.constant 6 : i32
    %87 = arith.addi %86, %c6_i32_77 : i32
    %c2_i32_78 = arith.constant 2 : i32
    %88 = arith.addi %87, %c2_i32_78 : i32
    %89 = arith.index_cast %88 : i32 to index
    %c0_79 = arith.constant 0 : index
    %c0_80 = arith.constant 0 : index
    %90 = vector.load %arg5[%89, %c0_79, %c0_80] : memref<27x16x128xbf16, #tpu.memory_space<vmem>>, vector<1x16x128xbf16>
    %91 = vector.shape_cast %90 : vector<1x16x128xbf16> to vector<16x128xbf16>
    %cst_81 = arith.constant dense<0.000000e+00> : vector<6x128xf32>
    %92 = tpu.matmul %85, %91, %cst_81 {dimension_numbers = #tpu.dot_dimension_numbers<[1], [0], [0], [1], [0, 0, 1, 1], [], []>} : vector<6x16xbf16>, vector<16x128xbf16>, vector<6x128xf32> -> vector<6x128xf32>
    %93 = arith.addf %83, %92 : vector<6x128xf32>
    %c0_82 = arith.constant 0 : index
    %c0_83 = arith.constant 0 : index
    %94 = vector.load %arg8[%c0_82, %c0_83] : memref<6x128xf32, #tpu.memory_space<vmem>>, vector<6x128xf32>
    tpu.vector_store %arg8[%c0_82, %c0_83], %93 {strides = array<i32>} : memref<6x128xf32, #tpu.memory_space<vmem>>, vector<6x128xf32>,
    %c2_i32_84 = arith.constant 2 : i32
    %95 = arith.cmpi eq, %arg3, %c2_i32_84 : i32
    %96 = arith.extui %95 : i1 to i32
    %c0_i32_85 = arith.constant 0 : i32
    %97 = arith.cmpi ne, %96, %c0_i32_85 : i32
    scf.if %97 {
      %c0_86 = arith.constant 0 : index
      %c0_87 = arith.constant 0 : index
      %98 = vector.load %arg8[%c0_86, %c0_87] : memref<6x128xf32, #tpu.memory_space<vmem>>, vector<6x128xf32>
      %c0_88 = arith.constant 0 : index
      %c0_89 = arith.constant 0 : index
      %99 = vector.load %arg6[%c0_88, %c0_89] : memref<1x128xf32, #tpu.memory_space<vmem>>, vector<1x128xf32>
      %100 = vector.broadcast %99 : vector<1x128xf32> to vector<6x128xf32>
      %101 = arith.addf %98, %100 : vector<6x128xf32>
      %cst_90 = arith.constant 0.000000e+00 : f32
      %102 = vector.broadcast %cst_90 : f32 to vector<6x128xf32>
      %103 = arith.maximumf %101, %102 : vector<6x128xf32>
      %104 = arith.truncf %103 : vector<6x128xf32> to vector<6x128xbf16>
      %c0_91 = arith.constant 0 : index
      %c0_92 = arith.constant 0 : index
      %c0_93 = arith.constant 0 : index
      %105 = vector.load %arg7[%c0_91, %c0_92, %c0_93] : memref<1x6x128xbf16, #tpu.memory_space<vmem>>, vector<1x6x128xbf16>
      %106 = vector.shape_cast %105 : vector<1x6x128xbf16> to vector<6x128xbf16>
      %107 = vector.shape_cast %104 : vector<6x128xbf16> to vector<1x6x128xbf16>
      tpu.vector_store %arg7[%c0_91, %c0_92, %c0_93], %107 {strides = array<i32>} : memref<1x6x128xbf16, #tpu.memory_space<vmem>>, vector<1x6x128xbf16>,
    } else {
    }
    return
  }
  func.func @transform_0(%arg0: i32, %arg1: i32, %arg2: i32, %arg3: i32) -> (i32, i32, i32, i32) {
    %c6_i32 = arith.constant 6 : i32
    %0 = arith.muli %arg0, %c6_i32 : i32
    %c2_i32 = arith.constant 2 : i32
    %1 = arith.muli %c2_i32, %arg2 : i32
    %2 = arith.addi %0, %1 : i32
    %3 = arith.addi %2, %arg3 : i32
    %c0_i32 = arith.constant 0 : i32
    %c0_i32_0 = arith.constant 0 : i32
    %c0_i32_1 = arith.constant 0 : i32
    %c0_i32_2 = arith.constant 0 : i32
    return %3, %c0_i32, %c0_i32_0, %c0_i32_1 : i32, i32, i32, i32
  }
  func.func @transform_1(%arg0: i32, %arg1: i32, %arg2: i32, %arg3: i32) -> (i32, i32, i32) {
    %c0_i32 = arith.constant 0 : i32
    %c0_i32_0 = arith.constant 0 : i32
    %c0_i32_1 = arith.constant 0 : i32
    return %c0_i32, %c0_i32_0, %arg1 : i32, i32, i32
  }
  func.func @transform_2(%arg0: i32, %arg1: i32, %arg2: i32, %arg3: i32) -> (i32, i32) {
    %c0_i32 = arith.constant 0 : i32
    %c0_i32_0 = arith.constant 0 : i32
    return %c0_i32, %arg1 : i32, i32
  }
  func.func @transform_3(%arg0: i32, %arg1: i32, %arg2: i32, %arg3: i32) -> (i32, i32, i32) {
    %c2_i32 = arith.constant 2 : i32
    %0 = arith.muli %arg0, %c2_i32 : i32
    %1 = arith.addi %0, %arg2 : i32
    %c0_i32 = arith.constant 0 : i32
    %c0_i32_0 = arith.constant 0 : i32
    return %1, %c0_i32, %arg1 : i32, i32, i32
  }
}

module attributes {stable_mosaic.version = 11 : i64} {
  func.func @_conv3_kernel(%arg0: i32, %arg1: i32, %arg2: i32, %arg3: i32, %arg4: memref<1x4x6x32xbf16, #tpu.memory_space<vmem>>, %arg5: memref<27x32x128xbf16, #tpu.memory_space<vmem>>, %arg6: memref<1x128xf32, #tpu.memory_space<vmem>>, %arg7: memref<1x2x128xbf16, #tpu.memory_space<vmem>>, %arg8: memref<2x128xf32, #tpu.memory_space<vmem>>) attributes {dimension_semantics = [#tpu.dimension_semantics<parallel>, #tpu.dimension_semantics<parallel>, #tpu.dimension_semantics<parallel>, #tpu.dimension_semantics<arbitrary>], iteration_bounds = array<i64: 2, 1, 1, 3>, scalar_prefetch = 0 : i64, scratch_operands = 1 : i64, tpu.core_type = #tpu.core_type<tc>, window_params = [{transform_indices = @transform_0, window_bounds = array<i64: 1, 4, 6, 32>}, {transform_indices = @transform_1, window_bounds = array<i64: 27, 32, 128>}, {transform_indices = @transform_2, window_bounds = array<i64: 1, 128>}, {transform_indices = @transform_3, window_bounds = array<i64: 1, 2, 128>}]} {
    %c0_i32 = arith.constant 0 : i32
    %0 = arith.cmpi eq, %arg3, %c0_i32 : i32
    %1 = arith.extui %0 : i1 to i32
    %c0_i32_0 = arith.constant 0 : i32
    %2 = arith.cmpi ne, %1, %c0_i32_0 : i32
    scf.if %2 {
      %cst_87 = arith.constant 0.000000e+00 : f32
      %98 = vector.broadcast %cst_87 : f32 to vector<2x128xf32>
      %c0_88 = arith.constant 0 : index
      %c0_89 = arith.constant 0 : index
      %99 = vector.load %arg8[%c0_88, %c0_89] : memref<2x128xf32, #tpu.memory_space<vmem>>, vector<2x128xf32>
      tpu.vector_store %arg8[%c0_88, %c0_89], %98 {strides = array<i32>} : memref<2x128xf32, #tpu.memory_space<vmem>>, vector<2x128xf32>,
    } else {
    }
    %c0 = arith.constant 0 : index
    %c0_1 = arith.constant 0 : index
    %3 = vector.load %arg8[%c0, %c0_1] : memref<2x128xf32, #tpu.memory_space<vmem>>, vector<2x128xf32>
    %c0_2 = arith.constant 0 : index
    %c0_3 = arith.constant 0 : index
    %c0_4 = arith.constant 0 : index
    %c0_5 = arith.constant 0 : index
    %4 = vector.load %arg4[%c0_2, %c0_3, %c0_4, %c0_5] : memref<1x4x6x32xbf16, #tpu.memory_space<vmem>>, vector<1x1x2x32xbf16>
    %5 = vector.shape_cast %4 : vector<1x1x2x32xbf16> to vector<2x32xbf16>
    %c9_i32 = arith.constant 9 : i32
    %6 = arith.muli %arg3, %c9_i32 : i32
    %c0_i32_6 = arith.constant 0 : i32
    %7 = arith.addi %6, %c0_i32_6 : i32
    %c0_i32_7 = arith.constant 0 : i32
    %8 = arith.addi %7, %c0_i32_7 : i32
    %9 = arith.index_cast %8 : i32 to index
    %c0_8 = arith.constant 0 : index
    %c0_9 = arith.constant 0 : index
    %10 = vector.load %arg5[%9, %c0_8, %c0_9] : memref<27x32x128xbf16, #tpu.memory_space<vmem>>, vector<1x32x128xbf16>
    %11 = vector.shape_cast %10 : vector<1x32x128xbf16> to vector<32x128xbf16>
    %cst = arith.constant dense<0.000000e+00> : vector<2x128xf32>
    %12 = tpu.matmul %5, %11, %cst {dimension_numbers = #tpu.dot_dimension_numbers<[1], [0], [0], [1], [0, 0, 1, 1], [], []>} : vector<2x32xbf16>, vector<32x128xbf16>, vector<2x128xf32> -> vector<2x128xf32>
    %13 = arith.addf %3, %12 : vector<2x128xf32>
    %c0_10 = arith.constant 0 : index
    %c1 = arith.constant 1 : index
    %c0_11 = arith.constant 0 : index
    %c0_12 = arith.constant 0 : index
    %14 = vector.load %arg4[%c0_10, %c1, %c0_11, %c0_12] : memref<1x4x6x32xbf16, #tpu.memory_space<vmem>>, vector<1x1x2x32xbf16>
    %15 = vector.shape_cast %14 : vector<1x1x2x32xbf16> to vector<2x32xbf16>
    %c9_i32_13 = arith.constant 9 : i32
    %16 = arith.muli %arg3, %c9_i32_13 : i32
    %c0_i32_14 = arith.constant 0 : i32
    %17 = arith.addi %16, %c0_i32_14 : i32
    %c1_i32 = arith.constant 1 : i32
    %18 = arith.addi %17, %c1_i32 : i32
    %19 = arith.index_cast %18 : i32 to index
    %c0_15 = arith.constant 0 : index
    %c0_16 = arith.constant 0 : index
    %20 = vector.load %arg5[%19, %c0_15, %c0_16] : memref<27x32x128xbf16, #tpu.memory_space<vmem>>, vector<1x32x128xbf16>
    %21 = vector.shape_cast %20 : vector<1x32x128xbf16> to vector<32x128xbf16>
    %cst_17 = arith.constant dense<0.000000e+00> : vector<2x128xf32>
    %22 = tpu.matmul %15, %21, %cst_17 {dimension_numbers = #tpu.dot_dimension_numbers<[1], [0], [0], [1], [0, 0, 1, 1], [], []>} : vector<2x32xbf16>, vector<32x128xbf16>, vector<2x128xf32> -> vector<2x128xf32>
    %23 = arith.addf %13, %22 : vector<2x128xf32>
    %c0_18 = arith.constant 0 : index
    %c0_19 = arith.constant 0 : index
    %c1_20 = arith.constant 1 : index
    %c0_21 = arith.constant 0 : index
    %24 = vector.load %arg4[%c0_18, %c0_19, %c1_20, %c0_21] : memref<1x4x6x32xbf16, #tpu.memory_space<vmem>>, vector<1x1x2x32xbf16>
    %25 = vector.shape_cast %24 : vector<1x1x2x32xbf16> to vector<2x32xbf16>
    %c9_i32_22 = arith.constant 9 : i32
    %26 = arith.muli %arg3, %c9_i32_22 : i32
    %c0_i32_23 = arith.constant 0 : i32
    %27 = arith.addi %26, %c0_i32_23 : i32
    %c2_i32 = arith.constant 2 : i32
    %28 = arith.addi %27, %c2_i32 : i32
    %29 = arith.index_cast %28 : i32 to index
    %c0_24 = arith.constant 0 : index
    %c0_25 = arith.constant 0 : index
    %30 = vector.load %arg5[%29, %c0_24, %c0_25] : memref<27x32x128xbf16, #tpu.memory_space<vmem>>, vector<1x32x128xbf16>
    %31 = vector.shape_cast %30 : vector<1x32x128xbf16> to vector<32x128xbf16>
    %cst_26 = arith.constant dense<0.000000e+00> : vector<2x128xf32>
    %32 = tpu.matmul %25, %31, %cst_26 {dimension_numbers = #tpu.dot_dimension_numbers<[1], [0], [0], [1], [0, 0, 1, 1], [], []>} : vector<2x32xbf16>, vector<32x128xbf16>, vector<2x128xf32> -> vector<2x128xf32>
    %33 = arith.addf %23, %32 : vector<2x128xf32>
    %c0_27 = arith.constant 0 : index
    %c2 = arith.constant 2 : index
    %c0_28 = arith.constant 0 : index
    %c0_29 = arith.constant 0 : index
    %34 = vector.load %arg4[%c0_27, %c2, %c0_28, %c0_29] : memref<1x4x6x32xbf16, #tpu.memory_space<vmem>>, vector<1x1x2x32xbf16>
    %35 = vector.shape_cast %34 : vector<1x1x2x32xbf16> to vector<2x32xbf16>
    %c9_i32_30 = arith.constant 9 : i32
    %36 = arith.muli %arg3, %c9_i32_30 : i32
    %c3_i32 = arith.constant 3 : i32
    %37 = arith.addi %36, %c3_i32 : i32
    %c0_i32_31 = arith.constant 0 : i32
    %38 = arith.addi %37, %c0_i32_31 : i32
    %39 = arith.index_cast %38 : i32 to index
    %c0_32 = arith.constant 0 : index
    %c0_33 = arith.constant 0 : index
    %40 = vector.load %arg5[%39, %c0_32, %c0_33] : memref<27x32x128xbf16, #tpu.memory_space<vmem>>, vector<1x32x128xbf16>
    %41 = vector.shape_cast %40 : vector<1x32x128xbf16> to vector<32x128xbf16>
    %cst_34 = arith.constant dense<0.000000e+00> : vector<2x128xf32>
    %42 = tpu.matmul %35, %41, %cst_34 {dimension_numbers = #tpu.dot_dimension_numbers<[1], [0], [0], [1], [0, 0, 1, 1], [], []>} : vector<2x32xbf16>, vector<32x128xbf16>, vector<2x128xf32> -> vector<2x128xf32>
    %43 = arith.addf %33, %42 : vector<2x128xf32>
    %c0_35 = arith.constant 0 : index
    %c3 = arith.constant 3 : index
    %c0_36 = arith.constant 0 : index
    %c0_37 = arith.constant 0 : index
    %44 = vector.load %arg4[%c0_35, %c3, %c0_36, %c0_37] : memref<1x4x6x32xbf16, #tpu.memory_space<vmem>>, vector<1x1x2x32xbf16>
    %45 = vector.shape_cast %44 : vector<1x1x2x32xbf16> to vector<2x32xbf16>
    %c9_i32_38 = arith.constant 9 : i32
    %46 = arith.muli %arg3, %c9_i32_38 : i32
    %c3_i32_39 = arith.constant 3 : i32
    %47 = arith.addi %46, %c3_i32_39 : i32
    %c1_i32_40 = arith.constant 1 : i32
    %48 = arith.addi %47, %c1_i32_40 : i32
    %49 = arith.index_cast %48 : i32 to index
    %c0_41 = arith.constant 0 : index
    %c0_42 = arith.constant 0 : index
    %50 = vector.load %arg5[%49, %c0_41, %c0_42] : memref<27x32x128xbf16, #tpu.memory_space<vmem>>, vector<1x32x128xbf16>
    %51 = vector.shape_cast %50 : vector<1x32x128xbf16> to vector<32x128xbf16>
    %cst_43 = arith.constant dense<0.000000e+00> : vector<2x128xf32>
    %52 = tpu.matmul %45, %51, %cst_43 {dimension_numbers = #tpu.dot_dimension_numbers<[1], [0], [0], [1], [0, 0, 1, 1], [], []>} : vector<2x32xbf16>, vector<32x128xbf16>, vector<2x128xf32> -> vector<2x128xf32>
    %53 = arith.addf %43, %52 : vector<2x128xf32>
    %c0_44 = arith.constant 0 : index
    %c2_45 = arith.constant 2 : index
    %c1_46 = arith.constant 1 : index
    %c0_47 = arith.constant 0 : index
    %54 = vector.load %arg4[%c0_44, %c2_45, %c1_46, %c0_47] : memref<1x4x6x32xbf16, #tpu.memory_space<vmem>>, vector<1x1x2x32xbf16>
    %55 = vector.shape_cast %54 : vector<1x1x2x32xbf16> to vector<2x32xbf16>
    %c9_i32_48 = arith.constant 9 : i32
    %56 = arith.muli %arg3, %c9_i32_48 : i32
    %c3_i32_49 = arith.constant 3 : i32
    %57 = arith.addi %56, %c3_i32_49 : i32
    %c2_i32_50 = arith.constant 2 : i32
    %58 = arith.addi %57, %c2_i32_50 : i32
    %59 = arith.index_cast %58 : i32 to index
    %c0_51 = arith.constant 0 : index
    %c0_52 = arith.constant 0 : index
    %60 = vector.load %arg5[%59, %c0_51, %c0_52] : memref<27x32x128xbf16, #tpu.memory_space<vmem>>, vector<1x32x128xbf16>
    %61 = vector.shape_cast %60 : vector<1x32x128xbf16> to vector<32x128xbf16>
    %cst_53 = arith.constant dense<0.000000e+00> : vector<2x128xf32>
    %62 = tpu.matmul %55, %61, %cst_53 {dimension_numbers = #tpu.dot_dimension_numbers<[1], [0], [0], [1], [0, 0, 1, 1], [], []>} : vector<2x32xbf16>, vector<32x128xbf16>, vector<2x128xf32> -> vector<2x128xf32>
    %63 = arith.addf %53, %62 : vector<2x128xf32>
    %c0_54 = arith.constant 0 : index
    %c0_55 = arith.constant 0 : index
    %c2_56 = arith.constant 2 : index
    %c0_57 = arith.constant 0 : index
    %64 = vector.load %arg4[%c0_54, %c0_55, %c2_56, %c0_57] : memref<1x4x6x32xbf16, #tpu.memory_space<vmem>>, vector<1x1x2x32xbf16>
    %65 = vector.shape_cast %64 : vector<1x1x2x32xbf16> to vector<2x32xbf16>
    %c9_i32_58 = arith.constant 9 : i32
    %66 = arith.muli %arg3, %c9_i32_58 : i32
    %c6_i32 = arith.constant 6 : i32
    %67 = arith.addi %66, %c6_i32 : i32
    %c0_i32_59 = arith.constant 0 : i32
    %68 = arith.addi %67, %c0_i32_59 : i32
    %69 = arith.index_cast %68 : i32 to index
    %c0_60 = arith.constant 0 : index
    %c0_61 = arith.constant 0 : index
    %70 = vector.load %arg5[%69, %c0_60, %c0_61] : memref<27x32x128xbf16, #tpu.memory_space<vmem>>, vector<1x32x128xbf16>
    %71 = vector.shape_cast %70 : vector<1x32x128xbf16> to vector<32x128xbf16>
    %cst_62 = arith.constant dense<0.000000e+00> : vector<2x128xf32>
    %72 = tpu.matmul %65, %71, %cst_62 {dimension_numbers = #tpu.dot_dimension_numbers<[1], [0], [0], [1], [0, 0, 1, 1], [], []>} : vector<2x32xbf16>, vector<32x128xbf16>, vector<2x128xf32> -> vector<2x128xf32>
    %73 = arith.addf %63, %72 : vector<2x128xf32>
    %c0_63 = arith.constant 0 : index
    %c1_64 = arith.constant 1 : index
    %c2_65 = arith.constant 2 : index
    %c0_66 = arith.constant 0 : index
    %74 = vector.load %arg4[%c0_63, %c1_64, %c2_65, %c0_66] : memref<1x4x6x32xbf16, #tpu.memory_space<vmem>>, vector<1x1x2x32xbf16>
    %75 = vector.shape_cast %74 : vector<1x1x2x32xbf16> to vector<2x32xbf16>
    %c9_i32_67 = arith.constant 9 : i32
    %76 = arith.muli %arg3, %c9_i32_67 : i32
    %c6_i32_68 = arith.constant 6 : i32
    %77 = arith.addi %76, %c6_i32_68 : i32
    %c1_i32_69 = arith.constant 1 : i32
    %78 = arith.addi %77, %c1_i32_69 : i32
    %79 = arith.index_cast %78 : i32 to index
    %c0_70 = arith.constant 0 : index
    %c0_71 = arith.constant 0 : index
    %80 = vector.load %arg5[%79, %c0_70, %c0_71] : memref<27x32x128xbf16, #tpu.memory_space<vmem>>, vector<1x32x128xbf16>
    %81 = vector.shape_cast %80 : vector<1x32x128xbf16> to vector<32x128xbf16>
    %cst_72 = arith.constant dense<0.000000e+00> : vector<2x128xf32>
    %82 = tpu.matmul %75, %81, %cst_72 {dimension_numbers = #tpu.dot_dimension_numbers<[1], [0], [0], [1], [0, 0, 1, 1], [], []>} : vector<2x32xbf16>, vector<32x128xbf16>, vector<2x128xf32> -> vector<2x128xf32>
    %83 = arith.addf %73, %82 : vector<2x128xf32>
    %c0_73 = arith.constant 0 : index
    %c0_74 = arith.constant 0 : index
    %c3_75 = arith.constant 3 : index
    %c0_76 = arith.constant 0 : index
    %84 = vector.load %arg4[%c0_73, %c0_74, %c3_75, %c0_76] : memref<1x4x6x32xbf16, #tpu.memory_space<vmem>>, vector<1x1x2x32xbf16>
    %85 = vector.shape_cast %84 : vector<1x1x2x32xbf16> to vector<2x32xbf16>
    %c9_i32_77 = arith.constant 9 : i32
    %86 = arith.muli %arg3, %c9_i32_77 : i32
    %c6_i32_78 = arith.constant 6 : i32
    %87 = arith.addi %86, %c6_i32_78 : i32
    %c2_i32_79 = arith.constant 2 : i32
    %88 = arith.addi %87, %c2_i32_79 : i32
    %89 = arith.index_cast %88 : i32 to index
    %c0_80 = arith.constant 0 : index
    %c0_81 = arith.constant 0 : index
    %90 = vector.load %arg5[%89, %c0_80, %c0_81] : memref<27x32x128xbf16, #tpu.memory_space<vmem>>, vector<1x32x128xbf16>
    %91 = vector.shape_cast %90 : vector<1x32x128xbf16> to vector<32x128xbf16>
    %cst_82 = arith.constant dense<0.000000e+00> : vector<2x128xf32>
    %92 = tpu.matmul %85, %91, %cst_82 {dimension_numbers = #tpu.dot_dimension_numbers<[1], [0], [0], [1], [0, 0, 1, 1], [], []>} : vector<2x32xbf16>, vector<32x128xbf16>, vector<2x128xf32> -> vector<2x128xf32>
    %93 = arith.addf %83, %92 : vector<2x128xf32>
    %c0_83 = arith.constant 0 : index
    %c0_84 = arith.constant 0 : index
    %94 = vector.load %arg8[%c0_83, %c0_84] : memref<2x128xf32, #tpu.memory_space<vmem>>, vector<2x128xf32>
    tpu.vector_store %arg8[%c0_83, %c0_84], %93 {strides = array<i32>} : memref<2x128xf32, #tpu.memory_space<vmem>>, vector<2x128xf32>,
    %c2_i32_85 = arith.constant 2 : i32
    %95 = arith.cmpi eq, %arg3, %c2_i32_85 : i32
    %96 = arith.extui %95 : i1 to i32
    %c0_i32_86 = arith.constant 0 : i32
    %97 = arith.cmpi ne, %96, %c0_i32_86 : i32
    scf.if %97 {
      %c0_87 = arith.constant 0 : index
      %c0_88 = arith.constant 0 : index
      %98 = vector.load %arg8[%c0_87, %c0_88] : memref<2x128xf32, #tpu.memory_space<vmem>>, vector<2x128xf32>
      %c0_89 = arith.constant 0 : index
      %c0_90 = arith.constant 0 : index
      %99 = vector.load %arg6[%c0_89, %c0_90] : memref<1x128xf32, #tpu.memory_space<vmem>>, vector<1x128xf32>
      %100 = vector.broadcast %99 : vector<1x128xf32> to vector<2x128xf32>
      %101 = arith.addf %98, %100 : vector<2x128xf32>
      %cst_91 = arith.constant 0.000000e+00 : f32
      %102 = vector.broadcast %cst_91 : f32 to vector<2x128xf32>
      %103 = arith.maximumf %101, %102 : vector<2x128xf32>
      %104 = arith.truncf %103 : vector<2x128xf32> to vector<2x128xbf16>
      %c0_92 = arith.constant 0 : index
      %c0_93 = arith.constant 0 : index
      %c0_94 = arith.constant 0 : index
      %105 = vector.load %arg7[%c0_92, %c0_93, %c0_94] : memref<1x2x128xbf16, #tpu.memory_space<vmem>>, vector<1x2x128xbf16>
      %106 = vector.shape_cast %105 : vector<1x2x128xbf16> to vector<2x128xbf16>
      %107 = vector.shape_cast %104 : vector<2x128xbf16> to vector<1x2x128xbf16>
      tpu.vector_store %arg7[%c0_92, %c0_93, %c0_94], %107 {strides = array<i32>} : memref<1x2x128xbf16, #tpu.memory_space<vmem>>, vector<1x2x128xbf16>,
    } else {
    }
    return
  }
  func.func @transform_0(%arg0: i32, %arg1: i32, %arg2: i32, %arg3: i32) -> (i32, i32, i32, i32) {
    %c4_i32 = arith.constant 4 : i32
    %0 = arith.muli %arg0, %c4_i32 : i32
    %c2_i32 = arith.constant 2 : i32
    %1 = arith.muli %c2_i32, %arg2 : i32
    %2 = arith.addi %0, %1 : i32
    %3 = arith.addi %2, %arg3 : i32
    %c0_i32 = arith.constant 0 : i32
    %c0_i32_0 = arith.constant 0 : i32
    %c0_i32_1 = arith.constant 0 : i32
    %c0_i32_2 = arith.constant 0 : i32
    return %3, %c0_i32, %c0_i32_0, %c0_i32_1 : i32, i32, i32, i32
  }
  func.func @transform_1(%arg0: i32, %arg1: i32, %arg2: i32, %arg3: i32) -> (i32, i32, i32) {
    %c0_i32 = arith.constant 0 : i32
    %c0_i32_0 = arith.constant 0 : i32
    %c0_i32_1 = arith.constant 0 : i32
    return %c0_i32, %c0_i32_0, %arg1 : i32, i32, i32
  }
  func.func @transform_2(%arg0: i32, %arg1: i32, %arg2: i32, %arg3: i32) -> (i32, i32) {
    %c0_i32 = arith.constant 0 : i32
    %c0_i32_0 = arith.constant 0 : i32
    return %c0_i32, %arg1 : i32, i32
  }
  func.func @transform_3(%arg0: i32, %arg1: i32, %arg2: i32, %arg3: i32) -> (i32, i32, i32) {
    %c1_i32 = arith.constant 1 : i32
    %0 = arith.muli %arg0, %c1_i32 : i32
    %1 = arith.addi %0, %arg2 : i32
    %c0_i32 = arith.constant 0 : i32
    %c0_i32_0 = arith.constant 0 : i32
    return %1, %c0_i32, %arg1 : i32, i32, i32
  }
}

module attributes {stable_mosaic.version = 11 : i64} {
  func.func @_conv3_kernel(%arg0: i32, %arg1: i32, %arg2: i32, %arg3: i32, %arg4: memref<1x4x6x64xbf16, #tpu.memory_space<vmem>>, %arg5: memref<27x64x128xbf16, #tpu.memory_space<vmem>>, %arg6: memref<1x128xf32, #tpu.memory_space<vmem>>, %arg7: memref<1x2x128xbf16, #tpu.memory_space<vmem>>, %arg8: memref<2x128xf32, #tpu.memory_space<vmem>>) attributes {dimension_semantics = [#tpu.dimension_semantics<parallel>, #tpu.dimension_semantics<parallel>, #tpu.dimension_semantics<parallel>, #tpu.dimension_semantics<arbitrary>], iteration_bounds = array<i64: 2, 1, 1, 3>, scalar_prefetch = 0 : i64, scratch_operands = 1 : i64, tpu.core_type = #tpu.core_type<tc>, window_params = [{transform_indices = @transform_0, window_bounds = array<i64: 1, 4, 6, 64>}, {transform_indices = @transform_1, window_bounds = array<i64: 27, 64, 128>}, {transform_indices = @transform_2, window_bounds = array<i64: 1, 128>}, {transform_indices = @transform_3, window_bounds = array<i64: 1, 2, 128>}]} {
    %c0_i32 = arith.constant 0 : i32
    %0 = arith.cmpi eq, %arg3, %c0_i32 : i32
    %1 = arith.extui %0 : i1 to i32
    %c0_i32_0 = arith.constant 0 : i32
    %2 = arith.cmpi ne, %1, %c0_i32_0 : i32
    scf.if %2 {
      %cst_87 = arith.constant 0.000000e+00 : f32
      %98 = vector.broadcast %cst_87 : f32 to vector<2x128xf32>
      %c0_88 = arith.constant 0 : index
      %c0_89 = arith.constant 0 : index
      %99 = vector.load %arg8[%c0_88, %c0_89] : memref<2x128xf32, #tpu.memory_space<vmem>>, vector<2x128xf32>
      tpu.vector_store %arg8[%c0_88, %c0_89], %98 {strides = array<i32>} : memref<2x128xf32, #tpu.memory_space<vmem>>, vector<2x128xf32>,
    } else {
    }
    %c0 = arith.constant 0 : index
    %c0_1 = arith.constant 0 : index
    %3 = vector.load %arg8[%c0, %c0_1] : memref<2x128xf32, #tpu.memory_space<vmem>>, vector<2x128xf32>
    %c0_2 = arith.constant 0 : index
    %c0_3 = arith.constant 0 : index
    %c0_4 = arith.constant 0 : index
    %c0_5 = arith.constant 0 : index
    %4 = vector.load %arg4[%c0_2, %c0_3, %c0_4, %c0_5] : memref<1x4x6x64xbf16, #tpu.memory_space<vmem>>, vector<1x1x2x64xbf16>
    %5 = vector.shape_cast %4 : vector<1x1x2x64xbf16> to vector<2x64xbf16>
    %c9_i32 = arith.constant 9 : i32
    %6 = arith.muli %arg3, %c9_i32 : i32
    %c0_i32_6 = arith.constant 0 : i32
    %7 = arith.addi %6, %c0_i32_6 : i32
    %c0_i32_7 = arith.constant 0 : i32
    %8 = arith.addi %7, %c0_i32_7 : i32
    %9 = arith.index_cast %8 : i32 to index
    %c0_8 = arith.constant 0 : index
    %c0_9 = arith.constant 0 : index
    %10 = vector.load %arg5[%9, %c0_8, %c0_9] : memref<27x64x128xbf16, #tpu.memory_space<vmem>>, vector<1x64x128xbf16>
    %11 = vector.shape_cast %10 : vector<1x64x128xbf16> to vector<64x128xbf16>
    %cst = arith.constant dense<0.000000e+00> : vector<2x128xf32>
    %12 = tpu.matmul %5, %11, %cst {dimension_numbers = #tpu.dot_dimension_numbers<[1], [0], [0], [1], [0, 0, 1, 1], [], []>} : vector<2x64xbf16>, vector<64x128xbf16>, vector<2x128xf32> -> vector<2x128xf32>
    %13 = arith.addf %3, %12 : vector<2x128xf32>
    %c0_10 = arith.constant 0 : index
    %c1 = arith.constant 1 : index
    %c0_11 = arith.constant 0 : index
    %c0_12 = arith.constant 0 : index
    %14 = vector.load %arg4[%c0_10, %c1, %c0_11, %c0_12] : memref<1x4x6x64xbf16, #tpu.memory_space<vmem>>, vector<1x1x2x64xbf16>
    %15 = vector.shape_cast %14 : vector<1x1x2x64xbf16> to vector<2x64xbf16>
    %c9_i32_13 = arith.constant 9 : i32
    %16 = arith.muli %arg3, %c9_i32_13 : i32
    %c0_i32_14 = arith.constant 0 : i32
    %17 = arith.addi %16, %c0_i32_14 : i32
    %c1_i32 = arith.constant 1 : i32
    %18 = arith.addi %17, %c1_i32 : i32
    %19 = arith.index_cast %18 : i32 to index
    %c0_15 = arith.constant 0 : index
    %c0_16 = arith.constant 0 : index
    %20 = vector.load %arg5[%19, %c0_15, %c0_16] : memref<27x64x128xbf16, #tpu.memory_space<vmem>>, vector<1x64x128xbf16>
    %21 = vector.shape_cast %20 : vector<1x64x128xbf16> to vector<64x128xbf16>
    %cst_17 = arith.constant dense<0.000000e+00> : vector<2x128xf32>
    %22 = tpu.matmul %15, %21, %cst_17 {dimension_numbers = #tpu.dot_dimension_numbers<[1], [0], [0], [1], [0, 0, 1, 1], [], []>} : vector<2x64xbf16>, vector<64x128xbf16>, vector<2x128xf32> -> vector<2x128xf32>
    %23 = arith.addf %13, %22 : vector<2x128xf32>
    %c0_18 = arith.constant 0 : index
    %c0_19 = arith.constant 0 : index
    %c1_20 = arith.constant 1 : index
    %c0_21 = arith.constant 0 : index
    %24 = vector.load %arg4[%c0_18, %c0_19, %c1_20, %c0_21] : memref<1x4x6x64xbf16, #tpu.memory_space<vmem>>, vector<1x1x2x64xbf16>
    %25 = vector.shape_cast %24 : vector<1x1x2x64xbf16> to vector<2x64xbf16>
    %c9_i32_22 = arith.constant 9 : i32
    %26 = arith.muli %arg3, %c9_i32_22 : i32
    %c0_i32_23 = arith.constant 0 : i32
    %27 = arith.addi %26, %c0_i32_23 : i32
    %c2_i32 = arith.constant 2 : i32
    %28 = arith.addi %27, %c2_i32 : i32
    %29 = arith.index_cast %28 : i32 to index
    %c0_24 = arith.constant 0 : index
    %c0_25 = arith.constant 0 : index
    %30 = vector.load %arg5[%29, %c0_24, %c0_25] : memref<27x64x128xbf16, #tpu.memory_space<vmem>>, vector<1x64x128xbf16>
    %31 = vector.shape_cast %30 : vector<1x64x128xbf16> to vector<64x128xbf16>
    %cst_26 = arith.constant dense<0.000000e+00> : vector<2x128xf32>
    %32 = tpu.matmul %25, %31, %cst_26 {dimension_numbers = #tpu.dot_dimension_numbers<[1], [0], [0], [1], [0, 0, 1, 1], [], []>} : vector<2x64xbf16>, vector<64x128xbf16>, vector<2x128xf32> -> vector<2x128xf32>
    %33 = arith.addf %23, %32 : vector<2x128xf32>
    %c0_27 = arith.constant 0 : index
    %c2 = arith.constant 2 : index
    %c0_28 = arith.constant 0 : index
    %c0_29 = arith.constant 0 : index
    %34 = vector.load %arg4[%c0_27, %c2, %c0_28, %c0_29] : memref<1x4x6x64xbf16, #tpu.memory_space<vmem>>, vector<1x1x2x64xbf16>
    %35 = vector.shape_cast %34 : vector<1x1x2x64xbf16> to vector<2x64xbf16>
    %c9_i32_30 = arith.constant 9 : i32
    %36 = arith.muli %arg3, %c9_i32_30 : i32
    %c3_i32 = arith.constant 3 : i32
    %37 = arith.addi %36, %c3_i32 : i32
    %c0_i32_31 = arith.constant 0 : i32
    %38 = arith.addi %37, %c0_i32_31 : i32
    %39 = arith.index_cast %38 : i32 to index
    %c0_32 = arith.constant 0 : index
    %c0_33 = arith.constant 0 : index
    %40 = vector.load %arg5[%39, %c0_32, %c0_33] : memref<27x64x128xbf16, #tpu.memory_space<vmem>>, vector<1x64x128xbf16>
    %41 = vector.shape_cast %40 : vector<1x64x128xbf16> to vector<64x128xbf16>
    %cst_34 = arith.constant dense<0.000000e+00> : vector<2x128xf32>
    %42 = tpu.matmul %35, %41, %cst_34 {dimension_numbers = #tpu.dot_dimension_numbers<[1], [0], [0], [1], [0, 0, 1, 1], [], []>} : vector<2x64xbf16>, vector<64x128xbf16>, vector<2x128xf32> -> vector<2x128xf32>
    %43 = arith.addf %33, %42 : vector<2x128xf32>
    %c0_35 = arith.constant 0 : index
    %c3 = arith.constant 3 : index
    %c0_36 = arith.constant 0 : index
    %c0_37 = arith.constant 0 : index
    %44 = vector.load %arg4[%c0_35, %c3, %c0_36, %c0_37] : memref<1x4x6x64xbf16, #tpu.memory_space<vmem>>, vector<1x1x2x64xbf16>
    %45 = vector.shape_cast %44 : vector<1x1x2x64xbf16> to vector<2x64xbf16>
    %c9_i32_38 = arith.constant 9 : i32
    %46 = arith.muli %arg3, %c9_i32_38 : i32
    %c3_i32_39 = arith.constant 3 : i32
    %47 = arith.addi %46, %c3_i32_39 : i32
    %c1_i32_40 = arith.constant 1 : i32
    %48 = arith.addi %47, %c1_i32_40 : i32
    %49 = arith.index_cast %48 : i32 to index
    %c0_41 = arith.constant 0 : index
    %c0_42 = arith.constant 0 : index
    %50 = vector.load %arg5[%49, %c0_41, %c0_42] : memref<27x64x128xbf16, #tpu.memory_space<vmem>>, vector<1x64x128xbf16>
    %51 = vector.shape_cast %50 : vector<1x64x128xbf16> to vector<64x128xbf16>
    %cst_43 = arith.constant dense<0.000000e+00> : vector<2x128xf32>
    %52 = tpu.matmul %45, %51, %cst_43 {dimension_numbers = #tpu.dot_dimension_numbers<[1], [0], [0], [1], [0, 0, 1, 1], [], []>} : vector<2x64xbf16>, vector<64x128xbf16>, vector<2x128xf32> -> vector<2x128xf32>
    %53 = arith.addf %43, %52 : vector<2x128xf32>
    %c0_44 = arith.constant 0 : index
    %c2_45 = arith.constant 2 : index
    %c1_46 = arith.constant 1 : index
    %c0_47 = arith.constant 0 : index
    %54 = vector.load %arg4[%c0_44, %c2_45, %c1_46, %c0_47] : memref<1x4x6x64xbf16, #tpu.memory_space<vmem>>, vector<1x1x2x64xbf16>
    %55 = vector.shape_cast %54 : vector<1x1x2x64xbf16> to vector<2x64xbf16>
    %c9_i32_48 = arith.constant 9 : i32
    %56 = arith.muli %arg3, %c9_i32_48 : i32
    %c3_i32_49 = arith.constant 3 : i32
    %57 = arith.addi %56, %c3_i32_49 : i32
    %c2_i32_50 = arith.constant 2 : i32
    %58 = arith.addi %57, %c2_i32_50 : i32
    %59 = arith.index_cast %58 : i32 to index
    %c0_51 = arith.constant 0 : index
    %c0_52 = arith.constant 0 : index
    %60 = vector.load %arg5[%59, %c0_51, %c0_52] : memref<27x64x128xbf16, #tpu.memory_space<vmem>>, vector<1x64x128xbf16>
    %61 = vector.shape_cast %60 : vector<1x64x128xbf16> to vector<64x128xbf16>
    %cst_53 = arith.constant dense<0.000000e+00> : vector<2x128xf32>
    %62 = tpu.matmul %55, %61, %cst_53 {dimension_numbers = #tpu.dot_dimension_numbers<[1], [0], [0], [1], [0, 0, 1, 1], [], []>} : vector<2x64xbf16>, vector<64x128xbf16>, vector<2x128xf32> -> vector<2x128xf32>
    %63 = arith.addf %53, %62 : vector<2x128xf32>
    %c0_54 = arith.constant 0 : index
    %c0_55 = arith.constant 0 : index
    %c2_56 = arith.constant 2 : index
    %c0_57 = arith.constant 0 : index
    %64 = vector.load %arg4[%c0_54, %c0_55, %c2_56, %c0_57] : memref<1x4x6x64xbf16, #tpu.memory_space<vmem>>, vector<1x1x2x64xbf16>
    %65 = vector.shape_cast %64 : vector<1x1x2x64xbf16> to vector<2x64xbf16>
    %c9_i32_58 = arith.constant 9 : i32
    %66 = arith.muli %arg3, %c9_i32_58 : i32
    %c6_i32 = arith.constant 6 : i32
    %67 = arith.addi %66, %c6_i32 : i32
    %c0_i32_59 = arith.constant 0 : i32
    %68 = arith.addi %67, %c0_i32_59 : i32
    %69 = arith.index_cast %68 : i32 to index
    %c0_60 = arith.constant 0 : index
    %c0_61 = arith.constant 0 : index
    %70 = vector.load %arg5[%69, %c0_60, %c0_61] : memref<27x64x128xbf16, #tpu.memory_space<vmem>>, vector<1x64x128xbf16>
    %71 = vector.shape_cast %70 : vector<1x64x128xbf16> to vector<64x128xbf16>
    %cst_62 = arith.constant dense<0.000000e+00> : vector<2x128xf32>
    %72 = tpu.matmul %65, %71, %cst_62 {dimension_numbers = #tpu.dot_dimension_numbers<[1], [0], [0], [1], [0, 0, 1, 1], [], []>} : vector<2x64xbf16>, vector<64x128xbf16>, vector<2x128xf32> -> vector<2x128xf32>
    %73 = arith.addf %63, %72 : vector<2x128xf32>
    %c0_63 = arith.constant 0 : index
    %c1_64 = arith.constant 1 : index
    %c2_65 = arith.constant 2 : index
    %c0_66 = arith.constant 0 : index
    %74 = vector.load %arg4[%c0_63, %c1_64, %c2_65, %c0_66] : memref<1x4x6x64xbf16, #tpu.memory_space<vmem>>, vector<1x1x2x64xbf16>
    %75 = vector.shape_cast %74 : vector<1x1x2x64xbf16> to vector<2x64xbf16>
    %c9_i32_67 = arith.constant 9 : i32
    %76 = arith.muli %arg3, %c9_i32_67 : i32
    %c6_i32_68 = arith.constant 6 : i32
    %77 = arith.addi %76, %c6_i32_68 : i32
    %c1_i32_69 = arith.constant 1 : i32
    %78 = arith.addi %77, %c1_i32_69 : i32
    %79 = arith.index_cast %78 : i32 to index
    %c0_70 = arith.constant 0 : index
    %c0_71 = arith.constant 0 : index
    %80 = vector.load %arg5[%79, %c0_70, %c0_71] : memref<27x64x128xbf16, #tpu.memory_space<vmem>>, vector<1x64x128xbf16>
    %81 = vector.shape_cast %80 : vector<1x64x128xbf16> to vector<64x128xbf16>
    %cst_72 = arith.constant dense<0.000000e+00> : vector<2x128xf32>
    %82 = tpu.matmul %75, %81, %cst_72 {dimension_numbers = #tpu.dot_dimension_numbers<[1], [0], [0], [1], [0, 0, 1, 1], [], []>} : vector<2x64xbf16>, vector<64x128xbf16>, vector<2x128xf32> -> vector<2x128xf32>
    %83 = arith.addf %73, %82 : vector<2x128xf32>
    %c0_73 = arith.constant 0 : index
    %c0_74 = arith.constant 0 : index
    %c3_75 = arith.constant 3 : index
    %c0_76 = arith.constant 0 : index
    %84 = vector.load %arg4[%c0_73, %c0_74, %c3_75, %c0_76] : memref<1x4x6x64xbf16, #tpu.memory_space<vmem>>, vector<1x1x2x64xbf16>
    %85 = vector.shape_cast %84 : vector<1x1x2x64xbf16> to vector<2x64xbf16>
    %c9_i32_77 = arith.constant 9 : i32
    %86 = arith.muli %arg3, %c9_i32_77 : i32
    %c6_i32_78 = arith.constant 6 : i32
    %87 = arith.addi %86, %c6_i32_78 : i32
    %c2_i32_79 = arith.constant 2 : i32
    %88 = arith.addi %87, %c2_i32_79 : i32
    %89 = arith.index_cast %88 : i32 to index
    %c0_80 = arith.constant 0 : index
    %c0_81 = arith.constant 0 : index
    %90 = vector.load %arg5[%89, %c0_80, %c0_81] : memref<27x64x128xbf16, #tpu.memory_space<vmem>>, vector<1x64x128xbf16>
    %91 = vector.shape_cast %90 : vector<1x64x128xbf16> to vector<64x128xbf16>
    %cst_82 = arith.constant dense<0.000000e+00> : vector<2x128xf32>
    %92 = tpu.matmul %85, %91, %cst_82 {dimension_numbers = #tpu.dot_dimension_numbers<[1], [0], [0], [1], [0, 0, 1, 1], [], []>} : vector<2x64xbf16>, vector<64x128xbf16>, vector<2x128xf32> -> vector<2x128xf32>
    %93 = arith.addf %83, %92 : vector<2x128xf32>
    %c0_83 = arith.constant 0 : index
    %c0_84 = arith.constant 0 : index
    %94 = vector.load %arg8[%c0_83, %c0_84] : memref<2x128xf32, #tpu.memory_space<vmem>>, vector<2x128xf32>
    tpu.vector_store %arg8[%c0_83, %c0_84], %93 {strides = array<i32>} : memref<2x128xf32, #tpu.memory_space<vmem>>, vector<2x128xf32>,
    %c2_i32_85 = arith.constant 2 : i32
    %95 = arith.cmpi eq, %arg3, %c2_i32_85 : i32
    %96 = arith.extui %95 : i1 to i32
    %c0_i32_86 = arith.constant 0 : i32
    %97 = arith.cmpi ne, %96, %c0_i32_86 : i32
    scf.if %97 {
      %c0_87 = arith.constant 0 : index
      %c0_88 = arith.constant 0 : index
      %98 = vector.load %arg8[%c0_87, %c0_88] : memref<2x128xf32, #tpu.memory_space<vmem>>, vector<2x128xf32>
      %c0_89 = arith.constant 0 : index
      %c0_90 = arith.constant 0 : index
      %99 = vector.load %arg6[%c0_89, %c0_90] : memref<1x128xf32, #tpu.memory_space<vmem>>, vector<1x128xf32>
      %100 = vector.broadcast %99 : vector<1x128xf32> to vector<2x128xf32>
      %101 = arith.addf %98, %100 : vector<2x128xf32>
      %cst_91 = arith.constant 0.000000e+00 : f32
      %102 = vector.broadcast %cst_91 : f32 to vector<2x128xf32>
      %103 = arith.maximumf %101, %102 : vector<2x128xf32>
      %104 = arith.truncf %103 : vector<2x128xf32> to vector<2x128xbf16>
      %c0_92 = arith.constant 0 : index
      %c0_93 = arith.constant 0 : index
      %c0_94 = arith.constant 0 : index
      %105 = vector.load %arg7[%c0_92, %c0_93, %c0_94] : memref<1x2x128xbf16, #tpu.memory_space<vmem>>, vector<1x2x128xbf16>
      %106 = vector.shape_cast %105 : vector<1x2x128xbf16> to vector<2x128xbf16>
      %107 = vector.shape_cast %104 : vector<2x128xbf16> to vector<1x2x128xbf16>
      tpu.vector_store %arg7[%c0_92, %c0_93, %c0_94], %107 {strides = array<i32>} : memref<1x2x128xbf16, #tpu.memory_space<vmem>>, vector<1x2x128xbf16>,
    } else {
    }
    return
  }
  func.func @transform_0(%arg0: i32, %arg1: i32, %arg2: i32, %arg3: i32) -> (i32, i32, i32, i32) {
    %c3_i32 = arith.constant 3 : i32
    %0 = arith.muli %arg0, %c3_i32 : i32
    %c2_i32 = arith.constant 2 : i32
    %1 = arith.muli %c2_i32, %arg2 : i32
    %2 = arith.addi %0, %1 : i32
    %3 = arith.addi %2, %arg3 : i32
    %c0_i32 = arith.constant 0 : i32
    %c0_i32_0 = arith.constant 0 : i32
    %c0_i32_1 = arith.constant 0 : i32
    %c0_i32_2 = arith.constant 0 : i32
    return %3, %c0_i32, %c0_i32_0, %c0_i32_1 : i32, i32, i32, i32
  }
  func.func @transform_1(%arg0: i32, %arg1: i32, %arg2: i32, %arg3: i32) -> (i32, i32, i32) {
    %c0_i32 = arith.constant 0 : i32
    %c0_i32_0 = arith.constant 0 : i32
    %c0_i32_1 = arith.constant 0 : i32
    return %c0_i32, %c0_i32_0, %arg1 : i32, i32, i32
  }
  func.func @transform_2(%arg0: i32, %arg1: i32, %arg2: i32, %arg3: i32) -> (i32, i32) {
    %c0_i32 = arith.constant 0 : i32
    %c0_i32_0 = arith.constant 0 : i32
    return %c0_i32, %arg1 : i32, i32
  }
  func.func @transform_3(%arg0: i32, %arg1: i32, %arg2: i32, %arg3: i32) -> (i32, i32, i32) {
    %c1_i32 = arith.constant 1 : i32
    %0 = arith.muli %arg0, %c1_i32 : i32
    %1 = arith.addi %0, %arg2 : i32
    %c0_i32 = arith.constant 0 : i32
    %c0_i32_0 = arith.constant 0 : i32
    return %1, %c0_i32, %arg1 : i32, i32, i32
  }
}

module attributes {stable_mosaic.version = 11 : i64} {
  func.func @_gap_linear_kernel(%arg0: i32, %arg1: memref<2x1x128xbf16, #tpu.memory_space<vmem>>, %arg2: memref<128x128xf32, #tpu.memory_space<vmem>>, %arg3: memref<1x128xf32, #tpu.memory_space<vmem>>, %arg4: memref<2x128xf32, #tpu.memory_space<vmem>>) attributes {dimension_semantics = [#tpu.dimension_semantics<arbitrary>], iteration_bounds = array<i64: 1>, scalar_prefetch = 0 : i64, scratch_operands = 0 : i64, tpu.core_type = #tpu.core_type<tc>, window_params = [{pipeline_mode = #tpu.pipeline_mode<synchronous>, transform_indices = @transform_0, window_bounds = array<i64: 2, 1, 128>}, {pipeline_mode = #tpu.pipeline_mode<synchronous>, transform_indices = @transform_1, window_bounds = array<i64: 128, 128>}, {pipeline_mode = #tpu.pipeline_mode<synchronous>, transform_indices = @transform_2, window_bounds = array<i64: 1, 128>}, {pipeline_mode = #tpu.pipeline_mode<synchronous>, transform_indices = @transform_3, window_bounds = array<i64: 2, 128>}]} {
    %c0 = arith.constant 0 : index
    %c0_0 = arith.constant 0 : index
    %c0_1 = arith.constant 0 : index
    %0 = vector.load %arg1[%c0, %c0_0, %c0_1] : memref<2x1x128xbf16, #tpu.memory_space<vmem>>, vector<2x1x128xbf16>
    %1 = arith.extf %0 : vector<2x1x128xbf16> to vector<2x1x128xf32>
    %cst = arith.constant dense<0.000000e+00> : vector<2x128xf32>
    %2 = vector.multi_reduction <add>, %1, %cst [1] : vector<2x1x128xf32> to vector<2x128xf32>
    %cst_2 = arith.constant 1.000000e+00 : f32
    %3 = vector.broadcast %cst_2 : f32 to vector<2x128xf32>
    %4 = arith.divf %2, %3 : vector<2x128xf32>
    %c0_3 = arith.constant 0 : index
    %c0_4 = arith.constant 0 : index
    %5 = vector.load %arg2[%c0_3, %c0_4] : memref<128x128xf32, #tpu.memory_space<vmem>>, vector<128x128xf32>
    %cst_5 = arith.constant dense<0.000000e+00> : vector<2x128xf32>
    %6 = tpu.matmul %4, %5, %cst_5 {dimension_numbers = #tpu.dot_dimension_numbers<[1], [0], [0], [1], [0, 0, 1, 1], [], []>} : vector<2x128xf32>, vector<128x128xf32>, vector<2x128xf32> -> vector<2x128xf32>
    %c0_6 = arith.constant 0 : index
    %c0_7 = arith.constant 0 : index
    %7 = vector.load %arg3[%c0_6, %c0_7] : memref<1x128xf32, #tpu.memory_space<vmem>>, vector<1x128xf32>
    %8 = vector.broadcast %7 : vector<1x128xf32> to vector<2x128xf32>
    %9 = arith.addf %6, %8 : vector<2x128xf32>
    %c0_8 = arith.constant 0 : index
    %c0_9 = arith.constant 0 : index
    %10 = vector.load %arg4[%c0_8, %c0_9] : memref<2x128xf32, #tpu.memory_space<vmem>>, vector<2x128xf32>
    tpu.vector_store %arg4[%c0_8, %c0_9], %9 {strides = array<i32>} : memref<2x128xf32, #tpu.memory_space<vmem>>, vector<2x128xf32>,
    return
  }
  func.func @transform_0(%arg0: i32) -> (i32, i32, i32) {
    %c0_i32 = arith.constant 0 : i32
    %c0_i32_0 = arith.constant 0 : i32
    %c0_i32_1 = arith.constant 0 : i32
    %c0_i32_2 = arith.constant 0 : i32
    return %c0_i32, %c0_i32_0, %c0_i32_1 : i32, i32, i32
  }
  func.func @transform_1(%arg0: i32) -> (i32, i32) {
    %c0_i32 = arith.constant 0 : i32
    %c0_i32_0 = arith.constant 0 : i32
    %c0_i32_1 = arith.constant 0 : i32
    return %c0_i32, %c0_i32_0 : i32, i32
  }
  func.func @transform_2(%arg0: i32) -> (i32, i32) {
    %c0_i32 = arith.constant 0 : i32
    %c0_i32_0 = arith.constant 0 : i32
    %c0_i32_1 = arith.constant 0 : i32
    return %c0_i32, %c0_i32_0 : i32, i32
  }
  func.func @transform_3(%arg0: i32) -> (i32, i32) {
    %c0_i32 = arith.constant 0 : i32
    %c0_i32_0 = arith.constant 0 : i32
    %c0_i32_1 = arith.constant 0 : i32
    return %c0_i32, %c0_i32_0 : i32, i32
  }
}

</mosaic_0001>

<bundles_post_ra>
// kernel: _repvgg_forward_impl.7
= control target key start
LH: loop header
LB: loop body
LE: loop exit
PB: predicated region body
PF: predicated region fallthrough
CT: control target
= control target key end

     0   :  { %s2006_s12 = smov 0   ;;  %s2008_s13 = smov 0   ;;  %s2281_s0 = inlined_call_operand.vmem [shape: bf16[36,4,90,4], index: 0, kind: input, shape index: {}]   ;;  %s2282_s1 = inlined_call_operand.vmem [shape: bf16[27,4,128], index: 1, kind: input, shape index: {}]   ;;  %s2283_s2 = inlined_call_operand.vmem [shape: f32[1,128], index: 2, kind: input, shape index: {}]   ;;  %s2284_s3 = inlined_call_operand.vmem [shape: bf16[16,72,128], index: 3, kind: output, shape index: {}]  }
   0x1   :  { %s2010_s14 = smov 0   ;;  %s2012_s15 = smov 0  }
   0x2   :  { %s2014_s16 = smov 0   ;;  %s2016_s17 = smov 0  }
   0x3   :  { %s2018_s18 = smov 0  }
   0x4 LB: > { %s28_s19 = sadd.s32 1, %s1971_s15  ;;  %s31_s20 = sadd.s32 1, %s1975_s16  ;;  %s1983_s18 = sphi %s2018_s18, %s13_s18   ;;  %s1979_s17 = sphi %s2016_s17, %s2290_s17   ;;  %s1975_s16 = sphi %s2014_s16, %s2289_s16   ;;  %s1971_s15 = sphi %s2012_s15, %s2288_s15   ;;  %s1967_s14 = sphi %s2010_s14, %s2287_s14   ;;  %s1963_s13 = sphi %s2008_s13, %s2286_s13   ;;  %s1959_s12 = sphi %s2006_s12, %s2285_s12  }
   0x5   : > { %p29_p0 = scmp.ge.s32.totalorder %s28_s19, 3  ;;  %p1546_p1 = scmp.ge.s32.totalorder %s1983_s18, 1 }
   0x6   : > { %p202_p2 = scmp.lt.s32.totalorder %s1983_s18, 49  ;;  %s39_s21 = sadd.s32 1, %s1979_s17 }
   0x7   : > { %s2292_s19 = smov (%p29_p0, %s28_s19), 0  ;;  %s2294_s20 = smov (!%p29_p0, %s31_s20), %s1975_s16 }
   0x8   : > { %p203_p3 = pnand %p1546_p1, %p202_p2  ;;  %p33_p4 = scmp.ge.s32.totalorder %s2294_s20, 8 }
   0x9   : > { %s242_s22 = smul.u32 (!%p203_p3), 18, %s1967_s14  ;;  %s1547_s23 = sshll.u32 (!%p203_p3), %s1963_s13, 1 }
   0xa   : > { %s2296_s20 = smov (%p33_p4, %s2294_s20), 0  ;;  %s2298_s21 = smov (!%p33_p4, %s39_s21), %s1979_s17 }
   0xb   : > { %p41_p5 = scmp.ge.s32.totalorder %s2298_s21, 2  ;;  %206 = sbr.rel (%p203_p3) target bundleno = 371 (0x173), region = 32 }
   0xc   : > { %s1549_s24 = sshll.u32 (!%p203_p3), %s1967_s14, 3  ;;  %s244_s25 = sadd.s32 (!%p203_p3), %s1547_s23, %s242_s22 }
   0xd   : > { %s2300_s21 = smov (%p41_p5, %s2298_s21), 0  ;;  %s263_s26 = sadd.s32 (!%p203_p3), %s1963_s13, %s1549_s24 }
   0xe   : > { %s245_s27 = sadd.s32 (!%p203_p3), %s1959_s12, %s244_s25  ;;  %p264_p6 = scmp.lt.s32.totalorder (!%p203_p3), %s263_s26, 15 }
   0xf   : > { %p246_p7 = scmp.lt.s32.totalorder (!%p203_p3), %s245_s27, 35  ;;  %p1551_p8 = scmp.ne.s32.totalorder (!%p203_p3), %s1959_s12, 0 }
  0x10   : > { %s2302_s26 = smov (!%p264_p6, %s263_s26), 15 }
  0x11   : > { %s2304_s27 = smov (!%p246_p7, %s245_s27), 35  ;;  %s1867_s28 = smul.u32 36, %s2302_s26 }
  0x12   : > { %s1866_s29 = smul.u32 192, %s2304_s27 }
  0x13   : > { %s2054_s5 = scalar_lea.vmem %s2284_s3, %s1867_s28  ;;  %278 = sbr.rel (%p1551_p8) target bundleno = 34 (0x22), region = 36 }
  0x14   : > { %s2059_s8 = scalar_lea.vmem %s2281_s0, %s1866_s29 }
  0x18   : > { %v1985_v0 = vmov 0.0  }
  0x19   : > { %279 = vst [vmem:[#allocation2 + $0x30] sm:$0xff] %v1985_v0 }
  0x1a   : > { %280 = vst [vmem:[#allocation2] sm:$0xff] %v1985_v0 }
  0x1b   : > { %281 = vst [vmem:[#allocation2 + $0x18] sm:$0xff] %v1985_v0 }
  0x1c   : > { %282 = vst [vmem:[#allocation2 + $0x10] sm:$0xff] %v1985_v0 }
  0x1d   : > { %283 = vst [vmem:[#allocation2 + $0x20] sm:$0xff] %v1985_v0 }
  0x1e   : > { %284 = vst [vmem:[#allocation2 + $0x28] sm:$0xff] %v1985_v0 }
  0x1f   : > { %285 = vst [vmem:[#allocation2 + $0x40] sm:$0xff] %v1985_v0 }
  0x20   : > { %286 = vst [vmem:[#allocation2 + $0x38] sm:$0xff] %v1985_v0 }
  0x21   : > { %287 = vst [vmem:[#allocation2 + $0x8] sm:$0xff] %v1985_v0 }
  0x22 PF: > { %s1808_s9 = smul.u32 18, %s1959_s12  ;;  %vm349_vm0 = vcmask 1041408   ;;  %v305_v1 = vld [vmem:[%s2059_s8 + $0x20] sm:$0xf]  ;;  %v1805_v2 = vld [vmem:[%s2059_s8 + $0x8] sm:$0xff]  ;;  %v1806_v8 = vld [vmem:[%s2059_s8 + $0x10] sm:$0xff] }
  0x23   : > { %v327_v3 = vunpack.c.l.b16 %v305_v1  ;;  %vm333_vm1 = vcmask 31744   ;;  %v1804_v14 = vld [vmem:[%s2059_s8] sm:$0xff]  ;;  %v1807_v25 = vld [vmem:[%s2059_s8 + $0x18] sm:$0xff]  ;;  %v1809_v26 = vld [vmem:[%s2059_s8 + $0x30] sm:$0xff]  ;;  %vm531_vm2 = vsmask.f32 7424 }
  0x24   : > { %s2067_s13 = scalar_lea.vmem %s2282_s1, %s1808_s9  ;;  %v1818_v27 = vld [vmem:[%s2059_s8 + $0x60] sm:$0xff]  ;;  %v1822_v29 = vld [vmem:[%s2059_s8 + $0x90] sm:$0xff]  ;;  %v1814_v30 = vld [vmem:[%s2059_s8 + $0x8] sm:$0xff]  ;;  %vm1247_vm3 = vcmask 1046528   ;;  %p1801_p9 = scmp.ne.s32.totalorder %s1959_s12, 2 }
  0x25   : > { %v309_v4 = vld [vmem:[%s2067_s13] sm:$0x3]  ;;  %v1607_v5 = vld [vmem:[%s2067_s13 + $0x4] sm:$0x3]  ;;  %v1584_v6 = vld [vmem:[%s2067_s13 + $0x2] sm:$0x3]  ;;  %v332_v12 = vpack.c.b16 %v327_v3, %v327_v3 }
  0x26   : > { %v351_v7 = vsel %vm349_vm0, %v309_v4, 0  ;;  %v587_v9 = vsel %vm349_vm0, %v1607_v5, 0  ;;  %v448_v10 = vsel %vm349_vm0, %v1584_v6, 0  ;;  %v1643_v11 = vld [vmem:[%s2067_s13 + $0x6] sm:$0x3]  ;;  %v540_v34 = vshll.u32 %v1814_v30, 16 }
  0x27   : > { %1863 = vmatpush.bf16.msra.mxu1 %v351_v7  ;;  %1864 = vmatpush.bf16.msra.mxu2 %v351_v7  ;;  %v1675_v13 = vld [vmem:[%s2067_s13 + $0x8] sm:$0x3]  ;;  %v684_v16 = vsel %vm349_vm0, %v1643_v11, 0  ;;  %v1735_v17 = vld [vmem:[%s2067_s13 + $0xc] sm:$0x3]  ;;  %v1813_v28 = vld [vmem:[%s2059_s8] sm:$0xff] }
  0x28   : > { %1865 = vmatpush.bf16.msra.mxu3 %v351_v7  ;;  %v781_v15 = vsel %vm349_vm0, %v1675_v13, 0  ;;  %360 = vmatpush.bf16.msra.mxu0 %v351_v7  ;;  %v1768_v18 = vld [vmem:[%s2067_s13 + $0xe] sm:$0x3]  ;;  %v1057_v19 = vsel %vm349_vm0, %v1735_v17, 0  ;;  %v1708_v21 = vld [vmem:[%s2067_s13 + $0xa] sm:$0x3] }
  0x29   : > { %v1195_v20 = vsel %vm349_vm0, %v1768_v18, 0  ;;  %v919_v22 = vsel %vm349_vm0, %v1708_v21, 0  ;;  %v1795_v23 = vld [vmem:[%s2067_s13 + $0x10] sm:$0x3]  ;;  %v535_v31 = vshll.u32 %v1813_v28, 16  ;;  %v533_v32 = vshrl.u32 %v1813_v28, 16 }
  0x2a   : > { %1570 = vmatmul.msk.bf16.vlgmr.msra.gmra.mxu1 %vm333_vm1, %v1805_v2  ;;  %1571 = vmatmul.msk.bf16.vlgmr.msra.gmra.mxu2 %vm333_vm1, %v1806_v8  ;;  %v1273_v24 = vsel %vm349_vm0, %v1795_v23, 0  ;;  %v542_v36 = vrot.slane %v540_v34, 1  ;;  %v1810_v37 = vld [vmem:[%s2059_s8 + $0x38] sm:$0xff]  ;;  %v1819_v39 = vld [vmem:[%s2059_s8 + $0x68] sm:$0xff]  ;;  %v1815_v41 = vld [vmem:[%s2059_s8 + $0x10] sm:$0xff]  ;;  %v544_v42 = vshrl.u32 %v1814_v30, 16 }
  0x2b   : > { %596 = vmatpush.bf16.msrb.mxu2 %v587_v9  ;;  %457 = vmatpush.bf16.msrb.mxu1 %v448_v10  ;;  %v537_v33 = vrot.slane %v535_v31, 1  ;;  %v1823_v40 = vld [vmem:[%s2059_s8 + $0x98] sm:$0xff]  ;;  %v548_v43 = vshll.u32 %v1815_v41, 16  ;;  %v1811_v46 = vld [vmem:[%s2059_s8 + $0x40] sm:$0xff]  ;;  %v1820_v48 = vld [vmem:[%s2059_s8 + $0x70] sm:$0xff]  ;;  %v552_v51 = vshrl.u32 %v1815_v41, 16 }
  0x2c   : > { %1573 = vmatmul.msk.bf16.vlgmr.msra.gmra.mxu3 %vm333_vm1, %v332_v12  ;;  %790 = vmatpush.bf16.msrb.mxu0 %v781_v15  ;;  %v546_v44 = vor.u32 %v544_v42, %v542_v36  ;;  %v1824_v49 = vld [vmem:[%s2059_s8 + $0xa0] sm:$0xff]  ;;  %v1816_v50 = vld [vmem:[%s2059_s8 + $0x18] sm:$0xff]  ;;  %v1812_v55 = vld [vmem:[%s2059_s8 + $0x48] sm:$0xff] }
  0x2d   : > { %1569 = vmatmul.msk.bf16.vlgmr.msra.gmra.mxu0 %vm333_vm1, %v1804_v14  ;;  %693 = vmatpush.bf16.msrb.mxu3 %v684_v16  ;;  %v538_v35 = vor.u32 %v537_v33, %v533_v32  ;;  %v550_v45 = vrot.slane %v548_v43, 1  ;;  %v556_v52 = vshll.u32 %v1816_v50, 16  ;;  %v1821_v57 = vld [vmem:[%s2059_s8 + $0x78] sm:$0xff]  ;;  %v1825_v58 = vld [vmem:[%s2059_s8 + $0xa8] sm:$0xff]  ;;  %v1626_v59 = vld [vmem:[%s2059_s8 + $0x20] sm:$0xf] }
  0x2e   : > { %v1817_v60 = vld [vmem:[%s2059_s8 + $0x20] sm:$0x10]  ;;  %v1582_v62 = vld [vmem:[%s2059_s8 + $0x50] sm:$0xf]  ;;  %v560_v63 = vshrl.u32 %v1816_v50, 16  ;;  %v1835_v13 = vld [vmem:[%s2059_s8 + $0x34] sm:$0xff] }
  0x2f   : > { %1066 = vmatpush.bf16.msra.mxu2 %v1057_v19  ;;  %928 = vmatpush.bf16.msra.mxu1 %v919_v22  ;;  %v543_v38 = vsel %vm531_vm2, %v538_v35, %v542_v36  ;;  %v551_v47 = vsel %vm531_vm2, %v546_v44, %v550_v45  ;;  %v554_v53 = vor.u32 %v552_v51, %v550_v45  ;;  %v558_v54 = vrot.slane %v556_v52, 1  ;;  %v1641_v1 = vld [vmem:[%s2059_s8 + $0x80] sm:$0xf]  ;;  %v1673_v2 = vld [vmem:[%s2059_s8 + $0xb0] sm:$0xf]  ;;  %v1827_v15 = vld [vmem:[%s2059_s8 + $0x68] sm:$0xff] }
  0x30   : > { %1282 = vmatpush.bf16.msra.mxu0 %v1273_v24  ;;  %v1627_v61 = vor.u32 %v1817_v60, %v1626_v59  ;;  %v426_v3 = vunpack.c.l.b16 %v1582_v62  ;;  %v662_v6 = vunpack.c.l.b16 %v1641_v1  ;;  %v759_v7 = vunpack.c.l.b16 %v1673_v2  ;;  %v1826_v11 = vld [vmem:[%s2059_s8 + $0x60] sm:$0xff]  ;;  %v2158_v50 = vld [vmem:[%s2059_s8 + $0x14] sm:$0xff] }
  0x31   : > { %1204 = vmatpush.bf16.msra.mxu3 %v1195_v20  ;;  %v559_v56 = vsel %vm531_vm2, %v554_v53, %v558_v54  ;;  %v562_v4 = vor.u32 %v560_v63, %v558_v54  ;;  %v1955_v14 = vld [vmem:[%s2059_s8 + $0x4] sm:$0xe]  ;;  %v867_v16 = vshll.u32 %v1826_v11, 16  ;;  %v1836_v17 = vld [vmem:[%s2059_s8 + $0x3c] sm:$0xff]  ;;  %v1143_v18 = vshll.u32 %v1835_v13, 16  ;;  %v1838_v63 = vld [vmem:[%s2059_s8 + $0x4c] sm:$0xff] }
  0x32   : > { %v564_v0 = vshll.u32 %v1627_v61, 16  ;;  %v431_v8 = vpack.c.b16 %v426_v3, %v426_v3  ;;  %v667_v10 = vpack.c.b16 %v662_v6, %v662_v6  ;;  %v764_v12 = vpack.c.b16 %v759_v7, %v759_v7  ;;  %v964_v19 = vld [vmem:[%s2059_s8 + $0x4] sm:$0xff]   ;;  %v1829_v62 = vld [vmem:[%s2059_s8 + $0x78] sm:$0xff] }
  0x33   : > { %v1954_v20 = vld [vmem:[%s2059_s8 + $0x4] sm:$0xf0]  ;;  %v865_v21 = vshrl.u32 %v1826_v11, 16  ;;  %v869_v22 = vrot.slane %v867_v16, 1  ;;  %v872_v23 = vshll.u32 %v1827_v15, 16  ;;  %v1141_v24 = vshrl.u32 %v1835_v13, 16 }
  0x34   : > { %v566_v5 = vrot.slane %v564_v0, 1  ;;  %v1956_v28 = vor.u32 %v1955_v14, %v1954_v20  ;;  %v1005_v41 = vshll.u32 %v964_v19, 16  ;;  %v1837_v42 = vld [vmem:[%s2059_s8 + $0x44] sm:$0xff]  ;;  %v876_v43 = vshrl.u32 %v1827_v15, 16  ;;  %v2173_v6 = vld [vmem:[%s2059_s8 + $0x1c] sm:$0xff] }
  0x35   : > { %v870_v30 = vor.u32 %v869_v22, %v865_v21  ;;  %v874_v31 = vrot.slane %v872_v23, 1  ;;  %v1003_v45 = vshrl.u32 %v964_v19, 16  ;;  %v888_v1 = vshll.u32 %v1829_v62, 16  ;;  %v1830_v19 = vld [vmem:[%s2059_s8 + $0x80] sm:$0x10] }
  0x36   : > { %v567_v9 = vsel %vm531_vm2, %v562_v4, %v566_v5  ;;  %v1248_v34 = vrot.slane %v1956_v28, 1  ;;  %v1018_v3 = vshll.u32 %v2158_v50, 16  ;;  %v1160_v4 = vshrl.u32 %v1837_v42, 16  ;;  %v1787_v22 = vld [vmem:[%s2059_s8 + $0x54] sm:$0xf] }
  0x37   : > { %v878_v51 = vor.u32 %v876_v43, %v874_v31  ;;  %v1253_v13 = vrot.slane %v2173_v6, 1  ;;  %v1839_v23 = vld [vmem:[%s2059_s8 + $0x54] sm:$0x10]  ;;  %v1750_v28 = vld [vmem:[%s2059_s8 + $0x24] sm:$0xf] }
  0x3a   : > { %1572 = vmatmul.msk.bf16.gmra.mxu2 %vm333_vm1, %v1807_v25  ;;  %1601 = vmatmul.msk.bf16.vlgmr.msrb.gmra.mxu1 %vm333_vm1, %v1809_v26  ;;  %v1145_v25 = vrot.slane %v1143_v18, 1  ;;  %v1148_v26 = vshll.u32 %v1836_v17, 16  ;;  %v1727_v18 = vld [vmem:[%s2059_s8 + $0x80] sm:$0xf] }
  0x3c   : > { %1660 = vmatmul.msk.bf16.vlgmr.msrb.gmra.mxu3 %vm333_vm1, %v1818_v27  ;;  %v1831_v27 = vld [vmem:[%s2059_s8 + $0xc] sm:$0xff]  ;;  %v1146_v32 = vor.u32 %v1145_v25, %v1141_v24  ;;  %v1150_v33 = vrot.slane %v1148_v26, 1  ;;  %v1728_v24 = vor.u32 %v1830_v19, %v1727_v18  ;;  %v1788_v25 = vor.u32 %v1839_v23, %v1787_v22 }
  0x3d   : > { %1692 = vmatmul.msk.bf16.vlgmr.msrb.gmra.mxu0 %vm333_vm1, %v1822_v29  ;;  %v568_v29 = vshrl.u32 %v1627_v61, 16  ;;  %v1249_v35 = vrot.slane %v1831_v27, 1  ;;  %v1014_v2 = vshrl.u32 %v1831_v27, 16 }
  0x3f   : > { %v570_v36 = vor.u32 %v568_v29, %v566_v5  ;;  %v1164_v5 = vshll.u32 %v1838_v63, 16  ;;  %v1834_v29 = vld [vmem:[%s2059_s8 + $0x24] sm:$0x10] }
  0x4a   : > { %1602 = vmatmul.msk.bf16.gmra.mxu1 %vm333_vm1, %v1810_v37  ;;  %1628 = vmatmul.msk.bf16.vlgmr.msrb.gmra.mxu2 %vm333_vm1, %v543_v38  ;;  %v875_v37 = vsel %vm531_vm2, %v870_v30, %v874_v31  ;;  %v1151_v38 = vsel %vm531_vm2, %v1146_v32, %v1150_v33  ;;  %v892_v31 = vshrl.u32 %v1829_v62, 16  ;;  %v896_v32 = vshll.u32 %v1728_v24, 16 }
  0x4b   : > { %v1030_v62 = vshrl.u32 %v2173_v6, 16 }
  0x4c   : > { %1661 = vmatmul.msk.bf16.gmra.mxu3 %vm333_vm1, %v1819_v39  ;;  %v1250_v39 = vsel %vm1247_vm3, %v1248_v34, %v1249_v35  ;;  %v1026_v34 = vshll.u32 %v2173_v6, 16 }
  0x4d   : > { %1693 = vmatmul.msk.bf16.gmra.mxu0 %vm333_vm1, %v1823_v40  ;;  %v1828_v40 = vld [vmem:[%s2059_s8 + $0x70] sm:$0xff] }
  0x4e   : > { %v880_v44 = vshll.u32 %v1828_v40, 16  ;;  %v884_v0 = vshrl.u32 %v1828_v40, 16  ;;  %v1028_v43 = vrot.slane %v1026_v34, 1 }
  0x50   : > { %v882_v52 = vrot.slane %v880_v44, 1 }
  0x52   : > { %v886_v7 = vor.u32 %v884_v0, %v882_v52 }
  0x5a   : > { %1603 = vmatmul.msk.bf16.gmra.mxu1 %vm333_vm1, %v1811_v46  ;;  %1629 = vmatmul.msk.bf16.gmra.mxu2 %vm333_vm1, %v551_v47  ;;  %v1007_v46 = vrot.slane %v1005_v41, 1  ;;  %v1010_v47 = vshll.u32 %v1831_v27, 16  ;;  %v898_v41 = vrot.slane %v896_v32, 1 }
  0x5c   : > { %1662 = vmatmul.msk.bf16.gmra.mxu3 %vm333_vm1, %v1820_v48  ;;  %v1152_v48 = vshrl.u32 %v1836_v17, 16  ;;  %v1008_v53 = vor.u32 %v1007_v46, %v1003_v45  ;;  %v1012_v54 = vrot.slane %v1010_v47, 1 }
  0x5d   : > { %1694 = vmatmul.msk.bf16.gmra.mxu0 %vm333_vm1, %v1824_v49  ;;  %v1156_v49 = vshll.u32 %v1837_v42, 16 }
  0x5e   : > { %v1013_v59 = vsel %vm531_vm2, %v1008_v53, %v1012_v54 }
  0x6a   : > { %1604 = vmatmul.msk.bf16.gmra.mxu1 %vm333_vm1, %v1812_v55  ;;  %1630 = vmatmul.msk.bf16.gmra.mxu2 %vm333_vm1, %v559_v56  ;;  %v1154_v55 = vor.u32 %v1152_v48, %v1150_v33  ;;  %v1158_v56 = vrot.slane %v1156_v49, 1  ;;  %v1022_v33 = vshrl.u32 %v2158_v50, 16 }
  0x6c   : > { %1663 = vmatmul.msk.bf16.gmra.mxu3 %vm333_vm1, %v1821_v57  ;;  %v1251_v57 = vrot.slane %v2158_v50, 1  ;;  %v1159_v60 = vsel %vm531_vm2, %v1154_v55, %v1158_v56  ;;  %v1162_v11 = vor.u32 %v1160_v4, %v1158_v56  ;;  %v289_v55 = vld [vmem:[#allocation2] sm:$0xff]  ;;  %v1032_v4 = vor.u32 %v1030_v62, %v1028_v43 }
  0x6d   : > { %1695 = vmatmul.msk.bf16.gmra.mxu0 %vm333_vm1, %v1825_v58  ;;  %v883_v58 = vsel %vm531_vm2, %v878_v51, %v882_v52 }
  0x6e   : > { %v1252_v61 = vsel %vm1247_vm3, %v1249_v35, %v1251_v57  ;;  %v1254_v21 = vsel %vm1247_vm3, %v1251_v57, %v1253_v13  ;;  %v1168_v35 = vshrl.u32 %v1838_v63, 16 }
  0x7a   : > { %1605 = vmatmul.msk.bf16.gmra.mxu1 %vm333_vm1, %v431_v8  ;;  %1631 = vmatmul.msk.bf16.gmra.mxu2 %vm333_vm1, %v567_v9  ;;  %v890_v8 = vrot.slane %v888_v1, 1  ;;  %v1016_v9 = vor.u32 %v1014_v2, %v1012_v54  ;;  %v900_v2 = vshrl.u32 %v1728_v24, 16 }
  0x7c   : > { %1664 = vmatmul.msk.bf16.gmra.mxu3 %vm333_vm1, %v667_v10  ;;  %v1020_v10 = vrot.slane %v1018_v3, 1  ;;  %v891_v15 = vsel %vm531_vm2, %v886_v7, %v890_v8  ;;  %v894_v40 = vor.u32 %v892_v31, %v890_v8  ;;  %v290_v3 = vld [vmem:[#allocation2 + $0x18] sm:$0xff]  ;;  %v1176_v7 = vshrl.u32 %v1788_v25, 16 }
  0x7d   : > { %1696 = vmatmul.msk.bf16.gmra.mxu0 %vm333_vm1, %v764_v12  ;;  %v1166_v12 = vrot.slane %v1164_v5, 1 }
  0x7e   : > { %v1021_v16 = vsel %vm531_vm2, %v1016_v9, %v1020_v10  ;;  %v1024_v42 = vor.u32 %v1022_v33, %v1020_v10  ;;  %v899_v51 = vsel %vm531_vm2, %v894_v40, %v898_v41  ;;  %v902_v10 = vor.u32 %v900_v2, %v898_v41  ;;  %v293_v41 = vld [vmem:[#allocation2 + $0x28] sm:$0xff] }
  0x7f   : > { %v1167_v17 = vsel %vm531_vm2, %v1162_v11, %v1166_v12  ;;  %v1170_v45 = vor.u32 %v1168_v35, %v1166_v12 }
  0x80   : > { %v1029_v52 = vsel %vm531_vm2, %v1024_v42, %v1028_v43 }
  0x8a   : > { %1632 = vmatmul.msk.bf16.gmra.mxu2 %vm333_vm1, %v570_v36  ;;  %1729 = vmatmul.msk.bf16.vlgmr.msra.gmra.mxu1 %vm333_vm1, %v875_v37  ;;  %v1172_v36 = vshll.u32 %v1788_v25, 16  ;;  %v288_v37 = vld [vmem:[#allocation2 + $0x30] sm:$0xff] }
  0x8c   : > { %1789 = vmatmul.msk.bf16.vlgmr.msra.gmra.mxu3 %vm333_vm1, %v1151_v38  ;;  %v1174_v46 = vrot.slane %v1172_v36, 1 }
  0x8d   : > { %1796 = vmatmul.msk.bf16.vlgmr.msra.gmra.mxu0 %vm333_vm1, %v1250_v39  ;;  %v2198_v39 = vor.u32 %v1834_v29, %v1750_v28  ;;  %v292_v29 = vld [vmem:[#allocation2 + $0x20] sm:$0xff] }
  0x8e   : > { %v1175_v54 = vsel %vm531_vm2, %v1170_v45, %v1174_v46 }
  0x8f   : > { %v1255_v48 = vrot.slane %v2198_v39, 1  ;;  %v1034_v63 = vshll.u32 %v2198_v39, 16  ;;  %v1038_v25 = vshrl.u32 %v2198_v39, 16 }
  0x91   : > { %v1256_v57 = vsel %vm1247_vm3, %v1253_v13, %v1255_v48  ;;  %v1036_v5 = vrot.slane %v1034_v63, 1 }
  0x93   : > { %v1037_v13 = vsel %vm531_vm2, %v1032_v4, %v1036_v5  ;;  %v1040_v34 = vor.u32 %v1038_v25, %v1036_v5 }
  0x9a   : > { %1730 = vmatmul.msk.bf16.gmra.mxu1 %vm333_vm1, %v883_v58  ;;  %1752 = vmatmul.msk.bf16.vlgmr.msra.gmra.mxu2 %vm333_vm1, %v1013_v59 }
  0x9c   : > { %1790 = vmatmul.msk.bf16.gmra.mxu3 %vm333_vm1, %v1159_v60 }
  0x9d   : > { %1797 = vmatmul.msk.bf16.gmra.mxu0 %vm333_vm1, %v1252_v61 }
  0xa7   : > { %v2176_v14 = vpop.f32.mrf.mxu1 }
  0xa8   : > { %v388_v9 = vadd.f32 %v2176_v14, %v290_v3 }
  0xaa   : > { %v362_v20 = vpop.f32.mrf.mxu0  ;;  %1731 = vmatmul.msk.bf16.gmra.mxu1 %vm333_vm1, %v891_v15  ;;  %1753 = vmatmul.msk.bf16.gmra.mxu2 %vm333_vm1, %v1021_v16  ;;  %v1178_v15 = vor.u32 %v1176_v7, %v1174_v46 }
  0xab   : > { %v386_v44 = vadd.f32 %v362_v20, %v288_v37 }
  0xac   : > { %1791 = vmatmul.msk.bf16.gmra.mxu3 %vm333_vm1, %v1167_v17  ;;  %v291_v17 = vld [vmem:[#allocation2 + $0x10] sm:$0xff] }
  0xad   : > { %1798 = vmatmul.msk.bf16.gmra.mxu0 %vm333_vm1, %v1254_v21  ;;  %v2190_v26 = vpop.f32.mrf.mxu2 }
  0xae   : > { %v390_v32 = vadd.f32 %v2190_v26, %v292_v29 }
  0xaf   : > { %v2192_v27 = vpop.f32.mrf.mxu3  ;;  %v369_v30 = vpop.f32.mrf.mxu1 }
  0xb0   : > { %v389_v19 = vadd.f32 %v369_v30, %v291_v17 }
  0xb2   : > { %v364_v38 = vpop.f32.mrf.mxu0 }
  0xb3   : > { %v387_v58 = vadd.f32 %v364_v38, %v289_v55 }
  0xb5   : > { %v2200_v47 = vpop.f32.mrf.mxu2 }
  0xb6   : > { %v391_v39 = vadd.f32 %v2200_v47, %v293_v41  ;;  %v295_v47 = vld [vmem:[#allocation2 + $0x38] sm:$0xff] }
  0xb7   : > { %v384_v49 = vpop.f32.mrf.mxu3  ;;  %v459_v50 = vpop.f32.mrf.mxu1 }
  0xb8   : > { %v483_v53 = vadd.f32 %v459_v50, %v386_v44  ;;  %v294_v50 = vld [vmem:[#allocation2 + $0x40] sm:$0xff] }
  0xba   : > { %v792_v56 = vpop.f32.mrf.mxu0  ;;  %1732 = vmatmul.msk.bf16.gmra.mxu1 %vm333_vm1, %v899_v51  ;;  %1754 = vmatmul.msk.bf16.gmra.mxu2 %vm333_vm1, %v1029_v52 }
  0xbc   : > { %1792 = vmatmul.msk.bf16.gmra.mxu3 %vm333_vm1, %v1175_v54 }
  0xbd   : > { %1799 = vmatmul.msk.bf16.gmra.mxu0 %vm333_vm1, %v1256_v57  ;;  %v377_v59 = vpop.f32.mrf.mxu2 }
  0xbe   : > { %v392_v52 = vadd.f32 %v377_v59, %v294_v50  ;;  %v296_v59 = vld [vmem:[#allocation2 + $0x8] sm:$0xff] }
  0xbf   : > { %v695_v60 = vpop.f32.mrf.mxu3  ;;  %v461_v61 = vpop.f32.mrf.mxu1 }
  0xc0   : > { %v484_v0 = vadd.f32 %v461_v61, %v387_v58 }
  0xc2   : > { %v794_v1 = vpop.f32.mrf.mxu0 }
  0xc5   : > { %v379_v8 = vpop.f32.mrf.mxu2 }
  0xc6   : > { %v393_v62 = vadd.f32 %v379_v8, %v295_v47 }
  0xc7   : > { %v697_v11 = vpop.f32.mrf.mxu3  ;;  %v464_v12 = vpop.f32.mrf.mxu1 }
  0xc8   : > { %v485_v16 = vadd.f32 %v464_v12, %v388_v9  ;;  %v394_v9 = vadd.f32 %v2192_v27, %v296_v59 }
  0xca   : > { %v797_v6 = vpop.f32.mrf.mxu0  ;;  %1733 = vmatmul.msk.bf16.gmra.mxu1 %vm333_vm1, %v902_v10  ;;  %1755 = vmatmul.msk.bf16.gmra.mxu2 %vm333_vm1, %v1037_v13 }
  0xcc   : > { %1793 = vmatmul.msk.bf16.gmra.mxu3 %vm333_vm1, %v1178_v15 }
  0xcd   : > { %1800 = vmatmul.msk.bf16.gmra.mxu0 %vm333_vm1, %v1255_v48  ;;  %v598_v18 = vpop.f32.mrf.mxu2 }
  0xce   : > { %v622_v14 = vadd.f32 %v598_v18, %v483_v53 }
  0xcf   : > { %v700_v20 = vpop.f32.mrf.mxu3  ;;  %v466_v21 = vpop.f32.mrf.mxu1 }
  0xd0   : > { %v719_v22 = vadd.f32 %v695_v60, %v622_v14  ;;  %v486_v23 = vadd.f32 %v466_v21, %v389_v19 }
  0xd2   : > { %v799_v24 = vpop.f32.mrf.mxu0  ;;  %v2220_v28 = vadd.f32 %v792_v56, %v719_v22 }
  0xd5   : > { %v600_v31 = vpop.f32.mrf.mxu2 }
  0xd6   : > { %v623_v33 = vadd.f32 %v600_v31, %v484_v0 }
  0xd7   : > { %v702_v35 = vpop.f32.mrf.mxu3  ;;  %v469_v36 = vpop.f32.mrf.mxu1 }
  0xd8   : > { %v720_v37 = vadd.f32 %v697_v11, %v623_v33  ;;  %v487_v30 = vadd.f32 %v469_v36, %v390_v32 }
  0xda   : > { %v802_v38 = vpop.f32.mrf.mxu0  ;;  %1756 = vmatmul.msk.bf16.gmra.mxu2 %vm333_vm1, %v1040_v34  ;;  %v2224_v40 = vadd.f32 %v794_v1, %v720_v37 }
  0xdd   : > { %v603_v42 = vpop.f32.mrf.mxu2 }
  0xde   : > { %v624_v43 = vadd.f32 %v603_v42, %v485_v16 }
  0xdf   : > { %v705_v44 = vpop.f32.mrf.mxu3  ;;  %v471_v45 = vpop.f32.mrf.mxu1 }
  0xe0   : > { %v721_v46 = vadd.f32 %v700_v20, %v624_v43  ;;  %v488_v26 = vadd.f32 %v471_v45, %v391_v39 }
  0xe2   : > { %v804_v48 = vpop.f32.mrf.mxu0  ;;  %v2227_v49 = vadd.f32 %v797_v6, %v721_v46 }
  0xe5   : > { %v605_v51 = vpop.f32.mrf.mxu2 }
  0xe6   : > { %v625_v53 = vadd.f32 %v605_v51, %v486_v23 }
  0xe7   : > { %v707_v54 = vpop.f32.mrf.mxu3  ;;  %v474_v55 = vpop.f32.mrf.mxu1 }
  0xe8   : > { %v722_v56 = vadd.f32 %v702_v35, %v625_v53  ;;  %v489_v57 = vadd.f32 %v474_v55, %v392_v52 }
  0xea   : > { %v807_v58 = vpop.f32.mrf.mxu0  ;;  %v2229_v60 = vadd.f32 %v799_v24, %v722_v56 }
  0xed   : > { %v608_v61 = vpop.f32.mrf.mxu2 }
  0xee   : > { %v626_v63 = vadd.f32 %v608_v61, %v487_v30 }
  0xef   : > { %v710_v0 = vpop.f32.mrf.mxu3  ;;  %v476_v1 = vpop.f32.mrf.mxu1 }
  0xf0   : > { %v723_v2 = vadd.f32 %v705_v44, %v626_v63  ;;  %v490_v3 = vadd.f32 %v476_v1, %v393_v62 }
  0xf2   : > { %v809_v4 = vpop.f32.mrf.mxu0  ;;  %v2231_v5 = vadd.f32 %v802_v38, %v723_v2 }
  0xf5   : > { %v610_v7 = vpop.f32.mrf.mxu2 }
  0xf6   : > { %v627_v10 = vadd.f32 %v610_v7, %v488_v26 }
  0xf7   : > { %v712_v11 = vpop.f32.mrf.mxu3  ;;  %v479_v12 = vpop.f32.mrf.mxu1 }
  0xf8   : > { %v724_v13 = vadd.f32 %v707_v54, %v627_v10  ;;  %v491_v15 = vadd.f32 %v479_v12, %v394_v9 }
  0xfa   : > { %v812_v16 = vpop.f32.mrf.mxu0  ;;  %v2234_v6 = vadd.f32 %v804_v48, %v724_v13 }
  0xfd   : > { %v613_v8 = vpop.f32.mrf.mxu2 }
  0xfe   : > { %v628_v17 = vadd.f32 %v613_v8, %v489_v57 }
  0xff   : > { %v715_v18 = vpop.f32.mrf.mxu3  ;;  %v481_v19 = vpop.f32.mrf.mxu1 }
 0x100   : > { %v725_v14 = vadd.f32 %v710_v0, %v628_v17 }
 0x102   : > { %v814_v20 = vpop.f32.mrf.mxu0  ;;  %v2236_v21 = vadd.f32 %v807_v58, %v725_v14 }
 0x105   : > { %v615_v22 = vpop.f32.mrf.mxu2 }
 0x106   : > { %v629_v23 = vadd.f32 %v615_v22, %v490_v3 }
 0x107   : > { %v717_v24 = vpop.f32.mrf.mxu3  ;;  %v930_v27 = vpop.f32.mrf.mxu1 }
 0x108   : > { %v726_v25 = vadd.f32 %v712_v11, %v629_v23  ;;  %v954_v43 = vadd.f32 %v930_v27, %v2220_v28 }
 0x10a   : > { %v1284_v29 = vpop.f32.mrf.mxu0  ;;  %v2238_v31 = vadd.f32 %v809_v4, %v726_v25 }
 0x10d   : > { %v618_v32 = vpop.f32.mrf.mxu2 }
 0x10e   : > { %v630_v33 = vadd.f32 %v618_v32, %v491_v15 }
 0x10f   : > { %v1206_v34 = vpop.f32.mrf.mxu3  ;;  %v932_v35 = vpop.f32.mrf.mxu1 }
 0x110   : > { %v727_v36 = vadd.f32 %v715_v18, %v630_v33  ;;  %v955_v52 = vadd.f32 %v932_v35, %v2224_v40 }
 0x112   : > { %v1286_v37 = vpop.f32.mrf.mxu0  ;;  %v2240_v30 = vadd.f32 %v812_v16, %v727_v36 }
 0x115   : > { %v620_v38 = vpop.f32.mrf.mxu2 }
 0x117   : > { %v1208_v41 = vpop.f32.mrf.mxu3  ;;  %v935_v42 = vpop.f32.mrf.mxu1 }
 0x118   : > { %v956_v61 = vadd.f32 %v935_v42, %v2227_v49 }
 0x11a   : > { %v1289_v39 = vpop.f32.mrf.mxu0 }
 0x11d   : > { %v1068_v44 = vpop.f32.mrf.mxu2 }
 0x11e   : > { %v1092_v45 = vadd.f32 %v1068_v44, %v954_v43 }
 0x11f   : > { %v1211_v46 = vpop.f32.mrf.mxu3  ;;  %v937_v26 = vpop.f32.mrf.mxu1 }
 0x120   : > { %v1230_v48 = vadd.f32 %v1206_v34, %v1092_v45  ;;  %v957_v40 = vadd.f32 %v937_v26, %v2229_v60 }
 0x122   : > { %v1291_v50 = vpop.f32.mrf.mxu0  ;;  %v1308_v51 = vadd.f32 %v1284_v29, %v1230_v48 }
 0x124   : > { %1317 = vst [vmem:[#allocation2 + $0x30] sm:$0xff] %v1308_v51 }
 0x125   : > { %v1070_v53 = vpop.f32.mrf.mxu2 }
 0x126   : > { %v1093_v54 = vadd.f32 %v1070_v53, %v955_v52 }
 0x127   : > { %v1213_v55 = vpop.f32.mrf.mxu3  ;;  %v940_v56 = vpop.f32.mrf.mxu1 }
 0x128   : > { %v1231_v57 = vadd.f32 %v1208_v41, %v1093_v54  ;;  %v958_v49 = vadd.f32 %v940_v56, %v2231_v5 }
 0x12a   : > { %v1294_v58 = vpop.f32.mrf.mxu0  ;;  %v1309_v47 = vadd.f32 %v1286_v37, %v1231_v57 }
 0x12c   : > { %1318 = vst [vmem:[#allocation2] sm:$0xff] %v1309_v47 }
 0x12d   : > { %v1073_v28 = vpop.f32.mrf.mxu2 }
 0x12e   : > { %v1094_v62 = vadd.f32 %v1073_v28, %v956_v61 }
 0x12f   : > { %v1216_v63 = vpop.f32.mrf.mxu3  ;;  %v942_v0 = vpop.f32.mrf.mxu1 }
 0x130   : > { %v1232_v1 = vadd.f32 %v1211_v46, %v1094_v62  ;;  %v959_v60 = vadd.f32 %v942_v0, %v2234_v6 }
 0x132   : > { %v1296_v2 = vpop.f32.mrf.mxu0  ;;  %v1310_v3 = vadd.f32 %v1289_v39, %v1232_v1 }
 0x134   : > { %1319 = vst [vmem:[#allocation2 + $0x18] sm:$0xff] %v1310_v3 }
 0x135   : > { %v1075_v4 = vpop.f32.mrf.mxu2 }
 0x136   : > { %v1095_v59 = vadd.f32 %v1075_v4, %v957_v40 }
 0x137   : > { %v1218_v7 = vpop.f32.mrf.mxu3  ;;  %v945_v9 = vpop.f32.mrf.mxu1 }
 0x138   : > { %v1233_v10 = vadd.f32 %v1213_v55, %v1095_v59  ;;  %v960_v5 = vadd.f32 %v945_v9, %v2236_v21 }
 0x13a   : > { %v1299_v11 = vpop.f32.mrf.mxu0  ;;  %v1311_v12 = vadd.f32 %v1291_v50, %v1233_v10 }
 0x13c   : > { %1320 = vst [vmem:[#allocation2 + $0x10] sm:$0xff] %v1311_v12 }
 0x13d   : > { %v1078_v13 = vpop.f32.mrf.mxu2 }
 0x13e   : > { %v1096_v15 = vadd.f32 %v1078_v13, %v958_v49 }
 0x13f   : > { %v1221_v16 = vpop.f32.mrf.mxu3  ;;  %v947_v8 = vpop.f32.mrf.mxu1 }
 0x140   : > { %v1234_v17 = vadd.f32 %v1216_v63, %v1096_v15  ;;  %v961_v6 = vadd.f32 %v947_v8, %v2238_v31 }
 0x142   : > { %v1301_v18 = vpop.f32.mrf.mxu0  ;;  %v1312_v19 = vadd.f32 %v1294_v58, %v1234_v17 }
 0x144   : > { %1321 = vst [vmem:[#allocation2 + $0x20] sm:$0xff] %v1312_v19 }
 0x145   : > { %v1080_v14 = vpop.f32.mrf.mxu2 }
 0x146   : > { %v1097_v20 = vadd.f32 %v1080_v14, %v959_v60 }
 0x147   : > { %v1223_v22 = vpop.f32.mrf.mxu3  ;;  %v950_v23 = vpop.f32.mrf.mxu1 }
 0x148   : > { %v1235_v24 = vadd.f32 %v1218_v7, %v1097_v20  ;;  %v962_v44 = vadd.f32 %v950_v23, %v2240_v30 }
 0x14a   : > { %v1304_v27 = vpop.f32.mrf.mxu0  ;;  %v1313_v25 = vadd.f32 %v1296_v2, %v1235_v24 }
 0x14c   : > { %1322 = vst [vmem:[#allocation2 + $0x28] sm:$0xff] %v1313_v25 }
 0x14d   : > { %v1083_v29 = vpop.f32.mrf.mxu2 }
 0x14e   : > { %v1098_v32 = vadd.f32 %v1083_v29, %v960_v5 }
 0x14f   : > { %v1226_v33 = vpop.f32.mrf.mxu3  ;;  %v952_v34 = vpop.f32.mrf.mxu1 }
 0x150   : > { %v1236_v35 = vadd.f32 %v1221_v16, %v1098_v32 }
 0x152   : > { %v1306_v36 = vpop.f32.mrf.mxu0  ;;  %v1314_v37 = vadd.f32 %v1299_v11, %v1236_v35 }
 0x154   : > { %1323 = vst [vmem:[#allocation2 + $0x40] sm:$0xff] %v1314_v37 }
 0x155   : > { %v1085_v38 = vpop.f32.mrf.mxu2 }
 0x156   : > { %v1099_v41 = vadd.f32 %v1085_v38, %v961_v6 }
 0x157   : > { %v1228_v42 = vpop.f32.mrf.mxu3 }
 0x158   : > { %v1237_v39 = vadd.f32 %v1223_v22, %v1099_v41 }
 0x15a   : > { %v1315_v43 = vadd.f32 %v1301_v18, %v1237_v39 }
 0x15c   : > { %1324 = vst [vmem:[#allocation2 + $0x38] sm:$0xff] %v1315_v43 }
 0x15d   : > { %v1088_v21 = vpop.f32.mrf.mxu2 }
 0x15e   : > { %v1100_v45 = vadd.f32 %v1088_v21, %v962_v44 }
 0x160   : > { %v1238_v46 = vadd.f32 %v1226_v33, %v1100_v45 }
 0x161   : > { %1329 = sbr.rel (%p1801_p9) target bundleno = 371 (0x173), region = 40 }
 0x162   : > { %v1316_v26 = vadd.f32 %v1304_v27, %v1238_v46 }
 0x164   : > { %1325 = vst [vmem:[#allocation2 + $0x8] sm:$0xff] %v1316_v26 }
 0x165   : > { %v1090_v48 = vpop.f32.mrf.mxu2 }
 0x166   : > { %v1330_v50 = vld [vmem:[#allocation2 + $0x30] sm:$0xff]  ;;  %v1331_v31 = vld [vmem:[#allocation2] sm:$0xff]  ;;  %v1332_v52 = vld [vmem:[#allocation2 + $0x18] sm:$0xff] }
 0x167   : > { %v1925_v51 = vld [vmem:[%s2283_s2] ss:$0 sm:$0xff]  ;;  %v1333_v53 = vld [vmem:[#allocation2 + $0x10] sm:$0xff]  ;;  %v1335_v30 = vld [vmem:[#allocation2 + $0x28] sm:$0xff] }
 0x168   : > { %v1334_v54 = vld [vmem:[#allocation2 + $0x20] sm:$0xff]  ;;  %v1343_v56 = vadd.f32 %v1925_v51, %v1330_v50  ;;  %v1344_v57 = vadd.f32 %v1925_v51, %v1331_v31  ;;  %v1345_v58 = vadd.f32 %v1925_v51, %v1332_v52  ;;  %v1346_v47 = vadd.f32 %v1925_v51, %v1333_v53  ;;  %v1337_v61 = vld [vmem:[#allocation2 + $0x38] sm:$0xff] }
 0x169   : > { %v1336_v55 = vld [vmem:[#allocation2 + $0x40] sm:$0xff]  ;;  %v1347_v28 = vadd.f32 %v1925_v51, %v1334_v54  ;;  %v1348_v62 = vadd.f32 %v1925_v51, %v1335_v30  ;;  %v1350_v0 = vadd.f32 %v1925_v51, %v1337_v61 }
 0x16a   : > { %v1349_v63 = vadd.f32 %v1925_v51, %v1336_v55  ;;  %v1352_v2 = vmax.f32 %v1343_v56, 0.0  ;;  %v1353_v3 = vmax.f32 %v1344_v57, 0.0  ;;  %v1354_v40 = vmax.f32 %v1345_v58, 0.0 }
 0x16b   : > { %v1338_v1 = vld [vmem:[#allocation2 + $0x8] sm:$0xff]  ;;  %v1355_v4 = vmax.f32 %v1346_v47, 0.0  ;;  %v1356_v59 = vmax.f32 %v1347_v28, 0.0  ;;  %v1357_v7 = vmax.f32 %v1348_v62, 0.0  ;;  %v1359_v10 = vmax.f32 %v1350_v0, 0.0 }
 0x16c   : > { %v1358_v9 = vmax.f32 %v1349_v63, 0.0  ;;  %v1843_v11 = vpack.c.bf16 %v1353_v3, %v1352_v2  ;;  %v1351_v49 = vadd.f32 %v1925_v51, %v1338_v1 }
 0x16d   : > { %v1848_v12 = vpack.c.bf16 %v1355_v4, %v1354_v40  ;;  %v1853_v13 = vpack.c.bf16 %v1357_v7, %v1356_v59 }
 0x16e   : > { %v1858_v15 = vpack.c.bf16 %v1359_v10, %v1358_v9  ;;  %1844 = vst [vmem:[%s2054_s5] sm:$0xff] %v1843_v11   ;;  %v1360_v16 = vmax.f32 %v1351_v49, 0.0 }
 0x16f   : > { %1860 = vst [vmem:[%s2054_s5 + $0x8] sm:$0xff] %v1848_v12  }
 0x170   : > { %1861 = vst [vmem:[%s2054_s5 + $0x10] sm:$0xff] %v1853_v13   ;;  %v1369_v8 = vpack.c.bf16 %v1360_v16, %v1360_v16 }
 0x171   : > { %1862 = vst [vmem:[%s2054_s5 + $0x18] sm:$0xff] %v1858_v15  }
 0x172   : > { %1378 = vst [vmem:[%s2054_s5 + $0x20] sm:$0xf] %v1369_v8 }
 0x173 PF: > { %s13_s18 = sadd.s32 1, %s1983_s18   ;;  %s2285_s12 = smov %s1971_s15 }
 0x174   : > { %p10_p10 = scmp.ge.s32.totalorder %s13_s18, 50   ;;  %s2286_s13 = smov %s1975_s16 }
 0x175   : > { %s2287_s14 = smov %s1979_s17  ;;  %s2288_s15 = smov %s2292_s19 }
 0x176   : > { %s2289_s16 = smov %s2296_s20  ;;  %s2290_s17 = smov %s2300_s21 }
 0x177   :  { %12 = sbr.rel (!%p10_p10) target bundleno = 4 (0x4), region = 88 }

// kernel: _repvgg_forward_impl.8
= control target key start
LH: loop header
LB: loop body
LE: loop exit
PB: predicated region body
PF: predicated region fallthrough
CT: control target
= control target key end

     0   :  { %s1277_s12 = smov 0   ;;  %s1279_s13 = smov 0   ;;  %s1411_s0 = inlined_call_operand.vmem [shape: bf16[20,4,30,16], index: 0, kind: input, shape index: {}]   ;;  %s1412_s1 = inlined_call_operand.vmem [shape: bf16[27,16,128], index: 1, kind: input, shape index: {}]   ;;  %s1413_s2 = inlined_call_operand.vmem [shape: f32[1,128], index: 2, kind: input, shape index: {}]   ;;  %s1414_s3 = inlined_call_operand.vmem [shape: bf16[8,20,128], index: 3, kind: output, shape index: {}]  }
   0x1   :  { %s1281_s14 = smov 0   ;;  %s1283_s15 = smov 0  }
   0x2   :  { %s1285_s16 = smov 0   ;;  %s1287_s17 = smov 0  }
   0x3   :  { %s1289_s18 = smov 0  }
   0x4 LB: > { %s28_s19 = sadd.s32 1, %s1242_s15  ;;  %s31_s20 = sadd.s32 1, %s1246_s16  ;;  %s1254_s18 = sphi %s1289_s18, %s13_s18   ;;  %s1250_s17 = sphi %s1287_s17, %s1420_s17   ;;  %s1246_s16 = sphi %s1285_s16, %s1419_s16   ;;  %s1242_s15 = sphi %s1283_s15, %s1418_s15   ;;  %s1238_s14 = sphi %s1281_s14, %s1417_s14   ;;  %s1234_s13 = sphi %s1279_s13, %s1416_s13   ;;  %s1230_s12 = sphi %s1277_s12, %s1415_s12  }
   0x5   : > { %p29_p0 = scmp.ge.s32.totalorder %s28_s19, 3  ;;  %p985_p1 = scmp.ge.s32.totalorder %s1254_s18, 1 }
   0x6   : > { %p202_p2 = scmp.lt.s32.totalorder %s1254_s18, 25  ;;  %s39_s21 = sadd.s32 1, %s1250_s17 }
   0x7   : > { %s1422_s19 = smov (%p29_p0, %s28_s19), 0  ;;  %s1424_s20 = smov (!%p29_p0, %s31_s20), %s1246_s16 }
   0x8   : > { %p203_p3 = pnand %p985_p1, %p202_p2  ;;  %p33_p4 = scmp.ge.s32.totalorder %s1424_s20, 4 }
   0x9   : > { %s242_s22 = smul.u32 (!%p203_p3), 10, %s1238_s14  ;;  %s986_s23 = sshll.u32 (!%p203_p3), %s1234_s13, 1 }
   0xa   : > { %s1426_s20 = smov (%p33_p4, %s1424_s20), 0  ;;  %s1428_s21 = smov (!%p33_p4, %s39_s21), %s1250_s17 }
   0xb   : > { %p41_p5 = scmp.ge.s32.totalorder %s1428_s21, 2  ;;  %206 = sbr.rel (%p203_p3) target bundleno = 247 (0xf7), region = 32 }
   0xc   : > { %s989_s24 = sshll.u32 (!%p203_p3), %s1238_s14, 2  ;;  %s244_s25 = sadd.s32 (!%p203_p3), %s986_s23, %s242_s22 }
   0xd   : > { %s1430_s21 = smov (%p41_p5, %s1428_s21), 0  ;;  %s263_s26 = sadd.s32 (!%p203_p3), %s1234_s13, %s989_s24 }
   0xe   : > { %s245_s27 = sadd.s32 (!%p203_p3), %s1230_s12, %s244_s25  ;;  %p264_p6 = scmp.lt.s32.totalorder (!%p203_p3), %s263_s26, 7 }
   0xf   : > { %p246_p7 = scmp.lt.s32.totalorder (!%p203_p3), %s245_s27, 19  ;;  %p991_p8 = scmp.ne.s32.totalorder (!%p203_p3), %s1230_s12, 0 }
  0x10   : > { %s1432_s26 = smov (!%p264_p6, %s263_s26), 7 }
  0x11   : > { %s1434_s27 = smov (!%p246_p7, %s245_s27), 19  ;;  %s1141_s28 = smul.u32 12, %s1432_s26 }
  0x12   : > { %s1117_s29 = sshll.u32 %s1434_s27, 6  ;;  %278 = sbr.rel (%p991_p8) target bundleno = 27 (0x1b), region = 36 }
  0x13   : > { %s1325_s5 = scalar_lea.vmem %s1411_s0, %s1117_s29  ;;  %s1330_s8 = scalar_lea.vmem %s1414_s3, %s1141_s28 }
  0x17   : > { %v1256_v0 = vmov 0.0  }
  0x18   : > { %279 = vst [vmem:[#allocation2 + $0x10] sm:$0xff] %v1256_v0 }
  0x19   : > { %280 = vst [vmem:[#allocation2] sm:$0xff] %v1256_v0 }
  0x1a   : > { %281 = vst [vmem:[#allocation2 + $0x8] sm:$0xf] %v1256_v0 }
  0x1b PF: > { %s1119_s9 = smul.u32 72, %s1230_s12  ;;  %v1118_v1 = vld [vmem:[%s1325_s5] sm:$0xff]  ;;  %v287_v2 = vld [vmem:[%s1325_s5 + $0x8] sm:$0x3]  ;;  %vm308_vm0 = vcmask 130048   ;;  %v1121_v29 = vld [vmem:[%s1325_s5 + $0x10] sm:$0xff] }
  0x1c   : > { %v299_v3 = vunpack.c.l.b16 %v287_v2  ;;  %v387_v4 = vld [vmem:[%s1325_s5 + $0x8] sm:$0x7]  ;;  %v400_v5 = vshll.u32 %v1118_v1, 16  ;;  %v398_v7 = vshrl.u32 %v1118_v1, 16  ;;  %v1341_v20 = vld [vmem:[%s1325_s5 + $0x20] sm:$0xff]  ;;  %v1126_v30 = vld [vmem:[%s1325_s5 + $0x30] sm:$0xff] }
  0x1d   : > { %s291_s13 = scalar_lea.vmem %s1412_s1, %s1119_s9  ;;  %v395_v6 = vunpack.c.l.b16 %v387_v4  ;;  %vm397_vm1 = vsmask.f32 7424  ;;  %v1031_v25 = vld [vmem:[%s1325_s5 + $0x28] sm:$0x3]  ;;  %v604_v26 = vld [vmem:[%s1325_s5] sm:$0xc] }
  0x1e   : > { %v1120_v8 = vld [vmem:[%s291_s13] sm:$0xff]  ;;  %v1122_v9 = vld [vmem:[%s291_s13 + $0x8] sm:$0xff]  ;;  %v1123_v10 = vld [vmem:[%s291_s13 + $0x10] sm:$0xff]  ;;  %v301_v11 = vpack.c.b16 %v299_v3, %v299_v3  ;;  %v402_v15 = vrot.slane %v400_v5, 1  ;;  %v460_v28 = vunpack.c.l.b16 %v1031_v25  ;;  %v618_v33 = vunpack.c.l.b16 %v604_v26  ;;  %p1114_p9 = scmp.ne.s32.totalorder %s1230_s12, 2 }
  0x1f   : > { %v1125_v12 = vld [vmem:[%s291_s13 + $0x18] sm:$0xff]  ;;  %v1127_v13 = vld [vmem:[%s291_s13 + $0x20] sm:$0xff]  ;;  %v396_v14 = vpack.c.b16 %v395_v6, %v395_v6  ;;  %322 = vmatpush.bf16.msra.mxu0 %v1120_v8  ;;  %1140 = vmatpush.bf16.msra.mxu1 %v1120_v8  ;;  %v1130_v16 = vld [vmem:[%s291_s13 + $0x30] sm:$0xff]  ;;  %vm624_vm2 = vsmask.f32 5376  ;;  %vm755_vm3 = vcmask 1044480  }
  0x20   : > { %v1133_v17 = vld [vmem:[%s291_s13 + $0x38] sm:$0xff]  ;;  %431 = vmatpush.bf16.msra.mxu2 %v1123_v10  ;;  %v403_v18 = vor.u32 %v402_v15, %v398_v7  ;;  %v1128_v21 = vld [vmem:[%s291_s13 + $0x28] sm:$0xff]  ;;  %482 = vmatpush.bf16.msra.mxu3 %v1125_v12  ;;  %v1134_v22 = vld [vmem:[%s291_s13 + $0x40] sm:$0xff]  ;;  %v462_v40 = vpack.c.b16 %v460_v28, %v460_v28 }
  0x21   : > { %v405_v19 = vshll.u32 %v396_v14, 16  ;;  %v1352_v27 = vld [vmem:[%s1325_s5 + $0x4] sm:$0xf]  ;;  %v409_v31 = vshrl.u32 %v396_v14, 16  ;;  %v1093_v32 = vld [vmem:[%s1325_s5 + $0x10] sm:$0xc] }
  0x22   : > { %1002 = vmatmul.msk.bf16.vlgmr.msra.gmra.mxu0 %vm308_vm0, %v1118_v1  ;;  %1003 = vmatmul.msk.bf16.vlgmr.msra.gmra.mxu1 %vm308_vm0, %v301_v11  ;;  %v619_v34 = vunpack.c.l.b16 %v1352_v27  ;;  %v1131_v35 = vld [vmem:[%s1325_s5 + $0x10] sm:$0xf0]  ;;  %v1097_v36 = vld [vmem:[%s1325_s5 + $0x18] sm:$0xf]  ;;  %v1132_v37 = vld [vmem:[%s1325_s5 + $0x18] sm:$0x10] }
  0x23   : > { %373 = vmatpush.bf16.msrb.mxu1 %v1122_v9  ;;  %533 = vmatpush.bf16.msrb.mxu0 %v1127_v13  ;;  %v407_v23 = vrot.slane %v405_v19, 1  ;;  %v1076_v38 = vld [vmem:[%s1325_s5 + $0x8] sm:$0xf]  ;;  %v1129_v39 = vld [vmem:[%s1325_s5 + $0x8] sm:$0x10]  ;;  %v1094_v42 = vor.u32 %v1131_v35, %v1093_v32  ;;  %v1098_v43 = vor.u32 %v1132_v37, %v1097_v36  ;;  %v559_v13 = vshll.u32 %v1341_v20, 16 }
  0x24   : > { %661 = vmatpush.bf16.msrb.mxu2 %v1130_v16  ;;  %731 = vmatpush.bf16.msrb.mxu3 %v1133_v17  ;;  %v622_v44 = vpack.c.b16 %v619_v34, %v618_v33  ;;  %v1077_v45 = vor.u32 %v1129_v39, %v1076_v38  ;;  %v1006_v46 = vld [vmem:[%s1325_s5 + $0x18] sm:$0x3]  ;;  %v1061_v2 = vld [vmem:[%s1325_s5 + $0x28] sm:$0x7]  ;;  %v745_v10 = vld [vmem:[%s1325_s5] sm:$0x8] }
  0x25   : > { %v408_v24 = vsel %vm397_vm1, %v403_v18, %v407_v23  ;;  %1043 = vmatmul.msk.bf16.vlgmr.msra.gmra.mxu3 %vm308_vm0, %v1341_v20  ;;  %v411_v41 = vor.u32 %v409_v31, %v407_v23  ;;  %v1047_v47 = vld [vmem:[%s1325_s5 + $0x38] sm:$0x3]  ;;  %v696_v48 = vshrl.u32 %v1094_v42, 16  ;;  %v699_v49 = vshll.u32 %v1094_v42, 16  ;;  %v282_v42 = vld [vmem:[#allocation2 + $0x10] sm:$0xff] }
  0x26   : > { %1027 = vmatmul.msk.bf16.vlgmr.msra.gmra.mxu2 %vm308_vm0, %v408_v24  ;;  %v704_v50 = vshrl.u32 %v1098_v43, 16  ;;  %v707_v51 = vshll.u32 %v1098_v43, 16  ;;  %v626_v52 = vshrl.u32 %v622_v44, 16  ;;  %v629_v53 = vshll.u32 %v622_v44, 16 }
  0x27   : > { %590 = vmatpush.bf16.msra.mxu1 %v1128_v21  ;;  %778 = vmatpush.bf16.msra.mxu0 %v1134_v22  ;;  %v634_v54 = vshrl.u32 %v1077_v45, 16  ;;  %v637_v55 = vshll.u32 %v1077_v45, 16  ;;  %v351_v56 = vunpack.c.l.b16 %v1006_v46  ;;  %v511_v57 = vunpack.c.l.b16 %v1047_v47 }
  0x28   : > { %v698_v58 = vrot.slane %v696_v48, 2  ;;  %v701_v59 = vrot.slane %v699_v49, 3  ;;  %v706_v60 = vrot.slane %v704_v50, 2  ;;  %v709_v61 = vrot.slane %v707_v51, 3  ;;  %v283_v49 = vld [vmem:[#allocation2] sm:$0xff] }
  0x29   : > { %v628_v62 = vrot.slane %v626_v52, 2  ;;  %v631_v63 = vrot.slane %v629_v53, 3  ;;  %v636_v0 = vrot.slane %v634_v54, 2  ;;  %v639_v1 = vrot.slane %v637_v55, 3 }
  0x2a   : > { %v702_v3 = vor.u32 %v701_v59, %v698_v58  ;;  %v710_v4 = vor.u32 %v709_v61, %v706_v60  ;;  %v353_v5 = vpack.c.b16 %v351_v56, %v351_v56  ;;  %v513_v6 = vpack.c.b16 %v511_v57, %v511_v57  ;;  %v284_v58 = vld [vmem:[#allocation2 + $0x8] sm:$0xf] }
  0x2b   : > { %v632_v7 = vor.u32 %v631_v63, %v628_v62  ;;  %v640_v8 = vor.u32 %v639_v1, %v636_v0  ;;  %v555_v9 = vunpack.c.l.b16 %v1061_v2  ;;  %v753_v15 = vunpack.c.l.b16 %v745_v10 }
  0x2c   : > { %v711_v11 = vsel %vm624_vm2, %v702_v3, %v710_v4  ;;  %v557_v16 = vshrl.u32 %v1341_v20, 16  ;;  %v561_v17 = vrot.slane %v559_v13, 1  ;;  %v757_v24 = vrot.slane %v1077_v45, 3 }
  0x2d   : > { %v641_v12 = vsel %vm624_vm2, %v632_v7, %v640_v8  ;;  %v556_v14 = vpack.c.b16 %v555_v9, %v555_v9  ;;  %v754_v19 = vpack.c.b16 %v619_v34, %v753_v15 }
  0x2e   : > { %v562_v21 = vor.u32 %v561_v17, %v557_v16 }
  0x2f   : > { %v564_v18 = vshll.u32 %v556_v14, 16  ;;  %v756_v23 = vrot.slane %v754_v19, 3  ;;  %v568_v20 = vshrl.u32 %v556_v14, 16 }
  0x31   : > { %v566_v22 = vrot.slane %v564_v18, 1  ;;  %v758_v26 = vsel %vm755_vm3, %v756_v23, %v757_v24 }
  0x32   : > { %1018 = vmatmul.msk.bf16.vlgmr.msrb.gmra.mxu1 %vm308_vm0, %v1121_v29  ;;  %1059 = vmatmul.msk.bf16.vlgmr.msrb.gmra.mxu0 %vm308_vm0, %v1126_v30 }
  0x33   : > { %v567_v25 = vsel %vm397_vm1, %v562_v21, %v566_v22  ;;  %v570_v27 = vor.u32 %v568_v20, %v566_v22 }
  0x35   : > { %1044 = vmatmul.msk.bf16.gmra.mxu3 %vm308_vm0, %v462_v40 }
  0x36   : > { %1028 = vmatmul.msk.bf16.gmra.mxu2 %vm308_vm0, %v411_v41 }
  0x42   : > { %1019 = vmatmul.msk.bf16.gmra.mxu1 %vm308_vm0, %v353_v5  ;;  %1060 = vmatmul.msk.bf16.gmra.mxu0 %vm308_vm0, %v513_v6 }
  0x45   : > { %1103 = vmatmul.msk.bf16.vlgmr.msrb.gmra.mxu3 %vm308_vm0, %v711_v11 }
  0x46   : > { %1082 = vmatmul.msk.bf16.vlgmr.msrb.gmra.mxu2 %vm308_vm0, %v641_v12 }
  0x52   : > { %1069 = vmatmul.msk.bf16.vlgmr.msra.gmra.mxu1 %vm308_vm0, %v567_v25  ;;  %1112 = vmatmul.msk.bf16.vlgmr.msra.gmra.mxu0 %vm308_vm0, %v758_v26 }
  0x55   : > { %1104 = vmatmul.msk.bf16.gmra.mxu3 %vm308_vm0, %v710_v4 }
  0x56   : > { %1083 = vmatmul.msk.bf16.gmra.mxu2 %vm308_vm0, %v640_v8 }
  0x62   : > { %1070 = vmatmul.msk.bf16.gmra.mxu1 %vm308_vm0, %v570_v27  ;;  %1113 = vmatmul.msk.bf16.gmra.mxu0 %vm308_vm0, %v757_v24 }
  0x9f   : > { %v324_v28 = vpop.f32.mrf.mxu0  ;;  %v329_v29 = vpop.f32.mrf.mxu1 }
  0xa0   : > { %v333_v45 = vadd.f32 %v324_v28, %v282_v42  ;;  %v335_v63 = vadd.f32 %v329_v29, %v284_v58 }
  0xa7   : > { %v326_v30 = vpop.f32.mrf.mxu0  ;;  %v331_v31 = vpop.f32.mrf.mxu1 }
  0xa8   : > { %v484_v33 = vpop.f32.mrf.mxu3  ;;  %v334_v53 = vadd.f32 %v326_v30, %v283_v49 }
  0xa9   : > { %v433_v32 = vpop.f32.mrf.mxu2 }
  0xaf   : > { %v375_v34 = vpop.f32.mrf.mxu1  ;;  %v535_v35 = vpop.f32.mrf.mxu0 }
  0xb0   : > { %v486_v37 = vpop.f32.mrf.mxu3  ;;  %v384_v48 = vadd.f32 %v375_v34, %v333_v45 }
  0xb1   : > { %v435_v36 = vpop.f32.mrf.mxu2 }
  0xb2   : > { %v442_v50 = vadd.f32 %v433_v32, %v384_v48 }
  0xb4   : > { %v493_v56 = vadd.f32 %v484_v33, %v442_v50 }
  0xb6   : > { %v544_v59 = vadd.f32 %v535_v35, %v493_v56 }
  0xb7   : > { %v377_v38 = vpop.f32.mrf.mxu1  ;;  %v537_v39 = vpop.f32.mrf.mxu0 }
  0xb8   : > { %v489_v41 = vpop.f32.mrf.mxu3  ;;  %v385_v57 = vadd.f32 %v377_v38, %v334_v53 }
  0xb9   : > { %v438_v40 = vpop.f32.mrf.mxu2 }
  0xba   : > { %v443_v60 = vadd.f32 %v435_v36, %v385_v57 }
  0xbc   : > { %v494_v3 = vadd.f32 %v486_v37, %v443_v60 }
  0xbe   : > { %v545_v7 = vadd.f32 %v537_v39, %v494_v3 }
  0xbf   : > { %v380_v43 = vpop.f32.mrf.mxu1  ;;  %v540_v44 = vpop.f32.mrf.mxu0 }
  0xc0   : > { %v491_v47 = vpop.f32.mrf.mxu3  ;;  %v386_v4 = vadd.f32 %v380_v43, %v335_v63 }
  0xc1   : > { %v440_v46 = vpop.f32.mrf.mxu2 }
  0xc2   : > { %v444_v8 = vadd.f32 %v438_v40, %v386_v4 }
  0xc4   : > { %v495_v15 = vadd.f32 %v489_v41, %v444_v8 }
  0xc6   : > { %v546_v18 = vadd.f32 %v540_v44, %v495_v15 }
  0xc7   : > { %v382_v51 = vpop.f32.mrf.mxu1  ;;  %v542_v52 = vpop.f32.mrf.mxu0 }
  0xc8   : > { %v733_v55 = vpop.f32.mrf.mxu3 }
  0xc9   : > { %v663_v54 = vpop.f32.mrf.mxu2 }
  0xcf   : > { %v592_v61 = vpop.f32.mrf.mxu1  ;;  %v780_v62 = vpop.f32.mrf.mxu0 }
  0xd0   : > { %v601_v0 = vadd.f32 %v592_v61, %v544_v59  ;;  %v735_v2 = vpop.f32.mrf.mxu3 }
  0xd1   : > { %v665_v1 = vpop.f32.mrf.mxu2 }
  0xd2   : > { %v672_v5 = vadd.f32 %v663_v54, %v601_v0 }
  0xd4   : > { %v742_v6 = vadd.f32 %v733_v55, %v672_v5 }
  0xd6   : > { %v789_v9 = vadd.f32 %v780_v62, %v742_v6 }
  0xd7   : > { %v594_v10 = vpop.f32.mrf.mxu1  ;;  %v782_v11 = vpop.f32.mrf.mxu0 }
  0xd8   : > { %792 = vst [vmem:[#allocation2 + $0x10] sm:$0xff] %v789_v9  ;;  %v602_v12 = vadd.f32 %v594_v10, %v545_v7  ;;  %v738_v14 = vpop.f32.mrf.mxu3 }
  0xd9   : > { %v668_v13 = vpop.f32.mrf.mxu2 }
  0xda   : > { %v673_v16 = vadd.f32 %v665_v1, %v602_v12 }
  0xdc   : > { %v743_v17 = vadd.f32 %v735_v2, %v673_v16 }
  0xde   : > { %v790_v19 = vadd.f32 %v782_v11, %v743_v17 }
  0xdf   : > { %v597_v21 = vpop.f32.mrf.mxu1  ;;  %v785_v22 = vpop.f32.mrf.mxu0 }
  0xe0   : > { %793 = vst [vmem:[#allocation2] sm:$0xff] %v790_v19  ;;  %v603_v23 = vadd.f32 %v597_v21, %v546_v18  ;;  %v740_v25 = vpop.f32.mrf.mxu3 }
  0xe1   : > { %v670_v24 = vpop.f32.mrf.mxu2 }
  0xe2   : > { %v674_v26 = vadd.f32 %v668_v13, %v603_v23 }
  0xe4   : > { %v744_v20 = vadd.f32 %v738_v14, %v674_v26  ;;  %798 = sbr.rel (%p1114_p9) target bundleno = 247 (0xf7), region = 40 }
  0xe6   : > { %v791_v27 = vadd.f32 %v785_v22, %v744_v20 }
  0xe7   : > { %v599_v28 = vpop.f32.mrf.mxu1  ;;  %v787_v29 = vpop.f32.mrf.mxu0 }
  0xe8   : > { %794 = vst [vmem:[#allocation2 + $0x8] sm:$0xf] %v791_v27 }
  0xe9   : > { %v799_v30 = vld [vmem:[#allocation2 + $0x10] sm:$0xff]  ;;  %v800_v31 = vld [vmem:[#allocation2] sm:$0xff] }
  0xea   : > { %v1199_v32 = vld [vmem:[%s1413_s2] ss:$0 sm:$0xff] }
  0xeb   : > { %v806_v34 = vadd.f32 %v1199_v32, %v799_v30  ;;  %v807_v35 = vadd.f32 %v1199_v32, %v800_v31 }
  0xed   : > { %v809_v37 = vmax.f32 %v806_v34, 0.0  ;;  %v810_v38 = vmax.f32 %v807_v35, 0.0 }
  0xef   : > { %v801_v33 = vld [vmem:[#allocation2 + $0x8] sm:$0xf]  ;;  %v1138_v40 = vpack.c.bf16 %v810_v38, %v809_v37 }
  0xf0   : > { %v808_v36 = vadd.f32 %v1199_v32, %v801_v33 }
  0xf1   : > { %1139 = vst [vmem:[%s1330_s8] sm:$0xff] %v1138_v40  }
  0xf2   : > { %v811_v39 = vmax.f32 %v808_v36, 0.0 }
  0xf4   : > { %v814_v41 = vpack.c.bf16 %v811_v39, %v811_v39 }
  0xf6   : > { %817 = vst [vmem:[%s1330_s8 + $0x8] sm:$0x3] %v814_v41 }
  0xf7 PF: > { %s13_s18 = sadd.s32 1, %s1254_s18   ;;  %s1415_s12 = smov %s1242_s15 }
  0xf8   : > { %p10_p10 = scmp.ge.s32.totalorder %s13_s18, 26   ;;  %s1416_s13 = smov %s1246_s16 }
  0xf9   : > { %s1417_s14 = smov %s1250_s17  ;;  %s1418_s15 = smov %s1422_s19 }
  0xfa   : > { %s1419_s16 = smov %s1426_s20  ;;  %s1420_s17 = smov %s1430_s21 }
  0xfb   :  { %12 = sbr.rel (!%p10_p10) target bundleno = 4 (0x4), region = 88 }

// kernel: _repvgg_forward_impl.9
= control target key start
LH: loop header
LB: loop body
LE: loop exit
PB: predicated region body
PF: predicated region fallthrough
CT: control target
= control target key end

     0   :  { %s1208_s12 = smov 0   ;;  %s1210_s13 = smov 0   ;;  %s1366_s0 = inlined_call_operand.vmem [shape: bf16[12,1,42,16], index: 0, kind: input, shape index: {}]   ;;  %s1367_s1 = inlined_call_operand.vmem [shape: bf16[27,16,128], index: 1, kind: input, shape index: {}]   ;;  %s1368_s2 = inlined_call_operand.vmem [shape: f32[1,128], index: 2, kind: input, shape index: {}]   ;;  %s1369_s3 = inlined_call_operand.vmem [shape: bf16[8,24,128], index: 3, kind: output, shape index: {}]  }
   0x1   :  { %s1212_s14 = smov 0   ;;  %s1214_s15 = smov 0  }
   0x2   :  { %s1216_s16 = smov 0   ;;  %s1218_s17 = smov 0  }
   0x3   :  { %s1220_s18 = smov 0  }
   0x4 LB: > { %s28_s19 = sadd.s32 1, %s1173_s15  ;;  %s31_s20 = sadd.s32 1, %s1177_s16  ;;  %s1185_s18 = sphi %s1220_s18, %s13_s18   ;;  %s1181_s17 = sphi %s1218_s17, %s1375_s17   ;;  %s1177_s16 = sphi %s1216_s16, %s1374_s16   ;;  %s1173_s15 = sphi %s1214_s15, %s1373_s15   ;;  %s1169_s14 = sphi %s1212_s14, %s1372_s14   ;;  %s1165_s13 = sphi %s1210_s13, %s1371_s13   ;;  %s1161_s12 = sphi %s1208_s12, %s1370_s12  }
   0x5   : > { %p29_p0 = scmp.ge.s32.totalorder %s28_s19, 3  ;;  %p953_p1 = scmp.ge.s32.totalorder %s1185_s18, 1 }
   0x6   : > { %p198_p2 = scmp.lt.s32.totalorder %s1185_s18, 25  ;;  %s39_s21 = sadd.s32 1, %s1181_s17 }
   0x7   : > { %s1377_s19 = smov (%p29_p0, %s28_s19), 0  ;;  %s1379_s20 = smov (!%p29_p0, %s31_s20), %s1177_s16 }
   0x8   : > { %p199_p3 = pnand %p953_p1, %p198_p2  ;;  %p33_p4 = scmp.ge.s32.totalorder %s1379_s20, 4 }
   0x9   : > { %s237_s22 = smul.u32 (!%p199_p3), 6, %s1169_s14  ;;  %s955_s23 = sshll.u32 (!%p199_p3), %s1169_s14, 2 }
   0xa   : > { %s1381_s20 = smov (%p33_p4, %s1379_s20), 0  ;;  %s1383_s21 = smov (!%p33_p4, %s39_s21), %s1181_s17 }
   0xb   : > { %p41_p5 = scmp.ge.s32.totalorder %s1383_s21, 2  ;;  %202 = sbr.rel (%p199_p3) target bundleno = 246 (0xf6), region = 32 }
   0xc   : > { %s256_s24 = sadd.s32 (!%p199_p3), %s1165_s13, %s955_s23  ;;  %s238_s25 = sadd.s32 (!%p199_p3), %s1165_s13, %s237_s22 }
   0xd   : > { %s1385_s21 = smov (%p41_p5, %s1383_s21), 0  ;;  %p257_p6 = scmp.lt.s32.totalorder (!%p199_p3), %s256_s24, 7 }
   0xe   : > { %s239_s26 = sadd.s32 (!%p199_p3), %s1161_s12, %s238_s25  ;;  %p957_p8 = scmp.ne.s32.totalorder (!%p199_p3), %s1161_s12, 0 }
   0xf   : > { %p240_p7 = scmp.lt.s32.totalorder (!%p199_p3), %s239_s26, 11 }
  0x10   : > { %s1387_s24 = smov (!%p257_p6, %s256_s24), 7  ;;  %271 = sbr.rel (%p957_p8) target bundleno = 25 (0x19), region = 36 }
  0x11   : > { %s1389_s26 = smov (!%p240_p7, %s239_s26), 11  ;;  %s1072_s27 = smul.u32 12, %s1387_s24 }
  0x12   : > { %s1071_s28 = smul.u32 24, %s1389_s26 }
  0x13   : > { %s1256_s4 = scalar_lea.vmem %s1369_s3, %s1072_s27 }
  0x14   : > { %s1261_s7 = scalar_lea.vmem %s1366_s0, %s1071_s28 }
  0x15   : > { %v1187_v0 = vmov 0.0  }
  0x16   : > { %272 = vst [vmem:[#allocation2 + $0x10] sm:$0xff] %v1187_v0 }
  0x17   : > { %273 = vst [vmem:[#allocation2] sm:$0xff] %v1187_v0 }
  0x18   : > { %274 = vst [vmem:[#allocation2 + $0x8] sm:$0xff] %v1187_v0 }
  0x19 PF: > { %s1046_s8 = smul.u32 72, %s1161_s12  ;;  %v280_v1 = vld [vmem:[%s1261_s7 + $0x8] sm:$0xff]   ;;  %v1267_v2 = vld [vmem:[%s1261_s7] sm:$0xff]   ;;  %vm301_vm0 = vcmask 130048   ;;  %vm408_vm1 = vcmask 1046528   ;;  %vm459_vm2 = vcmask 1044480  }
  0x1a   : > { %v292_v3 = vunpack.c.l.b16 %v280_v1  ;;  %v1270_v4 = vunpack.c.h.b16 %v1267_v2  ;;  %v331_v5 = vld [vmem:[%s1261_s7 + $0x8] sm:$0xf]  ;;  %v332_v6 = vld [vmem:[%s1261_s7 + $0xc] sm:$0x1]  ;;  %v398_v7 = vld [vmem:[%s1261_s7] sm:$0xe]  ;;  %v1275_v8 = vunpack.c.h.b16 %v280_v1 }
  0x1b   : > { %s1280_s11 = scalar_lea.vmem %s1367_s1, %s1046_s8  ;;  %v1282_v9 = vunpack.c.l.b16 %v331_v5  ;;  %v346_v10 = vunpack.c.l.b16 %v332_v6  ;;  %v406_v11 = vunpack.c.l.b16 %v398_v7  ;;  %v445_v12 = vld [vmem:[%s1261_s7] sm:$0x8]  ;;  %v446_v13 = vld [vmem:[%s1261_s7 + $0xc] sm:$0x7]  ;;  %v353_v37 = vshll.u32 %v1267_v2, 16  ;;  %p1042_p9 = scmp.ne.s32.totalorder %s1161_s12, 2 }
  0x1c   : > { %v1047_v14 = vld [vmem:[%s1280_s11] sm:$0xff]  ;;  %v1048_v15 = vld [vmem:[%s1280_s11 + $0x8] sm:$0xff]  ;;  %v1049_v16 = vld [vmem:[%s1280_s11 + $0x10] sm:$0xff]  ;;  %v455_v17 = vunpack.c.l.b16 %v445_v12  ;;  %v456_v18 = vunpack.c.l.b16 %v446_v13  ;;  %v294_v20 = vpack.c.b16 %v292_v3, %v292_v3  ;;  %v351_v43 = vshrl.u32 %v1267_v2, 16 }
  0x1d   : > { %v1045_v19 = vld [vmem:[%s1261_s7] sm:$0xff]  ;;  %v1050_v21 = vld [vmem:[%s1280_s11 + $0x18] sm:$0xff]  ;;  %v1293_v23 = vpack.c.b16 %v346_v10, %v1282_v9  ;;  %v407_v24 = vpack.c.b16 %v1270_v4, %v406_v11  ;;  %315 = vmatpush.bf16.msra.mxu0 %v1047_v14  ;;  %1070 = vmatpush.bf16.msra.mxu1 %v1047_v14  ;;  %v505_v28 = vpack.c.b16 %v1275_v8, %v1282_v9  ;;  %v1053_v31 = vld [vmem:[%s1280_s11 + $0x30] sm:$0xff]  ;;  %v355_v44 = vrot.slane %v353_v37, 1 }
  0x1e   : > { %v1051_v22 = vld [vmem:[%s1280_s11 + $0x20] sm:$0xff]  ;;  %v457_v25 = vpack.c.b16 %v1270_v4, %v455_v17  ;;  %v458_v26 = vpack.c.b16 %v456_v18, %v1282_v9  ;;  %v1054_v27 = vld [vmem:[%s1280_s11 + $0x38] sm:$0xff]  ;;  %431 = vmatpush.bf16.msra.mxu2 %v1049_v16  ;;  %482 = vmatpush.bf16.msra.mxu3 %v1050_v21  ;;  %v1052_v34 = vld [vmem:[%s1280_s11 + $0x28] sm:$0xff]  ;;  %vm349_vm3 = vsmask.f32 7424  ;;  %vm618_vm5 = vcmask 1045504  }
  0x1f   : > { %v409_v29 = vrot.slane %v407_v24, 1  ;;  %v410_v30 = vrot.slane %v1293_v23, 1  ;;  %v1055_v35 = vld [vmem:[%s1280_s11 + $0x40] sm:$0xff]  ;;  %v516_v41 = vshrl.u32 %v505_v28, 16  ;;  %v519_v42 = vshll.u32 %v505_v28, 16  ;;  %v1069_v51 = vld [vmem:[%s1261_s7 + $0x8] sm:$0xff]  }
  0x20   : > { %v460_v32 = vrot.slane %v457_v25, 3  ;;  %v461_v33 = vrot.slane %v458_v26, 3  ;;  %968 = vmatmul.msk.bf16.vlgmr.msra.gmra.mxu0 %vm301_vm0, %v1045_v19  ;;  %969 = vmatmul.msk.bf16.vlgmr.msra.gmra.mxu1 %vm301_vm0, %v294_v20  ;;  %v508_v38 = vshrl.u32 %v457_v25, 16  ;;  %v511_v40 = vshll.u32 %v457_v25, 16  ;;  %v598_v50 = vld [vmem:[%s1261_s7 + $0x4] sm:$0xc] }
  0x21   : > { %384 = vmatpush.bf16.msrb.mxu1 %v1048_v15  ;;  %543 = vmatpush.bf16.msrb.mxu0 %v1051_v22  ;;  %v411_v36 = vsel %vm408_vm1, %v409_v29, %v410_v30  ;;  %v358_v45 = vshll.u32 %v1293_v23, 16  ;;  %v518_v48 = vrot.slane %v516_v41, 3  ;;  %v521_v49 = vrot.slane %v519_v42, 4  ;;  %v655_v52 = vld [vmem:[%s1261_s7 + $0x10] sm:$0x7] }
  0x22   : > { %986 = vmatmul.msk.bf16.vlgmr.msra.gmra.mxu2 %vm301_vm0, %v411_v36  ;;  %v462_v39 = vsel %vm459_vm2, %v460_v32, %v461_v33  ;;  %702 = vmatpush.bf16.msrb.mxu3 %v1054_v27  ;;  %v510_v46 = vrot.slane %v508_v38, 3  ;;  %v513_v47 = vrot.slane %v511_v40, 4  ;;  %v356_v53 = vor.u32 %v355_v44, %v351_v43  ;;  %v601_v63 = vld [vmem:[%s1261_s7 + $0x10] sm:$0x3]  ;;  %v716_v22 = vld [vmem:[%s1261_s7 + $0x4] sm:$0x8] }
  0x23   : > { %995 = vmatmul.msk.bf16.vlgmr.msra.gmra.mxu3 %vm301_vm0, %v462_v39  ;;  %641 = vmatpush.bf16.msrb.mxu2 %v1053_v31  ;;  %v360_v54 = vrot.slane %v358_v45, 1  ;;  %v522_v56 = vor.u32 %v521_v49, %v518_v48  ;;  %vm506_vm4 = vsmask.f32 4352  ;;  %v1062_v57 = vunpack.c.l.b16 %v1069_v51  ;;  %v275_v43 = vld [vmem:[#allocation2 + $0x10] sm:$0xff]  ;;  %v276_v49 = vld [vmem:[#allocation2] sm:$0xff] }
  0x24   : > { %v514_v55 = vor.u32 %v513_v47, %v510_v46  ;;  %v1063_v58 = vunpack.c.h.b16 %v1069_v51  ;;  %v612_v59 = vunpack.c.l.b16 %v598_v50  ;;  %v663_v60 = vunpack.c.l.b16 %v655_v52 }
  0x25   : > { %584 = vmatpush.bf16.msra.mxu1 %v1052_v34  ;;  %748 = vmatpush.bf16.msra.mxu0 %v1055_v35  ;;  %v361_v61 = vsel %vm349_vm3, %v356_v53, %v360_v54  ;;  %v615_v2 = vunpack.c.l.b16 %v601_v63  ;;  %v362_v15 = vshrl.u32 %v1293_v23, 16  ;;  %vm665_vm6 = vsmask.f32 5376 }
  0x26   : > { %v523_v62 = vsel %vm506_vm4, %v514_v55, %v522_v56  ;;  %v616_v0 = vpack.c.b16 %v1062_v57, %v612_v59  ;;  %v664_v1 = vpack.c.b16 %v663_v60, %v1063_v58  ;;  %v724_v25 = vunpack.c.l.b16 %v716_v22 }
  0x27   : > { %v617_v10 = vpack.c.b16 %v615_v2, %v1063_v58  ;;  %v364_v20 = vor.u32 %v362_v15, %v360_v54  ;;  %v563_v28 = vpack.c.b16 %v1282_v9, %v1270_v4  ;;  %v277_v58 = vld [vmem:[#allocation2 + $0x8] sm:$0xff] }
  0x28   : > { %v667_v3 = vshrl.u32 %v616_v0, 16  ;;  %v670_v5 = vshll.u32 %v616_v0, 16  ;;  %v675_v6 = vshrl.u32 %v664_v1, 16  ;;  %v678_v7 = vshll.u32 %v664_v1, 16 }
  0x29   : > { %v619_v16 = vrot.slane %v616_v0, 2  ;;  %v620_v17 = vrot.slane %v617_v10, 2  ;;  %v725_v23 = vpack.c.b16 %v1062_v57, %v724_v25  ;;  %v727_v27 = vrot.slane %v664_v1, 3 }
  0x2a   : > { %v669_v11 = vrot.slane %v667_v3, 2  ;;  %v672_v12 = vrot.slane %v670_v5, 3  ;;  %v677_v13 = vrot.slane %v675_v6, 2  ;;  %v680_v14 = vrot.slane %v678_v7, 3 }
  0x2b   : > { %v621_v21 = vsel %vm618_vm5, %v619_v16, %v620_v17  ;;  %v726_v26 = vrot.slane %v725_v23, 3 }
  0x2c   : > { %v673_v18 = vor.u32 %v672_v12, %v669_v11  ;;  %v681_v19 = vor.u32 %v680_v14, %v677_v13 }
  0x2d   : > { %v728_v29 = vsel %vm459_vm2, %v726_v26, %v727_v27 }
  0x2e   : > { %v682_v24 = vsel %vm665_vm6, %v673_v18, %v681_v19 }
  0x30   : > { %977 = vmatmul.msk.bf16.vlgmr.msrb.gmra.mxu1 %vm301_vm0, %v361_v61  ;;  %1004 = vmatmul.msk.bf16.vlgmr.msrb.gmra.mxu0 %vm301_vm0, %v523_v62 }
  0x32   : > { %987 = vmatmul.msk.bf16.gmra.mxu2 %vm301_vm0, %v410_v30  ;;  %v564_v30 = vpack.c.b16 %v1275_v8, %v1275_v8 }
  0x33   : > { %996 = vmatmul.msk.bf16.gmra.mxu3 %vm301_vm0, %v461_v33 }
  0x40   : > { %978 = vmatmul.msk.bf16.gmra.mxu1 %vm301_vm0, %v364_v20  ;;  %1005 = vmatmul.msk.bf16.gmra.mxu0 %vm301_vm0, %v522_v56 }
  0x42   : > { %1022 = vmatmul.msk.bf16.vlgmr.msrb.gmra.mxu2 %vm301_vm0, %v621_v21 }
  0x43   : > { %1031 = vmatmul.msk.bf16.vlgmr.msrb.gmra.mxu3 %vm301_vm0, %v682_v24 }
  0x50   : > { %1013 = vmatmul.msk.bf16.vlgmr.msra.gmra.mxu1 %vm301_vm0, %v563_v28  ;;  %1040 = vmatmul.msk.bf16.vlgmr.msra.gmra.mxu0 %vm301_vm0, %v728_v29 }
  0x52   : > { %1023 = vmatmul.msk.bf16.gmra.mxu2 %vm301_vm0, %v620_v17 }
  0x53   : > { %1032 = vmatmul.msk.bf16.gmra.mxu3 %vm301_vm0, %v681_v19 }
  0x60   : > { %1014 = vmatmul.msk.bf16.gmra.mxu1 %vm301_vm0, %v564_v30  ;;  %1041 = vmatmul.msk.bf16.gmra.mxu0 %vm301_vm0, %v727_v27 }
  0x9d   : > { %v317_v31 = vpop.f32.mrf.mxu0  ;;  %v322_v32 = vpop.f32.mrf.mxu1 }
  0x9e   : > { %v326_v46 = vadd.f32 %v317_v31, %v275_v43  ;;  %v328_v0 = vadd.f32 %v322_v32, %v277_v58 }
  0xa5   : > { %v433_v4 = vpop.f32.mrf.mxu2  ;;  %v319_v9 = vpop.f32.mrf.mxu0 }
  0xa6   : > { %v324_v33 = vpop.f32.mrf.mxu1  ;;  %v484_v34 = vpop.f32.mrf.mxu3  ;;  %v327_v54 = vadd.f32 %v319_v9, %v276_v49 }
  0xad   : > { %v435_v35 = vpop.f32.mrf.mxu2  ;;  %v545_v37 = vpop.f32.mrf.mxu0 }
  0xae   : > { %v386_v36 = vpop.f32.mrf.mxu1  ;;  %v486_v38 = vpop.f32.mrf.mxu3 }
  0xaf   : > { %v395_v48 = vadd.f32 %v386_v36, %v326_v46 }
  0xb1   : > { %v442_v50 = vadd.f32 %v433_v4, %v395_v48 }
  0xb3   : > { %v493_v56 = vadd.f32 %v484_v34, %v442_v50 }
  0xb5   : > { %v438_v39 = vpop.f32.mrf.mxu2  ;;  %v547_v41 = vpop.f32.mrf.mxu0  ;;  %v554_v59 = vadd.f32 %v545_v37, %v493_v56 }
  0xb6   : > { %v388_v40 = vpop.f32.mrf.mxu1  ;;  %v489_v42 = vpop.f32.mrf.mxu3 }
  0xb7   : > { %v396_v57 = vadd.f32 %v388_v40, %v327_v54 }
  0xb9   : > { %v443_v60 = vadd.f32 %v435_v35, %v396_v57 }
  0xbb   : > { %v494_v3 = vadd.f32 %v486_v38, %v443_v60 }
  0xbd   : > { %v440_v8 = vpop.f32.mrf.mxu2  ;;  %v550_v45 = vpop.f32.mrf.mxu0  ;;  %v555_v10 = vadd.f32 %v547_v41, %v494_v3 }
  0xbe   : > { %v391_v44 = vpop.f32.mrf.mxu1  ;;  %v491_v47 = vpop.f32.mrf.mxu3 }
  0xbf   : > { %v397_v5 = vadd.f32 %v391_v44, %v328_v0 }
  0xc1   : > { %v444_v11 = vadd.f32 %v438_v39, %v397_v5 }
  0xc3   : > { %v495_v18 = vadd.f32 %v489_v42, %v444_v11 }
  0xc5   : > { %v643_v51 = vpop.f32.mrf.mxu2  ;;  %v552_v53 = vpop.f32.mrf.mxu0  ;;  %v556_v21 = vadd.f32 %v550_v45, %v495_v18 }
  0xc6   : > { %v393_v52 = vpop.f32.mrf.mxu1  ;;  %v704_v55 = vpop.f32.mrf.mxu3 }
  0xcd   : > { %v645_v61 = vpop.f32.mrf.mxu2  ;;  %v750_v63 = vpop.f32.mrf.mxu0 }
  0xce   : > { %v586_v62 = vpop.f32.mrf.mxu1  ;;  %v706_v2 = vpop.f32.mrf.mxu3 }
  0xcf   : > { %v595_v1 = vadd.f32 %v586_v62, %v554_v59 }
  0xd1   : > { %v652_v6 = vadd.f32 %v643_v51, %v595_v1 }
  0xd3   : > { %v713_v7 = vadd.f32 %v704_v55, %v652_v6 }
  0xd5   : > { %v759_v12 = vadd.f32 %v750_v63, %v713_v7  ;;  %v648_v13 = vpop.f32.mrf.mxu2  ;;  %v752_v15 = vpop.f32.mrf.mxu0 }
  0xd6   : > { %v588_v14 = vpop.f32.mrf.mxu1  ;;  %v709_v17 = vpop.f32.mrf.mxu3 }
  0xd7   : > { %762 = vst [vmem:[#allocation2 + $0x10] sm:$0xff] %v759_v12  ;;  %v596_v16 = vadd.f32 %v588_v14, %v555_v10 }
  0xd9   : > { %v653_v19 = vadd.f32 %v645_v61, %v596_v16 }
  0xdb   : > { %v714_v20 = vadd.f32 %v706_v2, %v653_v19 }
  0xdd   : > { %v760_v22 = vadd.f32 %v752_v15, %v714_v20  ;;  %v650_v24 = vpop.f32.mrf.mxu2  ;;  %v755_v23 = vpop.f32.mrf.mxu0 }
  0xde   : > { %v591_v25 = vpop.f32.mrf.mxu1  ;;  %v711_v27 = vpop.f32.mrf.mxu3 }
  0xdf   : > { %763 = vst [vmem:[#allocation2] sm:$0xff] %v760_v22  ;;  %v597_v26 = vadd.f32 %v591_v25, %v556_v21 }
  0xe1   : > { %v654_v28 = vadd.f32 %v648_v13, %v597_v26 }
  0xe3   : > { %v715_v29 = vadd.f32 %v709_v17, %v654_v28  ;;  %768 = sbr.rel (%p1042_p9) target bundleno = 246 (0xf6), region = 40 }
  0xe5   : > { %v761_v30 = vadd.f32 %v755_v23, %v715_v29  ;;  %v757_v32 = vpop.f32.mrf.mxu0 }
  0xe6   : > { %v593_v31 = vpop.f32.mrf.mxu1 }
  0xe7   : > { %764 = vst [vmem:[#allocation2 + $0x8] sm:$0xff] %v761_v30 }
  0xe8   : > { %v769_v4 = vld [vmem:[#allocation2 + $0x10] sm:$0xff]  ;;  %v770_v9 = vld [vmem:[#allocation2] sm:$0xff] }
  0xe9   : > { %v1130_v33 = vld [vmem:[%s1368_s2] ss:$0 sm:$0xff] }
  0xea   : > { %v776_v35 = vadd.f32 %v1130_v33, %v769_v4  ;;  %v777_v36 = vadd.f32 %v1130_v33, %v770_v9 }
  0xec   : > { %v779_v38 = vmax.f32 %v776_v35, 0.0  ;;  %v780_v39 = vmax.f32 %v777_v36, 0.0 }
  0xee   : > { %v771_v34 = vld [vmem:[#allocation2 + $0x8] sm:$0xff]  ;;  %v1067_v41 = vpack.c.bf16 %v780_v39, %v779_v38 }
  0xef   : > { %v778_v37 = vadd.f32 %v1130_v33, %v771_v34 }
  0xf0   : > { %1068 = vst [vmem:[%s1256_s4] sm:$0xff] %v1067_v41  }
  0xf1   : > { %v781_v40 = vmax.f32 %v778_v37, 0.0 }
  0xf3   : > { %v784_v42 = vpack.c.bf16 %v781_v40, %v781_v40 }
  0xf5   : > { %787 = vst [vmem:[%s1256_s4 + $0x8] sm:$0xf] %v784_v42 }
  0xf6 PF: > { %s13_s18 = sadd.s32 1, %s1185_s18   ;;  %s1370_s12 = smov %s1173_s15 }
  0xf7   : > { %p10_p10 = scmp.ge.s32.totalorder %s13_s18, 26   ;;  %s1371_s13 = smov %s1177_s16 }
  0xf8   : > { %s1372_s14 = smov %s1181_s17  ;;  %s1373_s15 = smov %s1377_s19 }
  0xf9   : > { %s1374_s16 = smov %s1381_s20  ;;  %s1375_s17 = smov %s1385_s21 }
  0xfa   :  { %12 = sbr.rel (!%p10_p10) target bundleno = 4 (0x4), region = 85 }

// kernel: _repvgg_forward_impl.11
= control target key start
LH: loop header
LB: loop body
LE: loop exit
PB: predicated region body
PF: predicated region fallthrough
CT: control target
= control target key end

     0   :  { %s1077_s12 = smov 0   ;;  %s1079_s13 = smov 0   ;;  %s1188_s0 = inlined_call_operand.vmem [shape: bf16[8,4,6,32], index: 0, kind: input, shape index: {}]   ;;  %s1189_s1 = inlined_call_operand.vmem [shape: bf16[27,32,128], index: 1, kind: input, shape index: {}]   ;;  %s1190_s2 = inlined_call_operand.vmem [shape: f32[1,128], index: 2, kind: input, shape index: {}]   ;;  %s1191_s3 = inlined_call_operand.vmem [shape: bf16[2,2,128], index: 3, kind: output, shape index: {}]  }
   0x1   :  { %s1081_s14 = smov 0   ;;  %s1083_s15 = smov 0  }
   0x2   :  { %s1085_s16 = smov 0  }
   0x3 LB: > { %s28_s17 = sadd.s32 1, %s1046_s14  ;;  %s39_s18 = sadd.s32 1, %s1050_s15  ;;  %s1054_s16 = sphi %s1085_s16, %s13_s16   ;;  %s1050_s15 = sphi %s1083_s15, %s1195_s15   ;;  %s1046_s14 = sphi %s1081_s14, %s1194_s14   ;;  %s1042_s13 = sphi %s1079_s13, %s1193_s13   ;;  %s1038_s12 = sphi %s1077_s12, %s1192_s12  }
   0x4   : > { %p29_p0 = scmp.ge.s32.totalorder %s28_s17, 3  ;;  %p818_p1 = scmp.ge.s32.totalorder %s1054_s16, 1 }
   0x5   : > { %p200_p2 = scmp.lt.s32.totalorder %s1054_s16, 7 }
   0x6   : > { %s1197_s17 = smov (%p29_p0, %s28_s17), 0  ;;  %s1199_s18 = smov (!%p29_p0, %s39_s18), %s1050_s15 }
   0x7   : > { %p201_p3 = pnand %p818_p1, %p200_p2  ;;  %p41_p4 = scmp.ge.s32.totalorder %s1199_s18, 2 }
   0x8   : > { %s819_s19 = sshll.u32 (!%p201_p3), %s1042_s13, 2  ;;  %p258_p5 = scmp.lt.s32.totalorder (!%p201_p3), %s1042_s13, 1 }
   0x9   : > { %s1201_s18 = smov (%p41_p4, %s1199_s18), 0  ;;  %204 = sbr.rel (%p201_p3) target bundleno = 209 (0xd1), region = 32 }
   0xa   : > { %s240_s20 = sadd.s32 (!%p201_p3), %s1038_s12, %s819_s19  ;;  %p822_p7 = scmp.ne.s32.totalorder (!%p201_p3), %s1038_s12, 0 }
   0xb   : > { %p241_p6 = scmp.lt.s32.totalorder (!%p201_p3), %s240_s20, 7 }
   0xe   : > { %s1203_s13 = smov (!%p258_p5, %s1042_s13), 1  ;;  %s1205_s20 = smov (!%p241_p6, %s240_s20), 7 }
   0xf   : > { %s263_s23 = scalar_lea.vmem %s1191_s3, %s1203_s13  ;;  %s954_s24 = sshll.u32 %s1205_s20, 4 }
  0x10   : > { %s1119_s27 = scalar_lea.vmem %s1188_s0, %s954_s24  ;;  %269 = sbr.rel (%p822_p7) target bundleno = 23 (0x17), region = 36 }
  0x15   : > { %v1056_v0 = vmov 0.0  }
  0x16   : > { %270 = vst [vmem:[#allocation2] sm:$0x3] %v1056_v0 }
  0x17 PF: > { %s955_s28 = smul.u32 144, %s1038_s12  ;;  %v350_v1 = vld [vmem:[%s1119_s27] sm:$0x3]  ;;  %v893_v14 = vld [vmem:[%s1119_s27 + $0x8] sm:$0x3]  ;;  %vm293_vm0 = vcmask 261120  }
  0x18   : > { %v360_v2 = vunpack.c.l.b16 %v350_v1  ;;  %v272_v18 = vld [vmem:[%s1119_s27] sm:$0x1]  ;;  %v834_v20 = vld [vmem:[%s1119_s27 + $0x4] sm:$0x1]  ;;  %v486_v21 = vunpack.c.l.b16 %v893_v14  ;;  %v863_v22 = vld [vmem:[%s1119_s27 + $0x8] sm:$0x1] }
  0x19   : > { %s1127_s4 = scalar_lea.vmem %s1189_s1, %s955_s28  ;;  %v524_v28 = vld [vmem:[%s1119_s27] sm:$0x2]  ;;  %v922_v32 = vld [vmem:[%s1119_s27 + $0x4] sm:$0x2]  ;;  %v878_v44 = vld [vmem:[%s1119_s27 + $0xc] sm:$0x1] }
  0x1a   : > { %v957_v3 = vld [vmem:[%s1127_s4 + $0x8] sm:$0xff]  ;;  %v959_v5 = vld [vmem:[%s1127_s4 + $0x18] sm:$0xff]  ;;  %v361_v6 = vpack.c.b16 %v360_v2, %v360_v2  ;;  %v956_v8 = vld [vmem:[%s1127_s4] sm:$0xff]  ;;  %v487_v29 = vpack.c.b16 %v486_v21, %v486_v21  ;;  %v534_v33 = vunpack.c.l.b16 %v524_v28  ;;  %v576_v36 = vunpack.c.l.b16 %v922_v32  ;;  %p951_p8 = scmp.ne.s32.totalorder %s1038_s12, 2 }
  0x1b   : > { %v961_v4 = vld [vmem:[%s1127_s4 + $0x28] sm:$0xff]  ;;  %v963_v7 = vld [vmem:[%s1127_s4 + $0x38] sm:$0xff]  ;;  %303 = vmatpush.bf16.msra.mxu0 %v957_v3  ;;  %v960_v9 = vld [vmem:[%s1127_s4 + $0x20] sm:$0xff]  ;;  %342 = vmatpush.bf16.msra.mxu1 %v959_v5 }
  0x1c   : > { %390 = vmatpush.bf16.msra.mxu2 %v961_v4  ;;  %v363_v10 = vshrl.u32 %v361_v6, 16  ;;  %v365_v11 = vshll.u32 %v361_v6, 16  ;;  %429 = vmatpush.bf16.msra.mxu3 %v963_v7  ;;  %v958_v12 = vld [vmem:[%s1127_s4 + $0x10] sm:$0xff]  ;;  %v965_v16 = vld [vmem:[%s1127_s4 + $0x48] sm:$0xff]  ;;  %v971_v23 = vld [vmem:[%s1127_s4 + $0x78] sm:$0xff]  ;;  %v491_v35 = vshll.u32 %v487_v29, 16  ;;  %v535_v37 = vpack.c.b16 %v534_v33, %v534_v33 }
  0x1d   : > { %v962_v13 = vld [vmem:[%s1127_s4 + $0x30] sm:$0xff]  ;;  %v969_v17 = vld [vmem:[%s1127_s4 + $0x68] sm:$0xff]  ;;  %v967_v24 = vld [vmem:[%s1127_s4 + $0x58] sm:$0xff]  ;;  %v489_v38 = vshrl.u32 %v487_v29, 16  ;;  %v577_v40 = vpack.c.b16 %v576_v36, %v576_v36 }
  0x1e   : > { %v367_v15 = vrot.slane %v365_v11, 1  ;;  %v964_v25 = vld [vmem:[%s1127_s4 + $0x40] sm:$0xff]  ;;  %v973_v27 = vld [vmem:[%s1127_s4 + $0x88] sm:$0xff]  ;;  %v966_v30 = vld [vmem:[%s1127_s4 + $0x50] sm:$0xff]  ;;  %v493_v39 = vrot.slane %v491_v35, 1  ;;  %v536_v42 = vrot.slane %v535_v37, 1 }
  0x1f   : > { %304 = vmatpush.bf16.msra.mxu0 %v956_v8  ;;  %343 = vmatpush.bf16.msra.mxu1 %v958_v12  ;;  %v968_v26 = vld [vmem:[%s1127_s4 + $0x60] sm:$0xff]  ;;  %v970_v31 = vld [vmem:[%s1127_s4 + $0x70] sm:$0xff]  ;;  %v578_v46 = vrot.slane %v577_v40, 1 }
  0x20   : > { %391 = vmatpush.bf16.msra.mxu2 %v960_v9  ;;  %v368_v19 = vor.u32 %v367_v15, %v363_v10  ;;  %430 = vmatpush.bf16.msra.mxu3 %v962_v13  ;;  %v972_v34 = vld [vmem:[%s1127_s4 + $0x80] sm:$0xff]  ;;  %v494_v45 = vor.u32 %v493_v39, %v489_v38 }
  0x21   : > { %v608_v41 = vld [vmem:[%s1119_s27] sm:$0x6] }
  0x22   : > { %833 = vmatmul.msk.bf16.vlgmr.msra.gmra.mxu0 %vm293_vm0, %v272_v18  ;;  %848 = vmatmul.msk.bf16.vlgmr.msra.gmra.mxu1 %vm293_vm0, %v834_v20  ;;  %v618_v43 = vunpack.c.l.b16 %v608_v41  ;;  %v271_v55 = vld [vmem:[#allocation2] sm:$0x3] }
  0x23   : > { %468 = vmatpush.bf16.msrb.mxu0 %v965_v16  ;;  %862 = vmatmul.msk.bf16.vlgmr.msra.gmra.mxu2 %vm293_vm0, %v368_v19 }
  0x24   : > { %558 = vmatpush.bf16.msrb.mxu2 %v969_v17  ;;  %877 = vmatmul.msk.bf16.vlgmr.msra.gmra.mxu3 %vm293_vm0, %v863_v22  ;;  %v619_v47 = vpack.c.b16 %v618_v43, %v618_v43 }
  0x25   : > { %600 = vmatpush.bf16.msrb.mxu3 %v971_v23  ;;  %516 = vmatpush.bf16.msrb.mxu1 %v967_v24 }
  0x26   : > { %v621_v48 = vshrl.u32 %v619_v47, 16  ;;  %v624_v49 = vshll.u32 %v619_v47, 16 }
  0x27   : > { %469 = vmatpush.bf16.msrb.mxu0 %v964_v25 }
  0x28   : > { %559 = vmatpush.bf16.msrb.mxu2 %v968_v26  ;;  %v623_v50 = vrot.slane %v621_v48, 1  ;;  %v626_v51 = vrot.slane %v624_v49, 2 }
  0x29   : > { %517 = vmatpush.bf16.msrb.mxu1 %v966_v30  ;;  %601 = vmatpush.bf16.msrb.mxu3 %v970_v31 }
  0x2a   : > { %v627_v52 = vor.u32 %v626_v51, %v623_v50 }
  0x2b   : > { %649 = vmatpush.bf16.msra.mxu0 %v973_v27 }
  0x2f   : > { %650 = vmatpush.bf16.msra.mxu0 %v972_v34 }
  0x32   : > { %892 = vmatmul.msk.bf16.vlgmr.msrb.gmra.mxu0 %vm293_vm0, %v878_v44  ;;  %907 = vmatmul.msk.bf16.vlgmr.msrb.gmra.mxu1 %vm293_vm0, %v494_v45 }
  0x33   : > { %921 = vmatmul.msk.bf16.vlgmr.msrb.gmra.mxu2 %vm293_vm0, %v536_v42 }
  0x34   : > { %936 = vmatmul.msk.bf16.vlgmr.msrb.gmra.mxu3 %vm293_vm0, %v578_v46 }
  0x42   : > { %950 = vmatmul.msk.bf16.vlgmr.msra.gmra.mxu0 %vm293_vm0, %v627_v52 }
  0x9f   : > { %v306_v53 = vpop.f32.mrf.mxu0  ;;  %v345_v54 = vpop.f32.mrf.mxu1 }
  0xa0   : > { %v310_v59 = vadd.f32 %v306_v53, %v271_v55 }
  0xa2   : > { %v349_v61 = vadd.f32 %v345_v54, %v310_v59 }
  0xa6   : > { %v393_v56 = vpop.f32.mrf.mxu2 }
  0xa7   : > { %v432_v57 = vpop.f32.mrf.mxu3  ;;  %v308_v58 = vpop.f32.mrf.mxu0  ;;  %v397_v63 = vadd.f32 %v393_v56, %v349_v61 }
  0xa8   : > { %v347_v60 = vpop.f32.mrf.mxu1 }
  0xa9   : > { %v436_v3 = vadd.f32 %v432_v57, %v397_v63 }
  0xae   : > { %v395_v62 = vpop.f32.mrf.mxu2 }
  0xaf   : > { %v434_v0 = vpop.f32.mrf.mxu3  ;;  %v471_v1 = vpop.f32.mrf.mxu0 }
  0xb0   : > { %v519_v2 = vpop.f32.mrf.mxu1  ;;  %v475_v4 = vadd.f32 %v471_v1, %v436_v3 }
  0xb2   : > { %v523_v8 = vadd.f32 %v519_v2, %v475_v4 }
  0xb6   : > { %v561_v5 = vpop.f32.mrf.mxu2 }
  0xb7   : > { %v603_v6 = vpop.f32.mrf.mxu3  ;;  %v473_v7 = vpop.f32.mrf.mxu0  ;;  %v565_v10 = vadd.f32 %v561_v5, %v523_v8 }
  0xb8   : > { %v521_v9 = vpop.f32.mrf.mxu1 }
  0xb9   : > { %v607_v12 = vadd.f32 %v603_v6, %v565_v10 }
  0xbe   : > { %v563_v11 = vpop.f32.mrf.mxu2 }
  0xbf   : > { %v605_v13 = vpop.f32.mrf.mxu3  ;;  %v652_v14 = vpop.f32.mrf.mxu0 }
  0xc0   : > { %v656_v15 = vadd.f32 %v652_v14, %v607_v12 }
  0xc2   : > { %657 = vst [vmem:[#allocation2] sm:$0x3] %v656_v15 }
  0xc3   : > { %661 = sbr.rel (%p951_p8) target bundleno = 209 (0xd1), region = 40 }
  0xc7   : > { %v654_v16 = vpop.f32.mrf.mxu0 }
  0xc8   : > { %v1015_v18 = vld [vmem:[%s1190_s2] ss:$0 sm:$0xff] }
  0xc9   : > { %v662_v17 = vld [vmem:[#allocation2] sm:$0x3] }
  0xca   : > { %v667_v19 = vadd.f32 %v1015_v18, %v662_v17 }
  0xcc   : > { %v668_v20 = vmax.f32 %v667_v19, 0.0 }
  0xce   : > { %v669_v21 = vpack.c.bf16 %v668_v20, %v668_v20 }
  0xd0   : > { %670 = vst [vmem:[%s263_s23] sm:$0x1] %v669_v21 }
  0xd1 PF: > { %s13_s16 = sadd.s32 1, %s1054_s16   ;;  %s1192_s12 = smov %s1046_s14 }
  0xd2   : > { %p10_p9 = scmp.ge.s32.totalorder %s13_s16, 8   ;;  %s1193_s13 = smov %s1050_s15 }
  0xd3   : > { %s1194_s14 = smov %s1197_s17  ;;  %s1195_s15 = smov %s1201_s18 }
  0xd4   :  { %12 = sbr.rel (!%p10_p9) target bundleno = 3 (0x3), region = 88 }

// kernel: _repvgg_forward_impl.10
= control target key start
LH: loop header
LB: loop body
LE: loop exit
PB: predicated region body
PF: predicated region fallthrough
CT: control target
= control target key end

     0   :  { %s1018_s12 = smov 0   ;;  %s1020_s13 = smov 0   ;;  %s1124_s0 = inlined_call_operand.vmem [shape: bf16[12,4,12,16], index: 0, kind: input, shape index: {}]   ;;  %s1125_s1 = inlined_call_operand.vmem [shape: bf16[27,16,128], index: 1, kind: input, shape index: {}]   ;;  %s1126_s2 = inlined_call_operand.vmem [shape: f32[1,128], index: 2, kind: input, shape index: {}]   ;;  %s1127_s3 = inlined_call_operand.vmem [shape: bf16[4,6,128], index: 3, kind: output, shape index: {}]  }
   0x1   :  { %s1022_s14 = smov 0   ;;  %s1024_s15 = smov 0  }
   0x2   :  { %s1026_s16 = smov 0   ;;  %s1028_s17 = smov 0  }
   0x3   :  { %s1030_s18 = smov 0  }
   0x4 LB: > { %s28_s19 = sadd.s32 1, %s983_s15  ;;  %s31_s20 = sadd.s32 1, %s987_s16  ;;  %s995_s18 = sphi %s1030_s18, %s13_s18   ;;  %s991_s17 = sphi %s1028_s17, %s1133_s17   ;;  %s987_s16 = sphi %s1026_s16, %s1132_s16   ;;  %s983_s15 = sphi %s1024_s15, %s1131_s15   ;;  %s979_s14 = sphi %s1022_s14, %s1130_s14   ;;  %s975_s13 = sphi %s1020_s13, %s1129_s13   ;;  %s971_s12 = sphi %s1018_s12, %s1128_s12  }
   0x5   : > { %p29_p0 = scmp.ge.s32.totalorder %s28_s19, 3  ;;  %p780_p1 = scmp.ge.s32.totalorder %s995_s18, 1 }
   0x6   : > { %p202_p2 = scmp.lt.s32.totalorder %s995_s18, 13  ;;  %s39_s21 = sadd.s32 1, %s991_s17 }
   0x7   : > { %s1135_s19 = smov (%p29_p0, %s28_s19), 0  ;;  %s1137_s20 = smov (!%p29_p0, %s31_s20), %s987_s16 }
   0x8   : > { %p203_p3 = pnand %p780_p1, %p202_p2  ;;  %p33_p4 = scmp.ge.s32.totalorder %s1137_s20, 2 }
   0x9   : > { %s241_s22 = smul.u32 (!%p203_p3), 6, %s979_s14  ;;  %s781_s23 = sshll.u32 (!%p203_p3), %s975_s13, 1 }
   0xa   : > { %s1139_s20 = smov (%p33_p4, %s1137_s20), 0  ;;  %s1141_s21 = smov (!%p33_p4, %s39_s21), %s991_s17 }
   0xb   : > { %p41_p5 = scmp.ge.s32.totalorder %s1141_s21, 2  ;;  %206 = sbr.rel (%p203_p3) target bundleno = 208 (0xd0), region = 32 }
   0xc   : > { %s784_s24 = sshll.u32 (!%p203_p3), %s979_s14, 1  ;;  %s243_s25 = sadd.s32 (!%p203_p3), %s781_s23, %s241_s22 }
   0xd   : > { %s1143_s21 = smov (%p41_p5, %s1141_s21), 0  ;;  %s262_s26 = sadd.s32 (!%p203_p3), %s975_s13, %s784_s24 }
   0xe   : > { %s244_s27 = sadd.s32 (!%p203_p3), %s971_s12, %s243_s25  ;;  %p263_p6 = scmp.lt.s32.totalorder (!%p203_p3), %s262_s26, 3 }
   0xf   : > { %p245_p7 = scmp.lt.s32.totalorder (!%p203_p3), %s244_s27, 11  ;;  %p786_p8 = scmp.ne.s32.totalorder (!%p203_p3), %s971_s12, 0 }
  0x10   : > { %s1145_s26 = smov (!%p263_p6, %s262_s26), 3 }
  0x11   : > { %s1147_s27 = smov (!%p245_p7, %s244_s27), 11  ;;  %s785_s28 = sshll.u32 %s1145_s26, 2 }
  0x12   : > { %s871_s29 = sshll.u32 %s1147_s27, 5  ;;  %s1066_s5 = scalar_lea.vmem %s1127_s3, %s785_s28 }
  0x13   : > { %s1071_s8 = scalar_lea.vmem %s1124_s0, %s871_s29  ;;  %276 = sbr.rel (%p786_p8) target bundleno = 26 (0x1a), region = 36 }
  0x18   : > { %v997_v0 = vmov 0.0  }
  0x19   : > { %277 = vst [vmem:[#allocation2] sm:$0x3f] %v997_v0 }
  0x1a PF: > { %s872_s9 = smul.u32 72, %s971_s12  ;;  %v341_v1 = vld [vmem:[%s1071_s8] sm:$0xf]  ;;  %v829_v3 = vld [vmem:[%s1071_s8 + $0x10] sm:$0xf]  ;;  %vm292_vm0 = vcmask 130048  }
  0x1b   : > { %v349_v2 = vunpack.c.l.b16 %v341_v1  ;;  %v279_v7 = vld [vmem:[%s1071_s8] sm:$0x7]  ;;  %v794_v8 = vld [vmem:[%s1071_s8 + $0x8] sm:$0x7]  ;;  %v484_v10 = vld [vmem:[%s1071_s8 + $0x4] sm:$0x1]  ;;  %v451_v16 = vunpack.c.l.b16 %v829_v3 }
  0x1c   : > { %s283_s13 = scalar_lea.vmem %s1125_s1, %s872_s9  ;;  %v483_v9 = vld [vmem:[%s1071_s8] sm:$0xe]  ;;  %v811_v14 = vld [vmem:[%s1071_s8 + $0x10] sm:$0x7]  ;;  %v853_v22 = vld [vmem:[%s1071_s8 + $0x8] sm:$0xe]  ;;  %v494_v27 = vunpack.c.l.b16 %v484_v10 }
  0x1d   : > { %v873_v4 = vld [vmem:[%s283_s13] sm:$0xff]  ;;  %v874_v5 = vld [vmem:[%s283_s13 + $0x8] sm:$0xff]  ;;  %v875_v6 = vld [vmem:[%s283_s13 + $0x10] sm:$0xff]  ;;  %v350_v13 = vpack.c.b16 %v349_v2, %v349_v2  ;;  %v452_v25 = vpack.c.b16 %v451_v16, %v451_v16  ;;  %v493_v26 = vunpack.c.l.b16 %v483_v9  ;;  %p868_p9 = scmp.ne.s32.totalorder %s971_s12, 2 }
  0x1e   : > { %v876_v11 = vld [vmem:[%s283_s13 + $0x18] sm:$0xff]  ;;  %v877_v12 = vld [vmem:[%s283_s13 + $0x20] sm:$0xff]  ;;  %v879_v15 = vld [vmem:[%s283_s13 + $0x30] sm:$0xff]  ;;  %303 = vmatpush.bf16.msra.mxu0 %v873_v4  ;;  %334 = vmatpush.bf16.msra.mxu1 %v874_v5 }
  0x1f   : > { %v881_v17 = vld [vmem:[%s283_s13 + $0x38] sm:$0xff]  ;;  %v878_v18 = vld [vmem:[%s283_s13 + $0x28] sm:$0xff]  ;;  %v882_v19 = vld [vmem:[%s283_s13 + $0x40] sm:$0xff]  ;;  %374 = vmatpush.bf16.msra.mxu2 %v875_v6  ;;  %405 = vmatpush.bf16.msra.mxu3 %v876_v11  ;;  %v352_v20 = vshrl.u32 %v350_v13, 16  ;;  %v354_v21 = vshll.u32 %v350_v13, 16  ;;  %v456_v30 = vshll.u32 %v452_v25, 16  ;;  %v495_v31 = vpack.c.b16 %v494_v27, %v493_v26 }
  0x20   : > { %v880_v23 = vld [vmem:[%s1071_s8 + $0x8] sm:$0x10]  ;;  %v454_v34 = vshrl.u32 %v452_v25, 16  ;;  %v820_v43 = vld [vmem:[%s1071_s8 + $0x18] sm:$0x7] }
  0x21   : > { %793 = vmatmul.msk.bf16.vlgmr.msra.gmra.mxu0 %vm292_vm0, %v279_v7  ;;  %802 = vmatmul.msk.bf16.vlgmr.msra.gmra.mxu1 %vm292_vm0, %v794_v8  ;;  %v356_v24 = vrot.slane %v354_v21, 1  ;;  %v854_v28 = vor.u32 %v880_v23, %v853_v22  ;;  %v458_v35 = vrot.slane %v456_v30, 1  ;;  %v497_v36 = vshrl.u32 %v495_v31, 16  ;;  %v571_v46 = vld [vmem:[%s1071_s8] sm:$0xc] }
  0x22   : > { %436 = vmatpush.bf16.msrb.mxu0 %v877_v12  ;;  %819 = vmatmul.msk.bf16.vlgmr.msra.gmra.mxu3 %vm292_vm0, %v811_v14  ;;  %v500_v37 = vshll.u32 %v495_v31, 16  ;;  %v579_v47 = vunpack.c.l.b16 %v571_v46  ;;  %v278_v52 = vld [vmem:[#allocation2] sm:$0x3f] }
  0x23   : > { %520 = vmatpush.bf16.msrb.mxu2 %v879_v15  ;;  %476 = vmatpush.bf16.msrb.mxu1 %v878_v18  ;;  %v357_v29 = vor.u32 %v356_v24, %v352_v20  ;;  %v541_v32 = vshrl.u32 %v854_v28, 16  ;;  %v544_v33 = vshll.u32 %v854_v28, 16  ;;  %v459_v40 = vor.u32 %v458_v35, %v454_v34 }
  0x24   : > { %564 = vmatpush.bf16.msrb.mxu3 %v881_v17  ;;  %v499_v41 = vrot.slane %v497_v36, 1  ;;  %v502_v42 = vrot.slane %v500_v37, 2  ;;  %v580_v48 = vpack.c.b16 %v494_v27, %v579_v47 }
  0x25   : > { %810 = vmatmul.msk.bf16.vlgmr.msra.gmra.mxu2 %vm292_vm0, %v357_v29  ;;  %v543_v38 = vrot.slane %v541_v32, 1  ;;  %v546_v39 = vrot.slane %v544_v33, 2 }
  0x26   : > { %598 = vmatpush.bf16.msra.mxu0 %v882_v19  ;;  %v503_v45 = vor.u32 %v502_v42, %v499_v41  ;;  %v581_v49 = vrot.slane %v580_v48, 2 }
  0x27   : > { %v547_v44 = vor.u32 %v546_v39, %v543_v38 }
  0x31   : > { %828 = vmatmul.msk.bf16.vlgmr.msrb.gmra.mxu0 %vm292_vm0, %v820_v43  ;;  %837 = vmatmul.msk.bf16.vlgmr.msrb.gmra.mxu1 %vm292_vm0, %v459_v40 }
  0x32   : > { %859 = vmatmul.msk.bf16.vlgmr.msrb.gmra.mxu3 %vm292_vm0, %v547_v44 }
  0x35   : > { %845 = vmatmul.msk.bf16.vlgmr.msrb.gmra.mxu2 %vm292_vm0, %v503_v45 }
  0x41   : > { %867 = vmatmul.msk.bf16.vlgmr.msra.gmra.mxu0 %vm292_vm0, %v581_v49 }
  0x9e   : > { %v305_v50 = vpop.f32.mrf.mxu0  ;;  %v336_v51 = vpop.f32.mrf.mxu1 }
  0x9f   : > { %v309_v56 = vadd.f32 %v305_v50, %v278_v52 }
  0xa1   : > { %v340_v58 = vadd.f32 %v336_v51, %v309_v56 }
  0xa5   : > { %v407_v53 = vpop.f32.mrf.mxu3 }
  0xa6   : > { %v307_v54 = vpop.f32.mrf.mxu0  ;;  %v338_v55 = vpop.f32.mrf.mxu1 }
  0xa8   : > { %v376_v57 = vpop.f32.mrf.mxu2 }
  0xa9   : > { %v380_v59 = vadd.f32 %v376_v57, %v340_v58 }
  0xab   : > { %v411_v0 = vadd.f32 %v407_v53, %v380_v59 }
  0xad   : > { %v409_v60 = vpop.f32.mrf.mxu3 }
  0xae   : > { %v438_v61 = vpop.f32.mrf.mxu0  ;;  %v478_v62 = vpop.f32.mrf.mxu1 }
  0xaf   : > { %v442_v1 = vadd.f32 %v438_v61, %v411_v0 }
  0xb0   : > { %v378_v63 = vpop.f32.mrf.mxu2 }
  0xb1   : > { %v482_v5 = vadd.f32 %v478_v62, %v442_v1 }
  0xb5   : > { %v566_v2 = vpop.f32.mrf.mxu3 }
  0xb6   : > { %v440_v3 = vpop.f32.mrf.mxu0  ;;  %v480_v4 = vpop.f32.mrf.mxu1 }
  0xb8   : > { %v522_v6 = vpop.f32.mrf.mxu2 }
  0xb9   : > { %v526_v7 = vadd.f32 %v522_v6, %v482_v5 }
  0xbb   : > { %v570_v8 = vadd.f32 %v566_v2, %v526_v7 }
  0xbd   : > { %v568_v9 = vpop.f32.mrf.mxu3 }
  0xbe   : > { %v600_v10 = vpop.f32.mrf.mxu0 }
  0xbf   : > { %v604_v11 = vadd.f32 %v600_v10, %v570_v8 }
  0xc0   : > { %v524_v12 = vpop.f32.mrf.mxu2 }
  0xc1   : > { %605 = vst [vmem:[#allocation2] sm:$0x3f] %v604_v11 }
  0xc2   : > { %609 = sbr.rel (%p868_p9) target bundleno = 208 (0xd0), region = 40 }
  0xc6   : > { %v602_v13 = vpop.f32.mrf.mxu0 }
  0xc7   : > { %v940_v15 = vld [vmem:[%s1126_s2] ss:$0 sm:$0xff] }
  0xc8   : > { %v610_v14 = vld [vmem:[#allocation2] sm:$0x3f] }
  0xc9   : > { %v615_v16 = vadd.f32 %v940_v15, %v610_v14 }
  0xcb   : > { %v616_v17 = vmax.f32 %v615_v16, 0.0 }
  0xcd   : > { %v617_v18 = vpack.c.bf16 %v616_v17, %v616_v17 }
  0xcf   : > { %618 = vst [vmem:[%s1066_s5] sm:$0x7] %v617_v18 }
  0xd0 PF: > { %s13_s18 = sadd.s32 1, %s995_s18   ;;  %s1128_s12 = smov %s983_s15 }
  0xd1   : > { %p10_p10 = scmp.ge.s32.totalorder %s13_s18, 14   ;;  %s1129_s13 = smov %s987_s16 }
  0xd2   : > { %s1130_s14 = smov %s991_s17  ;;  %s1131_s15 = smov %s1135_s19 }
  0xd3   : > { %s1132_s16 = smov %s1139_s20  ;;  %s1133_s17 = smov %s1143_s21 }
  0xd4   :  { %12 = sbr.rel (!%p10_p10) target bundleno = 4 (0x4), region = 88 }

// kernel: _repvgg_forward_impl.12
= control target key start
LH: loop header
LB: loop body
LE: loop exit
PB: predicated region body
PF: predicated region fallthrough
CT: control target
= control target key end

     0   :  { %s1340_s12 = smov 0   ;;  %s1342_s13 = smov 0   ;;  %s1469_s0 = inlined_call_operand.vmem [shape: bf16[6,4,6,64], index: 0, kind: input, shape index: {}]   ;;  %s1470_s1 = inlined_call_operand.vmem [shape: bf16[27,64,128], index: 1, kind: input, shape index: {}]   ;;  %s1471_s2 = inlined_call_operand.vmem [shape: f32[1,128], index: 2, kind: input, shape index: {}]   ;;  %s1472_s3 = inlined_call_operand.vmem [shape: bf16[2,2,128], index: 3, kind: output, shape index: {}]  }
   0x1   :  { %s1344_s14 = smov 0   ;;  %s1346_s15 = smov 0  }
   0x2   :  { %s1348_s16 = smov 0  }
   0x3 LB: > { %s28_s17 = sadd.s32 1, %s1309_s14  ;;  %s39_s18 = sadd.s32 1, %s1313_s15  ;;  %s1317_s16 = sphi %s1348_s16, %s13_s16   ;;  %s1313_s15 = sphi %s1346_s15, %s1476_s15   ;;  %s1309_s14 = sphi %s1344_s14, %s1475_s14   ;;  %s1305_s13 = sphi %s1342_s13, %s1474_s13   ;;  %s1301_s12 = sphi %s1340_s12, %s1473_s12  }
   0x4   : > { %p29_p0 = scmp.ge.s32.totalorder %s28_s17, 3  ;;  %p960_p1 = scmp.ge.s32.totalorder %s1317_s16, 1 }
   0x5   : > { %p200_p2 = scmp.lt.s32.totalorder %s1317_s16, 7 }
   0x6   : > { %s1478_s17 = smov (%p29_p0, %s28_s17), 0  ;;  %s1480_s18 = smov (!%p29_p0, %s39_s18), %s1313_s15 }
   0x7   : > { %p201_p3 = pnand %p960_p1, %p200_p2  ;;  %p41_p4 = scmp.ge.s32.totalorder %s1480_s18, 2 }
   0x8   : > { %s237_s19 = smul.u32 (!%p201_p3), 3, %s1305_s13  ;;  %p258_p5 = scmp.lt.s32.totalorder (!%p201_p3), %s1305_s13, 1 }
   0x9   : > { %s1482_s18 = smov (%p41_p4, %s1480_s18), 0  ;;  %204 = sbr.rel (%p201_p3) target bundleno = 217 (0xd9), region = 32 }
   0xa   : > { %s240_s20 = sadd.s32 (!%p201_p3), %s1301_s12, %s237_s19  ;;  %p963_p7 = scmp.ne.s32.totalorder (!%p201_p3), %s1301_s12, 0 }
   0xb   : > { %p241_p6 = scmp.lt.s32.totalorder (!%p201_p3), %s240_s20, 5 }
   0xe   : > { %s1484_s13 = smov (!%p258_p5, %s1305_s13), 1  ;;  %s1486_s20 = smov (!%p241_p6, %s240_s20), 5 }
   0xf   : > { %s263_s23 = scalar_lea.vmem %s1472_s3, %s1484_s13  ;;  %s1199_s24 = sshll.u32 %s1486_s20, 4 }
  0x10   : > { %s1382_s27 = scalar_lea.vmem %s1469_s0, %s1199_s24  ;;  %269 = sbr.rel (%p963_p7) target bundleno = 23 (0x17), region = 36 }
  0x15   : > { %v1319_v0 = vmov 0.0  }
  0x16   : > { %270 = vst [vmem:[#allocation2] sm:$0x3] %v1319_v0 }
  0x17 PF: > { %s1200_s28 = smul.u32 288, %s1301_s12  ;;  %v382_v1 = vld [vmem:[%s1382_s27] sm:$0x3]  ;;  %v1090_v23 = vld [vmem:[%s1382_s27 + $0x8] sm:$0x3]  ;;  %vm309_vm0 = vcmask 523264  }
  0x18   : > { %v396_v2 = vunpack.c.l.b16 %v382_v1  ;;  %v272_v27 = vld [vmem:[%s1382_s27] sm:$0x1]  ;;  %v983_v28 = vld [vmem:[%s1382_s27 + $0x4] sm:$0x1]  ;;  %v570_v29 = vunpack.c.l.b16 %v1090_v23  ;;  %v1036_v30 = vld [vmem:[%s1382_s27 + $0x8] sm:$0x1] }
  0x19   : > { %s1390_s4 = scalar_lea.vmem %s1470_s1, %s1200_s28  ;;  %v620_v35 = vld [vmem:[%s1382_s27] sm:$0x2]  ;;  %v1143_v39 = vld [vmem:[%s1382_s27 + $0x4] sm:$0x2]  ;;  %v1063_v59 = vld [vmem:[%s1382_s27 + $0xc] sm:$0x1] }
  0x1a   : > { %v1204_v3 = vld [vmem:[%s1390_s4 + $0x18] sm:$0xff]  ;;  %v397_v7 = vpack.c.b16 %v396_v2, %v396_v2  ;;  %v1203_v8 = vld [vmem:[%s1390_s4 + $0x10] sm:$0xff]  ;;  %v1202_v13 = vld [vmem:[%s1390_s4 + $0x8] sm:$0xff]  ;;  %v571_v36 = vpack.c.b16 %v570_v29, %v570_v29  ;;  %v634_v42 = vunpack.c.l.b16 %v620_v35  ;;  %v692_v44 = vunpack.c.l.b16 %v1143_v39  ;;  %p1196_p8 = scmp.ne.s32.totalorder %s1301_s12, 2 }
  0x1b   : > { %v1212_v4 = vld [vmem:[%s1390_s4 + $0x58] sm:$0xff]  ;;  %317 = vmatpush.bf16.msra.mxu0 %v1204_v3  ;;  %v1211_v9 = vld [vmem:[%s1390_s4 + $0x50] sm:$0xff]  ;;  %v1210_v14 = vld [vmem:[%s1390_s4 + $0x48] sm:$0xff] }
  0x1c   : > { %v1208_v5 = vld [vmem:[%s1390_s4 + $0x38] sm:$0xff]  ;;  %436 = vmatpush.bf16.msra.mxu2 %v1212_v4  ;;  %v1207_v10 = vld [vmem:[%s1390_s4 + $0x30] sm:$0xff]  ;;  %v401_v12 = vshll.u32 %v397_v7, 16  ;;  %v1206_v15 = vld [vmem:[%s1390_s4 + $0x28] sm:$0xff]  ;;  %v399_v17 = vshrl.u32 %v397_v7, 16  ;;  %v575_v43 = vshll.u32 %v571_v36, 16  ;;  %v635_v49 = vpack.c.b16 %v634_v42, %v634_v42 }
  0x1d   : > { %v1216_v6 = vld [vmem:[%s1390_s4 + $0x78] sm:$0xff]  ;;  %372 = vmatpush.bf16.msra.mxu1 %v1208_v5  ;;  %v1215_v11 = vld [vmem:[%s1390_s4 + $0x70] sm:$0xff]  ;;  %v1214_v16 = vld [vmem:[%s1390_s4 + $0x68] sm:$0xff]  ;;  %v573_v51 = vshrl.u32 %v571_v36, 16  ;;  %v693_v53 = vpack.c.b16 %v692_v44, %v692_v44 }
  0x1e   : > { %491 = vmatpush.bf16.msra.mxu3 %v1216_v6  ;;  %v403_v18 = vrot.slane %v401_v12, 1  ;;  %v1201_v19 = vld [vmem:[%s1390_s4] sm:$0xff]  ;;  %v1220_v24 = vld [vmem:[%s1390_s4 + $0x98] sm:$0xff]  ;;  %v1219_v33 = vld [vmem:[%s1390_s4 + $0x90] sm:$0xff]  ;;  %v577_v52 = vrot.slane %v575_v43, 1  ;;  %v636_v57 = vrot.slane %v635_v49, 1 }
  0x1f   : > { %318 = vmatpush.bf16.msra.mxu0 %v1203_v8  ;;  %v1209_v20 = vld [vmem:[%s1390_s4 + $0x40] sm:$0xff]  ;;  %v1228_v25 = vld [vmem:[%s1390_s4 + $0xd8] sm:$0xff]  ;;  %v1227_v34 = vld [vmem:[%s1390_s4 + $0xd0] sm:$0xff]  ;;  %v694_v61 = vrot.slane %v693_v53, 1 }
  0x20   : > { %437 = vmatpush.bf16.msra.mxu2 %v1211_v9  ;;  %v1205_v21 = vld [vmem:[%s1390_s4 + $0x20] sm:$0xff]  ;;  %v404_v26 = vor.u32 %v403_v18, %v399_v17  ;;  %v1224_v31 = vld [vmem:[%s1390_s4 + $0xb8] sm:$0xff]  ;;  %v1223_v37 = vld [vmem:[%s1390_s4 + $0xb0] sm:$0xff]  ;;  %v578_v60 = vor.u32 %v577_v52, %v573_v51 }
  0x21   : > { %373 = vmatpush.bf16.msra.mxu1 %v1207_v10  ;;  %v1213_v22 = vld [vmem:[%s1390_s4 + $0x60] sm:$0xff]  ;;  %v1232_v32 = vld [vmem:[%s1390_s4 + $0xf8] sm:$0xff]  ;;  %v1231_v38 = vld [vmem:[%s1390_s4 + $0xf0] sm:$0xff] }
  0x22   : > { %492 = vmatpush.bf16.msra.mxu3 %v1215_v11  ;;  %v1218_v40 = vld [vmem:[%s1390_s4 + $0x88] sm:$0xff]  ;;  %v1217_v47 = vld [vmem:[%s1390_s4 + $0x80] sm:$0xff]  ;;  %v1236_v50 = vld [vmem:[%s1390_s4 + $0x118] sm:$0xff] }
  0x23   : > { %319 = vmatpush.bf16.msra.mxu0 %v1202_v13  ;;  %v1226_v41 = vld [vmem:[%s1390_s4 + $0xc8] sm:$0xff]  ;;  %v1225_v48 = vld [vmem:[%s1390_s4 + $0xc0] sm:$0xff]  ;;  %v1235_v62 = vld [vmem:[%s1390_s4 + $0x110] sm:$0xff] }
  0x24   : > { %438 = vmatpush.bf16.msra.mxu2 %v1210_v14  ;;  %v1222_v45 = vld [vmem:[%s1390_s4 + $0xa8] sm:$0xff]  ;;  %v736_v54 = vld [vmem:[%s1382_s27] sm:$0x6] }
  0x25   : > { %374 = vmatpush.bf16.msra.mxu1 %v1206_v15  ;;  %v1230_v46 = vld [vmem:[%s1390_s4 + $0xe8] sm:$0xff]  ;;  %v1221_v55 = vld [vmem:[%s1390_s4 + $0xa0] sm:$0xff]  ;;  %v750_v58 = vunpack.c.l.b16 %v736_v54 }
  0x26   : > { %493 = vmatpush.bf16.msra.mxu3 %v1214_v16  ;;  %v1229_v56 = vld [vmem:[%s1390_s4 + $0xe0] sm:$0xff]  ;;  %v1234_v0 = vld [vmem:[%s1390_s4 + $0x108] sm:$0xff] }
  0x27   : > { %320 = vmatpush.bf16.msra.mxu0 %v1201_v19  ;;  %v751_v63 = vpack.c.b16 %v750_v58, %v750_v58  ;;  %v1233_v3 = vld [vmem:[%s1390_s4 + $0x100] sm:$0xff] }
  0x28   : > { %439 = vmatpush.bf16.msra.mxu2 %v1209_v20  ;;  %v271_v9 = vld [vmem:[#allocation2] sm:$0x3] }
  0x29   : > { %375 = vmatpush.bf16.msra.mxu1 %v1205_v21  ;;  %v753_v1 = vshrl.u32 %v751_v63, 16  ;;  %v756_v2 = vshll.u32 %v751_v63, 16 }
  0x2a   : > { %494 = vmatpush.bf16.msra.mxu3 %v1213_v22  ;;  %982 = vmatmul.msk.bf16.vlgmr.msra.gmra.mxu0 %vm309_vm0, %v272_v27 }
  0x2b   : > { %546 = vmatpush.bf16.msrb.mxu0 %v1220_v24  ;;  %1035 = vmatmul.msk.bf16.vlgmr.msra.gmra.mxu2 %vm309_vm0, %v404_v26  ;;  %v755_v4 = vrot.slane %v753_v1, 1  ;;  %v758_v5 = vrot.slane %v756_v2, 2 }
  0x2c   : > { %668 = vmatpush.bf16.msrb.mxu2 %v1228_v25  ;;  %1009 = vmatmul.msk.bf16.vlgmr.msra.gmra.mxu1 %vm309_vm0, %v983_v28 }
  0x2d   : > { %1062 = vmatmul.msk.bf16.vlgmr.msra.gmra.mxu3 %vm309_vm0, %v1036_v30  ;;  %610 = vmatpush.bf16.msrb.mxu1 %v1224_v31  ;;  %v759_v6 = vor.u32 %v758_v5, %v755_v4 }
  0x2e   : > { %726 = vmatpush.bf16.msrb.mxu3 %v1232_v32 }
  0x2f   : > { %547 = vmatpush.bf16.msrb.mxu0 %v1219_v33 }
  0x30   : > { %669 = vmatpush.bf16.msrb.mxu2 %v1227_v34 }
  0x31   : > { %611 = vmatpush.bf16.msrb.mxu1 %v1223_v37 }
  0x32   : > { %727 = vmatpush.bf16.msrb.mxu3 %v1231_v38 }
  0x33   : > { %548 = vmatpush.bf16.msrb.mxu0 %v1218_v40 }
  0x34   : > { %670 = vmatpush.bf16.msrb.mxu2 %v1226_v41 }
  0x35   : > { %612 = vmatpush.bf16.msrb.mxu1 %v1222_v45 }
  0x36   : > { %728 = vmatpush.bf16.msrb.mxu3 %v1230_v46 }
  0x37   : > { %549 = vmatpush.bf16.msrb.mxu0 %v1217_v47 }
  0x38   : > { %671 = vmatpush.bf16.msrb.mxu2 %v1225_v48 }
  0x39   : > { %613 = vmatpush.bf16.msrb.mxu1 %v1221_v55 }
  0x3a   : > { %729 = vmatpush.bf16.msrb.mxu3 %v1229_v56  ;;  %1089 = vmatmul.msk.bf16.vlgmr.msrb.gmra.mxu0 %vm309_vm0, %v1063_v59 }
  0x3b   : > { %791 = vmatpush.bf16.msra.mxu0 %v1236_v50  ;;  %1142 = vmatmul.msk.bf16.vlgmr.msrb.gmra.mxu2 %vm309_vm0, %v636_v57 }
  0x3c   : > { %1116 = vmatmul.msk.bf16.vlgmr.msrb.gmra.mxu1 %vm309_vm0, %v578_v60 }
  0x3d   : > { %1169 = vmatmul.msk.bf16.vlgmr.msrb.gmra.mxu3 %vm309_vm0, %v694_v61 }
  0x3f   : > { %792 = vmatpush.bf16.msra.mxu0 %v1235_v62 }
  0x43   : > { %793 = vmatpush.bf16.msra.mxu0 %v1234_v0 }
  0x47   : > { %794 = vmatpush.bf16.msra.mxu0 %v1233_v3 }
  0x4a   : > { %1195 = vmatmul.msk.bf16.vlgmr.msra.gmra.mxu0 %vm309_vm0, %v759_v6 }
  0xa7   : > { %v322_v7 = vpop.f32.mrf.mxu0 }
  0xa8   : > { %v326_v13 = vadd.f32 %v322_v7, %v271_v9 }
  0xa9   : > { %v377_v8 = vpop.f32.mrf.mxu1 }
  0xaa   : > { %v381_v15 = vadd.f32 %v377_v8, %v326_v13 }
  0xae   : > { %v441_v10 = vpop.f32.mrf.mxu2 }
  0xaf   : > { %v324_v12 = vpop.f32.mrf.mxu0  ;;  %v445_v17 = vadd.f32 %v441_v10, %v381_v15 }
  0xb0   : > { %v496_v11 = vpop.f32.mrf.mxu3 }
  0xb1   : > { %v379_v14 = vpop.f32.mrf.mxu1  ;;  %v500_v21 = vadd.f32 %v496_v11, %v445_v17 }
  0xb6   : > { %v443_v16 = vpop.f32.mrf.mxu2 }
  0xb7   : > { %v551_v19 = vpop.f32.mrf.mxu0 }
  0xb8   : > { %v498_v18 = vpop.f32.mrf.mxu3  ;;  %v555_v22 = vadd.f32 %v551_v19, %v500_v21 }
  0xb9   : > { %v615_v20 = vpop.f32.mrf.mxu1 }
  0xba   : > { %v619_v26 = vadd.f32 %v615_v20, %v555_v22 }
  0xbe   : > { %v673_v23 = vpop.f32.mrf.mxu2 }
  0xbf   : > { %v553_v25 = vpop.f32.mrf.mxu0  ;;  %v677_v28 = vadd.f32 %v673_v23, %v619_v26 }
  0xc0   : > { %v731_v24 = vpop.f32.mrf.mxu3 }
  0xc1   : > { %v617_v27 = vpop.f32.mrf.mxu1  ;;  %v735_v30 = vadd.f32 %v731_v24, %v677_v28 }
  0xc6   : > { %v675_v29 = vpop.f32.mrf.mxu2 }
  0xc7   : > { %v796_v32 = vpop.f32.mrf.mxu0 }
  0xc8   : > { %v733_v31 = vpop.f32.mrf.mxu3  ;;  %v800_v33 = vadd.f32 %v796_v32, %v735_v30 }
  0xca   : > { %801 = vst [vmem:[#allocation2] sm:$0x3] %v800_v33 }
  0xcb   : > { %805 = sbr.rel (%p1196_p8) target bundleno = 217 (0xd9), region = 40 }
  0xcf   : > { %v798_v34 = vpop.f32.mrf.mxu0 }
  0xd0   : > { %v1278_v36 = vld [vmem:[%s1471_s2] ss:$0 sm:$0xff] }
  0xd1   : > { %v806_v35 = vld [vmem:[#allocation2] sm:$0x3] }
  0xd2   : > { %v811_v37 = vadd.f32 %v1278_v36, %v806_v35 }
  0xd4   : > { %v812_v38 = vmax.f32 %v811_v37, 0.0 }
  0xd6   : > { %v813_v39 = vpack.c.bf16 %v812_v38, %v812_v38 }
  0xd8   : > { %814 = vst [vmem:[%s263_s23] sm:$0x1] %v813_v39 }
  0xd9 PF: > { %s13_s16 = sadd.s32 1, %s1317_s16   ;;  %s1473_s12 = smov %s1309_s14 }
  0xda   : > { %p10_p9 = scmp.ge.s32.totalorder %s13_s16, 8   ;;  %s1474_s13 = smov %s1313_s15 }
  0xdb   : > { %s1475_s14 = smov %s1478_s17  ;;  %s1476_s15 = smov %s1482_s18 }
  0xdc   :  { %12 = sbr.rel (!%p10_p9) target bundleno = 3 (0x3), region = 88 }

// kernel: _repvgg_forward_impl.13
= control target key start
LH: loop header
LB: loop body
LE: loop exit
PB: predicated region body
PF: predicated region fallthrough
CT: control target
= control target key end

     0   :  { %vm44_vm0 = vcmask 1041409   ;;  %s153_s1 = inlined_call_operand.vmem [shape: f32[128,128], index: 1, kind: input, shape index: {}]   ;;  %s154_s2 = inlined_call_operand.vmem [shape: f32[1,128], index: 2, kind: input, shape index: {}]   ;;  %s155_s0 = inlined_call_operand.vmem [shape: bf16[2,1,128], index: 0, kind: input, shape index: {}]   ;;  %s156_s3 = inlined_call_operand.vmem [shape: f32[2,128], index: 3, kind: output, shape index: {}]  }
   0x1   :  { %v35_v0 = vld [vmem:[%s153_s1 + $0x78] sm:$0xff]  ;;  %v34_v1 = vld [vmem:[%s153_s1 + $0x70] sm:$0xff]  ;;  %v33_v2 = vld [vmem:[%s153_s1 + $0x68] sm:$0xff] }
   0x2   :  { %47 = vmatpush.msra.mxu0 %v35_v0  ;;  %v32_v3 = vld [vmem:[%s153_s1 + $0x60] sm:$0xff]  ;;  %v31_v4 = vld [vmem:[%s153_s1 + $0x58] sm:$0xff]  ;;  %v30_v5 = vld [vmem:[%s153_s1 + $0x50] sm:$0xff] }
   0x3   :  { %v29_v6 = vld [vmem:[%s153_s1 + $0x48] sm:$0xff]  ;;  %v28_v7 = vld [vmem:[%s153_s1 + $0x40] sm:$0xff]  ;;  %v27_v8 = vld [vmem:[%s153_s1 + $0x38] sm:$0xff] }
   0x4   :  { %48 = vmatpush.msra.mxu0 %v34_v1  ;;  %v26_v9 = vld [vmem:[%s153_s1 + $0x30] sm:$0xff]  ;;  %v25_v10 = vld [vmem:[%s153_s1 + $0x28] sm:$0xff]  ;;  %v14_v11 = vld [vmem:[%s155_s0] sm:$0x1] }
   0x5   :  { %v15_v12 = vld [vmem:[%s155_s0 + $0x1] sm:$0x1]  ;;  %v16_v14 = vunpack.c.l.bf16 %v14_v11  ;;  %v23_v16 = vld [vmem:[%s153_s1 + $0x18] sm:$0xff]  ;;  %v22_v17 = vld [vmem:[%s153_s1 + $0x10] sm:$0xff] }
   0x6   :  { %49 = vmatpush.msra.mxu0 %v33_v2  ;;  %v24_v13 = vld [vmem:[%s153_s1 + $0x20] sm:$0xff]  ;;  %v17_v15 = vunpack.c.l.bf16 %v15_v12  ;;  %v21_v20 = vld [vmem:[%s153_s1 + $0x8] sm:$0xff] }
   0x7   :  { %v42_v18 = vperm.slane %v16_v14, 0  ;;  %v20_v21 = vld [vmem:[%s153_s1] sm:$0xff] }
   0x8   :  { %50 = vmatpush.msra.mxu0 %v32_v3  ;;  %v43_v19 = vperm.slane %v17_v15, 0  ;;  %v72_v23 = vld [vmem:[%s154_s2] ss:$0 sm:$0xff] }
   0xa   :  { %51 = vmatpush.msra.mxu0 %v31_v4  ;;  %v45_v22 = vsel %vm44_vm0, %v43_v19, %v42_v18 }
   0xc   :  { %52 = vmatpush.msra.mxu0 %v30_v5 }
   0xe   :  { %53 = vmatpush.msra.mxu0 %v29_v6 }
  0x10   :  { %54 = vmatpush.msra.mxu0 %v28_v7 }
  0x12   :  { %55 = vmatpush.msra.mxu0 %v27_v8 }
  0x14   :  { %56 = vmatpush.msra.mxu0 %v26_v9 }
  0x16   :  { %57 = vmatpush.msra.mxu0 %v25_v10 }
  0x18   :  { %58 = vmatpush.msra.mxu0 %v24_v13 }
  0x1a   :  { %59 = vmatpush.msra.mxu0 %v23_v16 }
  0x1c   :  { %60 = vmatpush.msra.mxu0 %v22_v17 }
  0x1e   :  { %61 = vmatpush.msra.mxu0 %v21_v20 }
  0x20   :  { %62 = vmatpush.msra.mxu0 %v20_v21 }
  0x21   :  { %63 = vmatmul.f32.vlgmr.msra.gmra.mxu0 %v45_v22 }
  0x9e   :  { %v64_v24 = vpop.f32.mrf.mxu0 }
  0x9f   :  { %v65_v25 = vadd.f32 %v72_v23, %v64_v24 }
  0xa1   :  { %67 = vst [vmem:[%s156_s3] sm:$0x3] %v65_v25 }

</bundles_post_ra>
